<compile_context>
chip_gen: v7x
topology: tpu7x:2x2x1
jax: 0.10.0
libtpu: 0.0.40
codegen_flags: <defaults>
</compile_context>

<pallas_src>
import functools

import jax
import jax.numpy as jnp
from jax.experimental import pallas as pl
from jax.experimental.pallas import tpu as pltpu

EPS = 1e-5
LANE = 128
_VMEM_LIMIT = 32 * 1024 * 1024      # scoped VMEM request, safe on v5e/v6e/v7x
_TILE_BUDGET = 10 * 1024 * 1024     # budget for the double-buffered tiles
_TILE_CAP = 1024                    # keeps v7x's 64 MiB VMEM comfortable


def _round_up(x, m):
    return ((x + m - 1) // m) * m


def _pick_tile_m(M, K, Cp):
    """Largest multiple-of-8 divisor of M that fits the VMEM tile budget."""
    row_bytes = 4 * K + 12 * Cp          # bf16 patches (x2 buf) + f32 y + slack
    cap = max(8, _TILE_BUDGET // max(row_bytes, 1))
    cap = min(cap, _TILE_CAP, M)
    cap -= cap % 8
    t = cap
    while t >= 8:
        if M % t == 0:
            return t
        t -= 8
    return M                             # fallback: single full-M tile


def _pick_tile_rows(MR, OW, Wp, Cin_p, Cp):
    """Image-row tile for the stride-1 implicit-im2col path."""
    row_bytes = (12 * Wp * Cin_p         # 3 bf16 views, double buffered
                 + 12 * OW * Cp          # f32 y (x2 buf) + f32 accumulator
                 + 4 * OW * Cin_p)       # lhs staging slices
    cap = _TILE_BUDGET // max(row_bytes, 1)
    cap = min(cap, max(1, 2048 // max(OW, 1)), MR)
    for t in range(max(cap, 1), 0, -1):
        if MR % t == 0 and (t * OW) % 8 == 0:
            return t
    return MR                            # full extent is always legal


# ----------------------------------------------------------------------------
# Shared pass 2 kernel: folded BatchNorm apply (+ReLU) (+residual)
# ----------------------------------------------------------------------------
def _bn_apply_kernel(*refs, relu, has_res):
    if has_res:
        y_ref, ss_ref, r_ref, o_ref = refs
    else:
        y_ref, ss_ref, o_ref = refs
        r_ref = None
    out = y_ref[...] * ss_ref[0:1, :] + ss_ref[1:2, :]
    if relu:                             # ResBlock: relu AFTER bn
        out = jnp.maximum(out, 0.0)
    if has_res:                          # ResBlock skip connection
        out = out + r_ref[...]
    o_ref[...] = out


def _fold_bn(stats, M, Cout, Cp, gamma, beta):
    """Cross-tile reduction of (sum, sumsq) -> folded per-channel scale/shift."""
    stats = stats.reshape(-1, 8, Cp)
    mean = jnp.sum(stats[:, 0, :], axis=0) / M
    var = jnp.maximum(jnp.sum(stats[:, 1, :], axis=0) / M - mean * mean, 0.0)
    g_p = jnp.zeros((Cp,), jnp.float32).at[:Cout].set(gamma.astype(jnp.float32))
    bt_p = jnp.zeros((Cp,), jnp.float32).at[:Cout].set(beta.astype(jnp.float32))
    scale = g_p * jax.lax.rsqrt(var + EPS)
    shift = bt_p - mean * scale
    return scale, shift


def _bn_apply(y, scale, shift, M, Cp, *, relu, residual2d):
    ss_pack = jnp.zeros((8, Cp), jnp.float32).at[0].set(scale).at[1].set(shift)
    TILE = _pick_tile_m(M, 0, Cp)
    num_tiles = M // TILE
    has_res = residual2d is not None

    in2 = [y, ss_pack]
    specs2 = [pl.BlockSpec((TILE, Cp), lambda i: (i, 0)),
              pl.BlockSpec((8, Cp), lambda i: (0, 0))]
    if has_res:
        in2.append(residual2d)
        specs2.append(pl.BlockSpec((TILE, Cp), lambda i: (i, 0)))

    kernel2 = functools.partial(_bn_apply_kernel, relu=relu, has_res=has_res)
    cparams = pltpu.CompilerParams(dimension_semantics=("parallel",),
                                   vmem_limit_bytes=_VMEM_LIMIT)
    return pl.pallas_call(
        kernel2,
        out_shape=jax.ShapeDtypeStruct((M, Cp), jnp.float32),
        grid=(num_tiles,),
        in_specs=specs2,
        out_specs=pl.BlockSpec((TILE, Cp), lambda i: (i, 0)),
        compiler_params=cparams,
    )(*in2)


# ----------------------------------------------------------------------------
# Pass 1 (stride 1): implicit-im2col conv3x3 (+bias) + per-tile BN partials
#   inputs : 3 H-shifted views [TILE_R, Wp, Cin_p] bf16, weights [9, Cin_p, Cp]
#   kernel : 9 accumulated MXU matmuls, kw taps via static sublane slices
# ----------------------------------------------------------------------------
def _conv_s1_kernel(*refs, ow, add_bias, with_stats):
    it = iter(refs)
    x_refs = [next(it), next(it), next(it)]      # 3x [TILE_R, Wp, Cin_p] bf16
    w_ref = next(it)                             # [9, Cin_p, Cp] bf16
    b_ref = next(it) if add_bias else None       # [8, Cp] f32 (row 0 = bias)
    y_ref = next(it)                             # [TILE_R*ow, Cp] f32
    st_ref = next(it) if with_stats else None    # [8, Cp] per-tile stats

    tile_r, wp, cin_p = x_refs[0].shape
    cp = y_ref.shape[-1]

    acc = jnp.zeros((tile_r * ow, cp), jnp.float32)
    for kh in range(3):
        xk = x_refs[kh][...]                     # [tile_r, wp, cin_p] bf16
        for kw in range(3):
            lhs = xk[:, kw:kw + ow, :].reshape(tile_r * ow, cin_p)
            acc = acc + jnp.dot(lhs, w_ref[3 * kh + kw],
                                preferred_element_type=jnp.float32)
    if add_bias:
        acc = acc + b_ref[0:1, :]
    y_ref[...] = acc

    if with_stats:                               # single-pass sum / sum-of-sq
        s = jnp.sum(acc, axis=0, keepdims=True)
        ss = jnp.sum(acc * acc, axis=0, keepdims=True)
        st_ref[...] = jnp.concatenate(
            [s, ss, jnp.zeros((6, cp), jnp.float32)], axis=0)


def _conv_layer_s1(x_nhwc, w, b, gamma, beta, mode, residual):
    """Stride-1 conv3x3 via 3 H-shifted views + in-kernel kw slices."""
    N, H, W_, Cin_p = x_nhwc.shape
    Cout, cin = int(w.shape[0]), int(w.shape[1])
    OH, OW = H, W_
    Wp = W_ + 2
    MR = N * OH
    M = MR * OW
    Cp = _round_up(Cout, LANE)

    # ---- 3 H-shifted bf16 views of the zero-padded input (glue) ----
    xp = jnp.pad(x_nhwc, ((0, 0), (1, 1), (1, 1), (0, 0)))
    views = [xp[:, kh:kh + OH, :, :].reshape(MR, Wp, Cin_p).astype(jnp.bfloat16)
             for kh in range(3)]

    # ---- weight packing: [3,3,Cin_p,Cp] -> [9, Cin_p, Cp] bf16, zero-padded --
    wm = jnp.zeros((3, 3, Cin_p, Cp), jnp.float32)
    wm = wm.at[:, :, :cin, :Cout].set(
        jnp.transpose(w, (2, 3, 1, 0)).astype(jnp.float32))
    wm = wm.reshape(9, Cin_p, Cp).astype(jnp.bfloat16)

    add_bias = mode == "conv"            # bias is cancelled by BN -> dropped
    with_stats = mode == "conv_bn_relu"

    TILE_R = _pick_tile_rows(MR, OW, Wp, Cin_p, Cp)
    num_tiles = MR // TILE_R
    TILE_M = TILE_R * OW

    in_arrays = list(views) + [wm]
    in_specs = ([pl.BlockSpec((TILE_R, Wp, Cin_p), lambda i: (i, 0, 0))
                 for _ in range(3)]
                + [pl.BlockSpec((9, Cin_p, Cp), lambda i: (0, 0, 0))])
    if add_bias:
        b_pack = jnp.zeros((8, Cp), jnp.float32).at[0, :Cout].set(
            b.astype(jnp.float32))
        in_arrays.append(b_pack)
        in_specs.append(pl.BlockSpec((8, Cp), lambda i: (0, 0)))

    out_shapes = [jax.ShapeDtypeStruct((M, Cp), jnp.float32)]
    out_specs = [pl.BlockSpec((TILE_M, Cp), lambda i: (i, 0))]
    if with_stats:
        out_shapes.append(jax.ShapeDtypeStruct((num_tiles * 8, Cp), jnp.float32))
        out_specs.append(pl.BlockSpec((8, Cp), lambda i: (i, 0)))

    kernel1 = functools.partial(_conv_s1_kernel, ow=OW, add_bias=add_bias,
                                with_stats=with_stats)
    cost = pl.CostEstimate(
        flops=2 * M * 9 * Cin_p * Cp, transcendentals=0,
        bytes_accessed=(3 * MR * Wp * Cin_p * 2 + 9 * Cin_p * Cp * 2
                        + M * Cp * 4
                        + (num_tiles * 8 * Cp * 4 if with_stats else 0)))
    cparams = pltpu.CompilerParams(dimension_semantics=("parallel",),
                                   vmem_limit_bytes=_VMEM_LIMIT)

    res1 = pl.pallas_call(
        kernel1,
        out_shape=tuple(out_shapes) if with_stats else out_shapes[0],
        grid=(num_tiles,),
        in_specs=in_specs,
        out_specs=tuple(out_specs) if with_stats else out_specs[0],
        compiler_params=cparams,
        cost_estimate=cost,
    )(*in_arrays)

    if not with_stats:                   # bare conv3x3 (keep_res=True stem)
        return res1.reshape(N, OH, OW, Cp)

    y, stats = res1
    scale, shift = _fold_bn(stats, M, Cout, Cp, gamma, beta)
    res2d = None
    if residual is not None:
        assert residual.shape == (N, OH, OW, Cp), residual.shape
        res2d = residual.reshape(M, Cp).astype(jnp.float32)
    out = _bn_apply(y, scale, shift, M, Cp, relu=True, residual2d=res2d)
    return out.reshape(N, OH, OW, Cp)


# ----------------------------------------------------------------------------
# Pass 1 (explicit im2col, used for the stride-2 DownSampleBlock conv)
# ----------------------------------------------------------------------------
def _conv_stats_kernel(*refs, add_bias, relu, with_stats):
    it = iter(refs)
    p_ref = next(it)                     # [TILE_M, K]   bf16 im2col patches
    w_ref = next(it)                     # [K, Cp]       bf16 packed weights
    b_ref = next(it) if add_bias else None   # [8, Cp] f32 (row 0 = bias)
    y_ref = next(it)                     # [TILE_M, Cp]  f32 conv output tile
    st_ref = next(it) if with_stats else None   # [8, Cp] per-tile stats

    y = jnp.dot(p_ref[...], w_ref[...], preferred_element_type=jnp.float32)
    if add_bias:
        y = y + b_ref[0:1, :]
    if relu:                             # DownSampleBlock: relu BEFORE bn
        y = jnp.maximum(y, 0.0)
    y_ref[...] = y

    if with_stats:
        s = jnp.sum(y, axis=0, keepdims=True)
        ss = jnp.sum(y * y, axis=0, keepdims=True)
        st_ref[...] = jnp.concatenate(
            [s, ss, jnp.zeros((6, y.shape[1]), jnp.float32)], axis=0)


def _conv_layer_im2col(x_nhwc, w, b, gamma, beta, *, stride, mode, residual):
    N, H, W_, Cin_p = x_nhwc.shape
    Cout, cin = int(w.shape[0]), int(w.shape[1])
    OH = (H + 2 - 3) // stride + 1
    OW = (W_ + 2 - 3) // stride + 1
    M = N * OH * OW
    K = 9 * Cin_p
    Cp = _round_up(Cout, LANE)

    # ---- im2col patches, emitted directly in bf16 (glue) ----
    xp = jnp.pad(x_nhwc, ((0, 0), (1, 1), (1, 1), (0, 0)))
    cols = [xp[:, kh::stride, kw::stride, :][:, :OH, :OW, :]
            for kh in range(3) for kw in range(3)]
    patches = jnp.concatenate(cols, axis=-1).reshape(M, K).astype(jnp.bfloat16)

    wm = jnp.zeros((3, 3, Cin_p, Cp), jnp.float32)
    wm = wm.at[:, :, :cin, :Cout].set(
        jnp.transpose(w, (2, 3, 1, 0)).astype(jnp.float32))
    wm = wm.reshape(K, Cp).astype(jnp.bfloat16)

    add_bias = mode in ("conv", "conv_relu_bn")
    relu1 = mode == "conv_relu_bn"
    with_stats = mode in ("conv_relu_bn", "conv_bn_relu")

    TILE_M = _pick_tile_m(M, K, Cp)
    num_tiles = M // TILE_M

    in_arrays = [patches, wm]
    in_specs = [pl.BlockSpec((TILE_M, K), lambda i: (i, 0)),
                pl.BlockSpec((K, Cp), lambda i: (0, 0))]
    if add_bias:
        b_pack = jnp.zeros((8, Cp), jnp.float32).at[0, :Cout].set(
            b.astype(jnp.float32))
        in_arrays.append(b_pack)
        in_specs.append(pl.BlockSpec((8, Cp), lambda i: (0, 0)))

    out_shapes = [jax.ShapeDtypeStruct((M, Cp), jnp.float32)]
    out_specs = [pl.BlockSpec((TILE_M, Cp), lambda i: (i, 0))]
    if with_stats:
        out_shapes.append(jax.ShapeDtypeStruct((num_tiles * 8, Cp), jnp.float32))
        out_specs.append(pl.BlockSpec((8, Cp), lambda i: (i, 0)))

    kernel1 = functools.partial(_conv_stats_kernel, add_bias=add_bias,
                                relu=relu1, with_stats=with_stats)
    cost = pl.CostEstimate(
        flops=2 * M * K * Cp, transcendentals=0,
        bytes_accessed=(M * K * 2 + K * Cp * 2 + M * Cp * 4
                        + (num_tiles * 8 * Cp * 4 if with_stats else 0)))
    cparams = pltpu.CompilerParams(dimension_semantics=("parallel",),
                                   vmem_limit_bytes=_VMEM_LIMIT)

    res1 = pl.pallas_call(
        kernel1,
        out_shape=tuple(out_shapes) if with_stats else out_shapes[0],
        grid=(num_tiles,),
        in_specs=in_specs,
        out_specs=tuple(out_specs) if with_stats else out_specs[0],
        compiler_params=cparams,
        cost_estimate=cost,
    )(*in_arrays)

    if not with_stats:
        return res1.reshape(N, OH, OW, Cp)

    y, stats = res1
    scale, shift = _fold_bn(stats, M, Cout, Cp, gamma, beta)
    res2d = None
    if residual is not None:
        assert residual.shape == (N, OH, OW, Cp), residual.shape
        res2d = residual.reshape(M, Cp).astype(jnp.float32)
    out = _bn_apply(y, scale, shift, M, Cp,
                    relu=(mode == "conv_bn_relu"), residual2d=res2d)
    return out.reshape(N, OH, OW, Cp)


# ----------------------------------------------------------------------------
# One conv3x3 (+BN/ReLU)(+residual) layer — dispatch on stride/mode
# ----------------------------------------------------------------------------
def conv_layer(x_nhwc, w, b=None, gamma=None, beta=None, *, stride=1,
               mode="conv_bn_relu", residual=None):
    """mode: 'conv' | 'conv_relu_bn' (DownSampleBlock) | 'conv_bn_relu' (ResBlock)."""
    if stride == 1 and mode in ("conv", "conv_bn_relu"):
        return _conv_layer_s1(x_nhwc, w, b, gamma, beta, mode, residual)
    return _conv_layer_im2col(x_nhwc, w, b, gamma, beta, stride=stride,
                              mode=mode, residual=residual)


# ----------------------------------------------------------------------------
# BackboneBlock forward
# ----------------------------------------------------------------------------
def backbone_block_forward(x_nchw, params, repetitions, keep_res=False):
    x = jnp.transpose(x_nchw, (0, 2, 3, 1)).astype(jnp.float32)  # NCHW -> NHWC

    if not keep_res:
        d = params["down"]
        cout = int(d["w"].shape[0])
        # DownSampleBlock: conv3x3(stride=2) -> ReLU -> BatchNorm
        net = conv_layer(x, d["w"], d["b"], d["gamma"], d["beta"],
                         stride=2, mode="conv_relu_bn")
    else:
        s = params["stem"]
        cout = int(s["w"].shape[0])
        # keep_res=True first element is a bare conv3x3 (no BN / ReLU)
        net = conv_layer(x, s["w"], s["b"], stride=1, mode="conv")

    rb = params["res"]  # shared across repetitions (ModuleList repeats one module)
    for _ in range(repetitions):
        inp = net                                  # [N, H, W, Cp] lane-padded
        # conv biases are cancelled by the batch-mean subtraction -> not passed
        net = conv_layer(net, rb["w1"], gamma=rb["g1"], beta=rb["bt1"],
                         mode="conv_bn_relu")
        net = conv_layer(net, rb["w2"], gamma=rb["g2"], beta=rb["bt2"],
                         mode="conv_bn_relu")
        net = conv_layer(net, rb["w3"], gamma=rb["g3"], beta=rb["bt3"],
                         mode="conv_bn_relu", residual=inp)
        # TODO(synk): ResBlock's `if x.size(1) < net.size(1): F.pad(...)` branch
        # is dead here (in==out channels) and ill-formed upstream; not reproduced.

    net = net[..., :cout]                          # drop channel padding once
    return jnp.transpose(net, (0, 3, 1, 2))        # NHWC -> NCHW


# ----------------------------------------------------------------------------
# Deterministic parameter construction (PyTorch-like uniform init)
# ----------------------------------------------------------------------------
def _conv_params(key, cin, cout):
    kw, kb = jax.random.split(key)
    bound = 1.0 / jnp.sqrt(cin * 9.0)
    w = jax.random.uniform(kw, (cout, cin, 3, 3), jnp.float32, -bound, bound)
    b = jax.random.uniform(kb, (cout,), jnp.float32, -bound, bound)
    return w, b


def make_params(in_channels, out_channels, keep_res=False, seed=1234):
    keys = jax.random.split(jax.random.PRNGKey(seed), 8)
    params = {}
    if not keep_res:
        w, b = _conv_params(keys[0], in_channels, out_channels)
        params["down"] = dict(w=w, b=b,
                              gamma=jnp.ones((out_channels,), jnp.float32),
                              beta=jnp.zeros((out_channels,), jnp.float32))
    else:
        w, b = _conv_params(keys[0], in_channels, out_channels)
        params["stem"] = dict(w=w, b=b)
    res = {}
    for i, k in zip((1, 2, 3), keys[1:4]):
        w, b = _conv_params(k, out_channels, out_channels)
        res[f"w{i}"] = w
        res[f"b{i}"] = b
        res[f"g{i}"] = jnp.ones((out_channels,), jnp.float32)
        res[f"bt{i}"] = jnp.zeros((out_channels,), jnp.float32)
    params["res"] = res
    return params


# ----------------------------------------------------------------------------
# Pure-JAX reference (for correctness check)
# ----------------------------------------------------------------------------
def _conv_ref(x_nhwc, w, b, stride):
    y = jax.lax.conv_general_dilated(
        x_nhwc, jnp.transpose(w, (2, 3, 1, 0)), (stride, stride),
        ((1, 1), (1, 1)), dimension_numbers=("NHWC", "HWIO", "NHWC"),
        precision=jax.lax.Precision.HIGHEST)
    return y + b


def _bn_ref(x, g, bt):
    mean = jnp.mean(x, axis=(0, 1, 2), keepdims=True)
    var = jnp.var(x, axis=(0, 1, 2), keepdims=True)
    return (x - mean) * jax.lax.rsqrt(var + EPS) * g + bt


def backbone_block_ref(x_nchw, params, repetitions):
    x = jnp.transpose(x_nchw, (0, 2, 3, 1)).astype(jnp.float32)
    d = params["down"]
    net = _bn_ref(jnp.maximum(_conv_ref(x, d["w"], d["b"], 2), 0.0),
                  d["gamma"], d["beta"])
    rb = params["res"]
    for _ in range(repetitions):
        inp = net
        for i in (1, 2, 3):
            net = jnp.maximum(
                _bn_ref(_conv_ref(net, rb[f"w{i}"], rb[f"b{i}"], 1),
                        rb[f"g{i}"], rb[f"bt{i}"]), 0.0)
        net = net + inp
    return jnp.transpose(net, (0, 3, 1, 2))


# ----------------------------------------------------------------------------
if __name__ == "__main__":
    in_channels, out_channels, repetitions = 4, 8, 2
    params = make_params(in_channels, out_channels, keep_res=False)

    x = jax.random.normal(jax.random.PRNGKey(0), (2, in_channels, 16, 16),
                          dtype=jnp.float32)

    fwd = jax.jit(functools.partial(backbone_block_forward,
                                    repetitions=repetitions, keep_res=False))
    out = fwd(x, params)
    jax.block_until_ready(out)

    assert out.shape == (2, out_channels, 8, 8), out.shape

    ref = backbone_block_ref(x, params, repetitions)
    max_err = float(jnp.max(jnp.abs(out - ref)))
    # bf16 MXU inputs vs f32-HIGHEST reference -> bf16-appropriate tolerance
    assert jnp.allclose(out, ref, atol=5e-2, rtol=5e-2), max_err

    print("KERNEL_OK")
</pallas_src>

<mosaic_0001>
module attributes {stable_mosaic.version = 11 : i64} {
  func.func @_bn_apply_kernel(%arg0: i32, %arg1: memref<128x128xf32, #tpu.memory_space<vmem>>, %arg2: memref<8x128xf32, #tpu.memory_space<vmem>>, %arg3: memref<128x128xf32, #tpu.memory_space<vmem>>) attributes {dimension_semantics = [#tpu.dimension_semantics<parallel>], iteration_bounds = array<i64: 1>, scalar_prefetch = 0 : i64, scratch_operands = 0 : i64, tpu.core_type = #tpu.core_type<tc>, window_params = [{transform_indices = @transform_0, window_bounds = array<i64: 128, 128>}, {pipeline_mode = #tpu.pipeline_mode<synchronous>, transform_indices = @transform_1, window_bounds = array<i64: 8, 128>}, {transform_indices = @transform_2, window_bounds = array<i64: 128, 128>}]} {
    %c0 = arith.constant 0 : index
    %c0_0 = arith.constant 0 : index
    %0 = vector.load %arg1[%c0, %c0_0] : memref<128x128xf32, #tpu.memory_space<vmem>>, vector<128x128xf32>
    %c0_1 = arith.constant 0 : index
    %c0_2 = arith.constant 0 : index
    %1 = vector.load %arg2[%c0_1, %c0_2] : memref<8x128xf32, #tpu.memory_space<vmem>>, vector<1x128xf32>
    %2 = vector.broadcast %1 : vector<1x128xf32> to vector<128x128xf32>
    %3 = arith.mulf %0, %2 : vector<128x128xf32>
    %c1 = arith.constant 1 : index
    %c0_3 = arith.constant 0 : index
    %4 = vector.load %arg2[%c1, %c0_3] : memref<8x128xf32, #tpu.memory_space<vmem>>, vector<1x128xf32>
    %5 = vector.broadcast %4 : vector<1x128xf32> to vector<128x128xf32>
    %6 = arith.addf %3, %5 : vector<128x128xf32>
    %c0_4 = arith.constant 0 : index
    %c0_5 = arith.constant 0 : index
    %7 = vector.load %arg3[%c0_4, %c0_5] : memref<128x128xf32, #tpu.memory_space<vmem>>, vector<128x128xf32>
    tpu.vector_store %arg3[%c0_4, %c0_5], %6 {strides = array<i32>} : memref<128x128xf32, #tpu.memory_space<vmem>>, vector<128x128xf32>,
    return
  }
  func.func @transform_0(%arg0: i32) -> (i32, i32) {
    %c0_i32 = arith.constant 0 : i32
    %c0_i32_0 = arith.constant 0 : i32
    return %arg0, %c0_i32 : i32, i32
  }
  func.func @transform_1(%arg0: i32) -> (i32, i32) {
    %c0_i32 = arith.constant 0 : i32
    %c0_i32_0 = arith.constant 0 : i32
    %c0_i32_1 = arith.constant 0 : i32
    return %c0_i32, %c0_i32_0 : i32, i32
  }
  func.func @transform_2(%arg0: i32) -> (i32, i32) {
    %c0_i32 = arith.constant 0 : i32
    %c0_i32_0 = arith.constant 0 : i32
    return %arg0, %c0_i32 : i32, i32
  }
}

module attributes {stable_mosaic.version = 11 : i64} {
  func.func @_conv_stats_kernel(%arg0: i32, %arg1: memref<128x36xbf16, #tpu.memory_space<vmem>>, %arg2: memref<36x128xbf16, #tpu.memory_space<vmem>>, %arg3: memref<8x128xf32, #tpu.memory_space<vmem>>, %arg4: memref<128x128xf32, #tpu.memory_space<vmem>>, %arg5: memref<8x128xf32, #tpu.memory_space<vmem>>) attributes {dimension_semantics = [#tpu.dimension_semantics<parallel>], iteration_bounds = array<i64: 1>, scalar_prefetch = 0 : i64, scratch_operands = 0 : i64, tpu.core_type = #tpu.core_type<tc>, window_params = [{transform_indices = @transform_0, window_bounds = array<i64: 128, 36>}, {pipeline_mode = #tpu.pipeline_mode<synchronous>, transform_indices = @transform_1, window_bounds = array<i64: 36, 128>}, {pipeline_mode = #tpu.pipeline_mode<synchronous>, transform_indices = @transform_2, window_bounds = array<i64: 8, 128>}, {transform_indices = @transform_3, window_bounds = array<i64: 128, 128>}, {transform_indices = @transform_4, window_bounds = array<i64: 8, 128>}]} {
    %c0 = arith.constant 0 : index
    %c0_0 = arith.constant 0 : index
    %0 = vector.load %arg1[%c0, %c0_0] : memref<128x36xbf16, #tpu.memory_space<vmem>>, vector<128x36xbf16>
    %c0_1 = arith.constant 0 : index
    %c0_2 = arith.constant 0 : index
    %1 = vector.load %arg2[%c0_1, %c0_2] : memref<36x128xbf16, #tpu.memory_space<vmem>>, vector<36x128xbf16>
    %cst = arith.constant dense<0.000000e+00> : vector<128x128xf32>
    %2 = tpu.matmul %0, %1, %cst {dimension_numbers = #tpu.dot_dimension_numbers<[1], [0], [0], [1], [0, 0, 1, 1], [], []>} : vector<128x36xbf16>, vector<36x128xbf16>, vector<128x128xf32> -> vector<128x128xf32>
    %c0_3 = arith.constant 0 : index
    %c0_4 = arith.constant 0 : index
    %3 = vector.load %arg3[%c0_3, %c0_4] : memref<8x128xf32, #tpu.memory_space<vmem>>, vector<1x128xf32>
    %4 = vector.broadcast %3 : vector<1x128xf32> to vector<128x128xf32>
    %5 = arith.addf %2, %4 : vector<128x128xf32>
    %cst_5 = arith.constant 0.000000e+00 : f32
    %6 = vector.broadcast %cst_5 : f32 to vector<128x128xf32>
    %7 = arith.maximumf %5, %6 : vector<128x128xf32>
    %c0_6 = arith.constant 0 : index
    %c0_7 = arith.constant 0 : index
    %8 = vector.load %arg4[%c0_6, %c0_7] : memref<128x128xf32, #tpu.memory_space<vmem>>, vector<128x128xf32>
    tpu.vector_store %arg4[%c0_6, %c0_7], %7 {strides = array<i32>} : memref<128x128xf32, #tpu.memory_space<vmem>>, vector<128x128xf32>,
    %cst_8 = arith.constant dense<0.000000e+00> : vector<128xf32>
    %9 = vector.multi_reduction <add>, %7, %cst_8 [0] : vector<128x128xf32> to vector<128xf32>
    %10 = vector.shape_cast %9 : vector<128xf32> to vector<1x128xf32>
    %11 = arith.mulf %7, %7 : vector<128x128xf32>
    %cst_9 = arith.constant dense<0.000000e+00> : vector<128xf32>
    %12 = vector.multi_reduction <add>, %11, %cst_9 [0] : vector<128x128xf32> to vector<128xf32>
    %13 = vector.shape_cast %12 : vector<128xf32> to vector<1x128xf32>
    %cst_10 = arith.constant 0.000000e+00 : f32
    %14 = vector.broadcast %cst_10 : f32 to vector<6x128xf32>
    %15 = tpu.concatenate %10, %13, %14 in 0 : vector<1x128xf32>, vector<1x128xf32>, vector<6x128xf32> -> vector<8x128xf32>
    %c0_11 = arith.constant 0 : index
    %c0_12 = arith.constant 0 : index
    %16 = vector.load %arg5[%c0_11, %c0_12] : memref<8x128xf32, #tpu.memory_space<vmem>>, vector<8x128xf32>
    tpu.vector_store %arg5[%c0_11, %c0_12], %15 {strides = array<i32>} : memref<8x128xf32, #tpu.memory_space<vmem>>, vector<8x128xf32>,
    return
  }
  func.func @transform_0(%arg0: i32) -> (i32, i32) {
    %c0_i32 = arith.constant 0 : i32
    %c0_i32_0 = arith.constant 0 : i32
    return %arg0, %c0_i32 : i32, i32
  }
  func.func @transform_1(%arg0: i32) -> (i32, i32) {
    %c0_i32 = arith.constant 0 : i32
    %c0_i32_0 = arith.constant 0 : i32
    %c0_i32_1 = arith.constant 0 : i32
    return %c0_i32, %c0_i32_0 : i32, i32
  }
  func.func @transform_2(%arg0: i32) -> (i32, i32) {
    %c0_i32 = arith.constant 0 : i32
    %c0_i32_0 = arith.constant 0 : i32
    %c0_i32_1 = arith.constant 0 : i32
    return %c0_i32, %c0_i32_0 : i32, i32
  }
  func.func @transform_3(%arg0: i32) -> (i32, i32) {
    %c0_i32 = arith.constant 0 : i32
    %c0_i32_0 = arith.constant 0 : i32
    return %arg0, %c0_i32 : i32, i32
  }
  func.func @transform_4(%arg0: i32) -> (i32, i32) {
    %c0_i32 = arith.constant 0 : i32
    %c0_i32_0 = arith.constant 0 : i32
    return %arg0, %c0_i32 : i32, i32
  }
}

module attributes {stable_mosaic.version = 11 : i64} {
  func.func @_conv_s1_kernel(%arg0: i32, %arg1: memref<16x10x128xbf16, #tpu.memory_space<vmem>>, %arg2: memref<16x10x128xbf16, #tpu.memory_space<vmem>>, %arg3: memref<16x10x128xbf16, #tpu.memory_space<vmem>>, %arg4: memref<9x128x128xbf16, #tpu.memory_space<vmem>>, %arg5: memref<128x128xf32, #tpu.memory_space<vmem>>, %arg6: memref<8x128xf32, #tpu.memory_space<vmem>>) attributes {dimension_semantics = [#tpu.dimension_semantics<parallel>], iteration_bounds = array<i64: 1>, scalar_prefetch = 0 : i64, scratch_operands = 0 : i64, tpu.core_type = #tpu.core_type<tc>, window_params = [{transform_indices = @transform_0, window_bounds = array<i64: 16, 10, 128>}, {transform_indices = @transform_1, window_bounds = array<i64: 16, 10, 128>}, {transform_indices = @transform_2, window_bounds = array<i64: 16, 10, 128>}, {pipeline_mode = #tpu.pipeline_mode<synchronous>, transform_indices = @transform_3, window_bounds = array<i64: 9, 128, 128>}, {transform_indices = @transform_4, window_bounds = array<i64: 128, 128>}, {transform_indices = @transform_5, window_bounds = array<i64: 8, 128>}]} {
    %cst = arith.constant 0.000000e+00 : f32
    %0 = vector.broadcast %cst : f32 to vector<128x128xf32>
    %c0 = arith.constant 0 : index
    %c0_0 = arith.constant 0 : index
    %c0_1 = arith.constant 0 : index
    %1 = vector.load %arg1[%c0, %c0_0, %c0_1] : memref<16x10x128xbf16, #tpu.memory_space<vmem>>, vector<16x10x128xbf16>
    %2 = vector.extract_strided_slice %1 {offsets = [0, 0, 0], sizes = [16, 8, 128], strides = [1, 1, 1]} : vector<16x10x128xbf16> to vector<16x8x128xbf16>
    %3 = vector.shape_cast %2 : vector<16x8x128xbf16> to vector<128x128xbf16>
    %c0_2 = arith.constant 0 : index
    %c0_3 = arith.constant 0 : index
    %c0_4 = arith.constant 0 : index
    %4 = vector.load %arg4[%c0_2, %c0_3, %c0_4] : memref<9x128x128xbf16, #tpu.memory_space<vmem>>, vector<1x128x128xbf16>
    %5 = vector.shape_cast %4 : vector<1x128x128xbf16> to vector<128x128xbf16>
    %cst_5 = arith.constant dense<0.000000e+00> : vector<128x128xf32>
    %6 = tpu.matmul %3, %5, %cst_5 {dimension_numbers = #tpu.dot_dimension_numbers<[1], [0], [0], [1], [0, 0, 1, 1], [], []>} : vector<128x128xbf16>, vector<128x128xbf16>, vector<128x128xf32> -> vector<128x128xf32>
    %7 = arith.addf %0, %6 : vector<128x128xf32>
    %8 = vector.extract_strided_slice %1 {offsets = [0, 1, 0], sizes = [16, 8, 128], strides = [1, 1, 1]} : vector<16x10x128xbf16> to vector<16x8x128xbf16>
    %9 = vector.shape_cast %8 : vector<16x8x128xbf16> to vector<128x128xbf16>
    %c1 = arith.constant 1 : index
    %c0_6 = arith.constant 0 : index
    %c0_7 = arith.constant 0 : index
    %10 = vector.load %arg4[%c1, %c0_6, %c0_7] : memref<9x128x128xbf16, #tpu.memory_space<vmem>>, vector<1x128x128xbf16>
    %11 = vector.shape_cast %10 : vector<1x128x128xbf16> to vector<128x128xbf16>
    %cst_8 = arith.constant dense<0.000000e+00> : vector<128x128xf32>
    %12 = tpu.matmul %9, %11, %cst_8 {dimension_numbers = #tpu.dot_dimension_numbers<[1], [0], [0], [1], [0, 0, 1, 1], [], []>} : vector<128x128xbf16>, vector<128x128xbf16>, vector<128x128xf32> -> vector<128x128xf32>
    %13 = arith.addf %7, %12 : vector<128x128xf32>
    %14 = vector.extract_strided_slice %1 {offsets = [0, 2, 0], sizes = [16, 8, 128], strides = [1, 1, 1]} : vector<16x10x128xbf16> to vector<16x8x128xbf16>
    %15 = vector.shape_cast %14 : vector<16x8x128xbf16> to vector<128x128xbf16>
    %c2 = arith.constant 2 : index
    %c0_9 = arith.constant 0 : index
    %c0_10 = arith.constant 0 : index
    %16 = vector.load %arg4[%c2, %c0_9, %c0_10] : memref<9x128x128xbf16, #tpu.memory_space<vmem>>, vector<1x128x128xbf16>
    %17 = vector.shape_cast %16 : vector<1x128x128xbf16> to vector<128x128xbf16>
    %cst_11 = arith.constant dense<0.000000e+00> : vector<128x128xf32>
    %18 = tpu.matmul %15, %17, %cst_11 {dimension_numbers = #tpu.dot_dimension_numbers<[1], [0], [0], [1], [0, 0, 1, 1], [], []>} : vector<128x128xbf16>, vector<128x128xbf16>, vector<128x128xf32> -> vector<128x128xf32>
    %19 = arith.addf %13, %18 : vector<128x128xf32>
    %c0_12 = arith.constant 0 : index
    %c0_13 = arith.constant 0 : index
    %c0_14 = arith.constant 0 : index
    %20 = vector.load %arg2[%c0_12, %c0_13, %c0_14] : memref<16x10x128xbf16, #tpu.memory_space<vmem>>, vector<16x10x128xbf16>
    %21 = vector.extract_strided_slice %20 {offsets = [0, 0, 0], sizes = [16, 8, 128], strides = [1, 1, 1]} : vector<16x10x128xbf16> to vector<16x8x128xbf16>
    %22 = vector.shape_cast %21 : vector<16x8x128xbf16> to vector<128x128xbf16>
    %c3 = arith.constant 3 : index
    %c0_15 = arith.constant 0 : index
    %c0_16 = arith.constant 0 : index
    %23 = vector.load %arg4[%c3, %c0_15, %c0_16] : memref<9x128x128xbf16, #tpu.memory_space<vmem>>, vector<1x128x128xbf16>
    %24 = vector.shape_cast %23 : vector<1x128x128xbf16> to vector<128x128xbf16>
    %cst_17 = arith.constant dense<0.000000e+00> : vector<128x128xf32>
    %25 = tpu.matmul %22, %24, %cst_17 {dimension_numbers = #tpu.dot_dimension_numbers<[1], [0], [0], [1], [0, 0, 1, 1], [], []>} : vector<128x128xbf16>, vector<128x128xbf16>, vector<128x128xf32> -> vector<128x128xf32>
    %26 = arith.addf %19, %25 : vector<128x128xf32>
    %27 = vector.extract_strided_slice %20 {offsets = [0, 1, 0], sizes = [16, 8, 128], strides = [1, 1, 1]} : vector<16x10x128xbf16> to vector<16x8x128xbf16>
    %28 = vector.shape_cast %27 : vector<16x8x128xbf16> to vector<128x128xbf16>
    %c4 = arith.constant 4 : index
    %c0_18 = arith.constant 0 : index
    %c0_19 = arith.constant 0 : index
    %29 = vector.load %arg4[%c4, %c0_18, %c0_19] : memref<9x128x128xbf16, #tpu.memory_space<vmem>>, vector<1x128x128xbf16>
    %30 = vector.shape_cast %29 : vector<1x128x128xbf16> to vector<128x128xbf16>
    %cst_20 = arith.constant dense<0.000000e+00> : vector<128x128xf32>
    %31 = tpu.matmul %28, %30, %cst_20 {dimension_numbers = #tpu.dot_dimension_numbers<[1], [0], [0], [1], [0, 0, 1, 1], [], []>} : vector<128x128xbf16>, vector<128x128xbf16>, vector<128x128xf32> -> vector<128x128xf32>
    %32 = arith.addf %26, %31 : vector<128x128xf32>
    %33 = vector.extract_strided_slice %20 {offsets = [0, 2, 0], sizes = [16, 8, 128], strides = [1, 1, 1]} : vector<16x10x128xbf16> to vector<16x8x128xbf16>
    %34 = vector.shape_cast %33 : vector<16x8x128xbf16> to vector<128x128xbf16>
    %c5 = arith.constant 5 : index
    %c0_21 = arith.constant 0 : index
    %c0_22 = arith.constant 0 : index
    %35 = vector.load %arg4[%c5, %c0_21, %c0_22] : memref<9x128x128xbf16, #tpu.memory_space<vmem>>, vector<1x128x128xbf16>
    %36 = vector.shape_cast %35 : vector<1x128x128xbf16> to vector<128x128xbf16>
    %cst_23 = arith.constant dense<0.000000e+00> : vector<128x128xf32>
    %37 = tpu.matmul %34, %36, %cst_23 {dimension_numbers = #tpu.dot_dimension_numbers<[1], [0], [0], [1], [0, 0, 1, 1], [], []>} : vector<128x128xbf16>, vector<128x128xbf16>, vector<128x128xf32> -> vector<128x128xf32>
    %38 = arith.addf %32, %37 : vector<128x128xf32>
    %c0_24 = arith.constant 0 : index
    %c0_25 = arith.constant 0 : index
    %c0_26 = arith.constant 0 : index
    %39 = vector.load %arg3[%c0_24, %c0_25, %c0_26] : memref<16x10x128xbf16, #tpu.memory_space<vmem>>, vector<16x10x128xbf16>
    %40 = vector.extract_strided_slice %39 {offsets = [0, 0, 0], sizes = [16, 8, 128], strides = [1, 1, 1]} : vector<16x10x128xbf16> to vector<16x8x128xbf16>
    %41 = vector.shape_cast %40 : vector<16x8x128xbf16> to vector<128x128xbf16>
    %c6 = arith.constant 6 : index
    %c0_27 = arith.constant 0 : index
    %c0_28 = arith.constant 0 : index
    %42 = vector.load %arg4[%c6, %c0_27, %c0_28] : memref<9x128x128xbf16, #tpu.memory_space<vmem>>, vector<1x128x128xbf16>
    %43 = vector.shape_cast %42 : vector<1x128x128xbf16> to vector<128x128xbf16>
    %cst_29 = arith.constant dense<0.000000e+00> : vector<128x128xf32>
    %44 = tpu.matmul %41, %43, %cst_29 {dimension_numbers = #tpu.dot_dimension_numbers<[1], [0], [0], [1], [0, 0, 1, 1], [], []>} : vector<128x128xbf16>, vector<128x128xbf16>, vector<128x128xf32> -> vector<128x128xf32>
    %45 = arith.addf %38, %44 : vector<128x128xf32>
    %46 = vector.extract_strided_slice %39 {offsets = [0, 1, 0], sizes = [16, 8, 128], strides = [1, 1, 1]} : vector<16x10x128xbf16> to vector<16x8x128xbf16>
    %47 = vector.shape_cast %46 : vector<16x8x128xbf16> to vector<128x128xbf16>
    %c7 = arith.constant 7 : index
    %c0_30 = arith.constant 0 : index
    %c0_31 = arith.constant 0 : index
    %48 = vector.load %arg4[%c7, %c0_30, %c0_31] : memref<9x128x128xbf16, #tpu.memory_space<vmem>>, vector<1x128x128xbf16>
    %49 = vector.shape_cast %48 : vector<1x128x128xbf16> to vector<128x128xbf16>
    %cst_32 = arith.constant dense<0.000000e+00> : vector<128x128xf32>
    %50 = tpu.matmul %47, %49, %cst_32 {dimension_numbers = #tpu.dot_dimension_numbers<[1], [0], [0], [1], [0, 0, 1, 1], [], []>} : vector<128x128xbf16>, vector<128x128xbf16>, vector<128x128xf32> -> vector<128x128xf32>
    %51 = arith.addf %45, %50 : vector<128x128xf32>
    %52 = vector.extract_strided_slice %39 {offsets = [0, 2, 0], sizes = [16, 8, 128], strides = [1, 1, 1]} : vector<16x10x128xbf16> to vector<16x8x128xbf16>
    %53 = vector.shape_cast %52 : vector<16x8x128xbf16> to vector<128x128xbf16>
    %c8 = arith.constant 8 : index
    %c0_33 = arith.constant 0 : index
    %c0_34 = arith.constant 0 : index
    %54 = vector.load %arg4[%c8, %c0_33, %c0_34] : memref<9x128x128xbf16, #tpu.memory_space<vmem>>, vector<1x128x128xbf16>
    %55 = vector.shape_cast %54 : vector<1x128x128xbf16> to vector<128x128xbf16>
    %cst_35 = arith.constant dense<0.000000e+00> : vector<128x128xf32>
    %56 = tpu.matmul %53, %55, %cst_35 {dimension_numbers = #tpu.dot_dimension_numbers<[1], [0], [0], [1], [0, 0, 1, 1], [], []>} : vector<128x128xbf16>, vector<128x128xbf16>, vector<128x128xf32> -> vector<128x128xf32>
    %57 = arith.addf %51, %56 : vector<128x128xf32>
    %c0_36 = arith.constant 0 : index
    %c0_37 = arith.constant 0 : index
    %58 = vector.load %arg5[%c0_36, %c0_37] : memref<128x128xf32, #tpu.memory_space<vmem>>, vector<128x128xf32>
    tpu.vector_store %arg5[%c0_36, %c0_37], %57 {strides = array<i32>} : memref<128x128xf32, #tpu.memory_space<vmem>>, vector<128x128xf32>,
    %cst_38 = arith.constant dense<0.000000e+00> : vector<128xf32>
    %59 = vector.multi_reduction <add>, %57, %cst_38 [0] : vector<128x128xf32> to vector<128xf32>
    %60 = vector.shape_cast %59 : vector<128xf32> to vector<1x128xf32>
    %61 = arith.mulf %57, %57 : vector<128x128xf32>
    %cst_39 = arith.constant dense<0.000000e+00> : vector<128xf32>
    %62 = vector.multi_reduction <add>, %61, %cst_39 [0] : vector<128x128xf32> to vector<128xf32>
    %63 = vector.shape_cast %62 : vector<128xf32> to vector<1x128xf32>
    %cst_40 = arith.constant 0.000000e+00 : f32
    %64 = vector.broadcast %cst_40 : f32 to vector<6x128xf32>
    %65 = tpu.concatenate %60, %63, %64 in 0 : vector<1x128xf32>, vector<1x128xf32>, vector<6x128xf32> -> vector<8x128xf32>
    %c0_41 = arith.constant 0 : index
    %c0_42 = arith.constant 0 : index
    %66 = vector.load %arg6[%c0_41, %c0_42] : memref<8x128xf32, #tpu.memory_space<vmem>>, vector<8x128xf32>
    tpu.vector_store %arg6[%c0_41, %c0_42], %65 {strides = array<i32>} : memref<8x128xf32, #tpu.memory_space<vmem>>, vector<8x128xf32>,
    return
  }
  func.func @transform_0(%arg0: i32) -> (i32, i32, i32) {
    %c0_i32 = arith.constant 0 : i32
    %c0_i32_0 = arith.constant 0 : i32
    %c0_i32_1 = arith.constant 0 : i32
    return %arg0, %c0_i32, %c0_i32_0 : i32, i32, i32
  }
  func.func @transform_1(%arg0: i32) -> (i32, i32, i32) {
    %c0_i32 = arith.constant 0 : i32
    %c0_i32_0 = arith.constant 0 : i32
    %c0_i32_1 = arith.constant 0 : i32
    return %arg0, %c0_i32, %c0_i32_0 : i32, i32, i32
  }
  func.func @transform_2(%arg0: i32) -> (i32, i32, i32) {
    %c0_i32 = arith.constant 0 : i32
    %c0_i32_0 = arith.constant 0 : i32
    %c0_i32_1 = arith.constant 0 : i32
    return %arg0, %c0_i32, %c0_i32_0 : i32, i32, i32
  }
  func.func @transform_3(%arg0: i32) -> (i32, i32, i32) {
    %c0_i32 = arith.constant 0 : i32
    %c0_i32_0 = arith.constant 0 : i32
    %c0_i32_1 = arith.constant 0 : i32
    %c0_i32_2 = arith.constant 0 : i32
    return %c0_i32, %c0_i32_0, %c0_i32_1 : i32, i32, i32
  }
  func.func @transform_4(%arg0: i32) -> (i32, i32) {
    %c0_i32 = arith.constant 0 : i32
    %c0_i32_0 = arith.constant 0 : i32
    return %arg0, %c0_i32 : i32, i32
  }
  func.func @transform_5(%arg0: i32) -> (i32, i32) {
    %c0_i32 = arith.constant 0 : i32
    %c0_i32_0 = arith.constant 0 : i32
    return %arg0, %c0_i32 : i32, i32
  }
}

module attributes {stable_mosaic.version = 11 : i64} {
  func.func @_bn_apply_kernel(%arg0: i32, %arg1: memref<128x128xf32, #tpu.memory_space<vmem>>, %arg2: memref<8x128xf32, #tpu.memory_space<vmem>>, %arg3: memref<128x128xf32, #tpu.memory_space<vmem>>, %arg4: memref<128x128xf32, #tpu.memory_space<vmem>>) attributes {dimension_semantics = [#tpu.dimension_semantics<parallel>], iteration_bounds = array<i64: 1>, scalar_prefetch = 0 : i64, scratch_operands = 0 : i64, tpu.core_type = #tpu.core_type<tc>, window_params = [{transform_indices = @transform_0, window_bounds = array<i64: 128, 128>}, {pipeline_mode = #tpu.pipeline_mode<synchronous>, transform_indices = @transform_1, window_bounds = array<i64: 8, 128>}, {transform_indices = @transform_2, window_bounds = array<i64: 128, 128>}, {transform_indices = @transform_3, window_bounds = array<i64: 128, 128>}]} {
    %c0 = arith.constant 0 : index
    %c0_0 = arith.constant 0 : index
    %0 = vector.load %arg1[%c0, %c0_0] : memref<128x128xf32, #tpu.memory_space<vmem>>, vector<128x128xf32>
    %c0_1 = arith.constant 0 : index
    %c0_2 = arith.constant 0 : index
    %1 = vector.load %arg2[%c0_1, %c0_2] : memref<8x128xf32, #tpu.memory_space<vmem>>, vector<1x128xf32>
    %2 = vector.broadcast %1 : vector<1x128xf32> to vector<128x128xf32>
    %3 = arith.mulf %0, %2 : vector<128x128xf32>
    %c1 = arith.constant 1 : index
    %c0_3 = arith.constant 0 : index
    %4 = vector.load %arg2[%c1, %c0_3] : memref<8x128xf32, #tpu.memory_space<vmem>>, vector<1x128xf32>
    %5 = vector.broadcast %4 : vector<1x128xf32> to vector<128x128xf32>
    %6 = arith.addf %3, %5 : vector<128x128xf32>
    %cst = arith.constant 0.000000e+00 : f32
    %7 = vector.broadcast %cst : f32 to vector<128x128xf32>
    %8 = arith.maximumf %6, %7 : vector<128x128xf32>
    %c0_4 = arith.constant 0 : index
    %c0_5 = arith.constant 0 : index
    %9 = vector.load %arg3[%c0_4, %c0_5] : memref<128x128xf32, #tpu.memory_space<vmem>>, vector<128x128xf32>
    %10 = arith.addf %8, %9 : vector<128x128xf32>
    %c0_6 = arith.constant 0 : index
    %c0_7 = arith.constant 0 : index
    %11 = vector.load %arg4[%c0_6, %c0_7] : memref<128x128xf32, #tpu.memory_space<vmem>>, vector<128x128xf32>
    tpu.vector_store %arg4[%c0_6, %c0_7], %10 {strides = array<i32>} : memref<128x128xf32, #tpu.memory_space<vmem>>, vector<128x128xf32>,
    return
  }
  func.func @transform_0(%arg0: i32) -> (i32, i32) {
    %c0_i32 = arith.constant 0 : i32
    %c0_i32_0 = arith.constant 0 : i32
    return %arg0, %c0_i32 : i32, i32
  }
  func.func @transform_1(%arg0: i32) -> (i32, i32) {
    %c0_i32 = arith.constant 0 : i32
    %c0_i32_0 = arith.constant 0 : i32
    %c0_i32_1 = arith.constant 0 : i32
    return %c0_i32, %c0_i32_0 : i32, i32
  }
  func.func @transform_2(%arg0: i32) -> (i32, i32) {
    %c0_i32 = arith.constant 0 : i32
    %c0_i32_0 = arith.constant 0 : i32
    return %arg0, %c0_i32 : i32, i32
  }
  func.func @transform_3(%arg0: i32) -> (i32, i32) {
    %c0_i32 = arith.constant 0 : i32
    %c0_i32_0 = arith.constant 0 : i32
    return %arg0, %c0_i32 : i32, i32
  }
}

module attributes {stable_mosaic.version = 11 : i64} {
  func.func @_bn_apply_kernel(%arg0: i32, %arg1: memref<128x128xf32, #tpu.memory_space<vmem>>, %arg2: memref<8x128xf32, #tpu.memory_space<vmem>>, %arg3: memref<128x128xf32, #tpu.memory_space<vmem>>) attributes {dimension_semantics = [#tpu.dimension_semantics<parallel>], iteration_bounds = array<i64: 1>, scalar_prefetch = 0 : i64, scratch_operands = 0 : i64, tpu.core_type = #tpu.core_type<tc>, window_params = [{transform_indices = @transform_0, window_bounds = array<i64: 128, 128>}, {pipeline_mode = #tpu.pipeline_mode<synchronous>, transform_indices = @transform_1, window_bounds = array<i64: 8, 128>}, {transform_indices = @transform_2, window_bounds = array<i64: 128, 128>}]} {
    %c0 = arith.constant 0 : index
    %c0_0 = arith.constant 0 : index
    %0 = vector.load %arg1[%c0, %c0_0] : memref<128x128xf32, #tpu.memory_space<vmem>>, vector<128x128xf32>
    %c0_1 = arith.constant 0 : index
    %c0_2 = arith.constant 0 : index
    %1 = vector.load %arg2[%c0_1, %c0_2] : memref<8x128xf32, #tpu.memory_space<vmem>>, vector<1x128xf32>
    %2 = vector.broadcast %1 : vector<1x128xf32> to vector<128x128xf32>
    %3 = arith.mulf %0, %2 : vector<128x128xf32>
    %c1 = arith.constant 1 : index
    %c0_3 = arith.constant 0 : index
    %4 = vector.load %arg2[%c1, %c0_3] : memref<8x128xf32, #tpu.memory_space<vmem>>, vector<1x128xf32>
    %5 = vector.broadcast %4 : vector<1x128xf32> to vector<128x128xf32>
    %6 = arith.addf %3, %5 : vector<128x128xf32>
    %cst = arith.constant 0.000000e+00 : f32
    %7 = vector.broadcast %cst : f32 to vector<128x128xf32>
    %8 = arith.maximumf %6, %7 : vector<128x128xf32>
    %c0_4 = arith.constant 0 : index
    %c0_5 = arith.constant 0 : index
    %9 = vector.load %arg3[%c0_4, %c0_5] : memref<128x128xf32, #tpu.memory_space<vmem>>, vector<128x128xf32>
    tpu.vector_store %arg3[%c0_4, %c0_5], %8 {strides = array<i32>} : memref<128x128xf32, #tpu.memory_space<vmem>>, vector<128x128xf32>,
    return
  }
  func.func @transform_0(%arg0: i32) -> (i32, i32) {
    %c0_i32 = arith.constant 0 : i32
    %c0_i32_0 = arith.constant 0 : i32
    return %arg0, %c0_i32 : i32, i32
  }
  func.func @transform_1(%arg0: i32) -> (i32, i32) {
    %c0_i32 = arith.constant 0 : i32
    %c0_i32_0 = arith.constant 0 : i32
    %c0_i32_1 = arith.constant 0 : i32
    return %c0_i32, %c0_i32_0 : i32, i32
  }
  func.func @transform_2(%arg0: i32) -> (i32, i32) {
    %c0_i32 = arith.constant 0 : i32
    %c0_i32_0 = arith.constant 0 : i32
    return %arg0, %c0_i32 : i32, i32
  }
}

</mosaic_0001>

<bundles_post_ra>
// kernel: backbone_block_forward.15
= control target key start
LH: loop header
LB: loop body
LE: loop exit
PB: predicated region body
PF: predicated region fallthrough
CT: control target
= control target key end

     0   :  { %s208_s0 = inlined_call_operand.vmem [shape: f32[128,128], index: 0, kind: input, shape index: {}]   ;;  %s209_s1 = inlined_call_operand.vmem [shape: f32[8,128], index: 1, kind: input, shape index: {}]   ;;  %s210_s2 = inlined_call_operand.vmem [shape: f32[128,128], index: 2, kind: output, shape index: {}]  }
   0x1   :  { %v11_v0 = vld [vmem:[%s208_s0] sm:$0xff]  ;;  %v12_v4 = vld [vmem:[%s208_s0 + $0x8] sm:$0xff]  ;;  %v13_v5 = vld [vmem:[%s208_s0 + $0x10] sm:$0xff] }
   0x2   :  { %v89_v1 = vld [vmem:[%s209_s1] ss:$0 sm:$0xff]  ;;  %v90_v2 = vld [vmem:[%s209_s1 + $0x1] ss:$0 sm:$0xff]  ;;  %v14_v6 = vld [vmem:[%s208_s0 + $0x18] sm:$0xff] }
   0x3   :  { %v32_v3 = vmul.f32 %v89_v1, %v11_v0  ;;  %v33_v7 = vmul.f32 %v89_v1, %v12_v4  ;;  %v34_v8 = vmul.f32 %v89_v1, %v13_v5  ;;  %v35_v9 = vmul.f32 %v89_v1, %v14_v6  ;;  %v15_v10 = vld [vmem:[%s208_s0 + $0x20] sm:$0xff]  ;;  %v16_v11 = vld [vmem:[%s208_s0 + $0x28] sm:$0xff]  ;;  %v17_v12 = vld [vmem:[%s208_s0 + $0x30] sm:$0xff] }
   0x4   :  { %v36_v14 = vmul.f32 %v89_v1, %v15_v10  ;;  %v37_v15 = vmul.f32 %v89_v1, %v16_v11  ;;  %v38_v16 = vmul.f32 %v89_v1, %v17_v12  ;;  %v18_v17 = vld [vmem:[%s208_s0 + $0x38] sm:$0xff]  ;;  %v19_v18 = vld [vmem:[%s208_s0 + $0x40] sm:$0xff]  ;;  %v20_v19 = vld [vmem:[%s208_s0 + $0x48] sm:$0xff] }
   0x5   :  { %v53_v13 = vadd.f32 %v90_v2, %v32_v3  ;;  %v54_v20 = vadd.f32 %v90_v2, %v33_v7  ;;  %v55_v21 = vadd.f32 %v90_v2, %v34_v8  ;;  %v56_v22 = vadd.f32 %v90_v2, %v35_v9  ;;  %v21_v24 = vld [vmem:[%s208_s0 + $0x50] sm:$0xff]  ;;  %v22_v25 = vld [vmem:[%s208_s0 + $0x58] sm:$0xff]  ;;  %v23_v26 = vld [vmem:[%s208_s0 + $0x60] sm:$0xff] }
   0x6   :  { %v39_v23 = vmul.f32 %v89_v1, %v18_v17  ;;  %v57_v27 = vadd.f32 %v90_v2, %v36_v14  ;;  %v58_v28 = vadd.f32 %v90_v2, %v37_v15  ;;  %v59_v29 = vadd.f32 %v90_v2, %v38_v16  ;;  %v24_v31 = vld [vmem:[%s208_s0 + $0x68] sm:$0xff]  ;;  %v25_v32 = vld [vmem:[%s208_s0 + $0x70] sm:$0xff]  ;;  %v26_v33 = vld [vmem:[%s208_s0 + $0x78] sm:$0xff] }
   0x7   :  { %69 = vst [vmem:[%s210_s2] sm:$0xff] %v53_v13  ;;  %v40_v30 = vmul.f32 %v89_v1, %v19_v18  ;;  %70 = vst [vmem:[%s210_s2 + $0x8] sm:$0xff] %v54_v20  ;;  %v41_v35 = vmul.f32 %v89_v1, %v20_v19  ;;  %v42_v36 = vmul.f32 %v89_v1, %v21_v24 }
   0x8   :  { %71 = vst [vmem:[%s210_s2 + $0x10] sm:$0xff] %v55_v21  ;;  %72 = vst [vmem:[%s210_s2 + $0x18] sm:$0xff] %v56_v22  ;;  %v60_v34 = vadd.f32 %v90_v2, %v39_v23  ;;  %v43_v37 = vmul.f32 %v89_v1, %v22_v25  ;;  %v44_v39 = vmul.f32 %v89_v1, %v23_v26 }
   0x9   :  { %73 = vst [vmem:[%s210_s2 + $0x20] sm:$0xff] %v57_v27  ;;  %74 = vst [vmem:[%s210_s2 + $0x28] sm:$0xff] %v58_v28  ;;  %v61_v38 = vadd.f32 %v90_v2, %v40_v30  ;;  %v45_v40 = vmul.f32 %v89_v1, %v24_v31  ;;  %v46_v41 = vmul.f32 %v89_v1, %v25_v32 }
   0xa   :  { %75 = vst [vmem:[%s210_s2 + $0x30] sm:$0xff] %v59_v29  ;;  %76 = vst [vmem:[%s210_s2 + $0x38] sm:$0xff] %v60_v34  ;;  %v62_v42 = vadd.f32 %v90_v2, %v41_v35  ;;  %v63_v43 = vadd.f32 %v90_v2, %v42_v36  ;;  %v64_v44 = vadd.f32 %v90_v2, %v43_v37 }
   0xb   :  { %v47_v45 = vmul.f32 %v89_v1, %v26_v33  ;;  %77 = vst [vmem:[%s210_s2 + $0x40] sm:$0xff] %v61_v38  ;;  %v65_v46 = vadd.f32 %v90_v2, %v44_v39  ;;  %v66_v47 = vadd.f32 %v90_v2, %v45_v40  ;;  %v67_v48 = vadd.f32 %v90_v2, %v46_v41 }
   0xc   :  { %78 = vst [vmem:[%s210_s2 + $0x48] sm:$0xff] %v62_v42  ;;  %79 = vst [vmem:[%s210_s2 + $0x50] sm:$0xff] %v63_v43 }
   0xd   :  { %80 = vst [vmem:[%s210_s2 + $0x58] sm:$0xff] %v64_v44  ;;  %v68_v49 = vadd.f32 %v90_v2, %v47_v45  ;;  %81 = vst [vmem:[%s210_s2 + $0x60] sm:$0xff] %v65_v46 }
   0xe   :  { %82 = vst [vmem:[%s210_s2 + $0x68] sm:$0xff] %v66_v47  ;;  %83 = vst [vmem:[%s210_s2 + $0x70] sm:$0xff] %v67_v48 }
   0xf   :  { %84 = vst [vmem:[%s210_s2 + $0x78] sm:$0xff] %v68_v49 }

// kernel: backbone_block_forward.14
= control target key start
LH: loop header
LB: loop body
LE: loop exit
PB: predicated region body
PF: predicated region fallthrough
CT: control target
= control target key end

     0   :  { %vm98_vm0 = vcmask 293888   ;;  %vm123_vm1 = vcmask 1041408   ;;  %vm314_vm2 = vcmask 1040384   ;;  %s558_s1 = inlined_call_operand.vmem [shape: bf16[36,128], index: 1, kind: input, shape index: {}]   ;;  %s559_s0 = inlined_call_operand.vmem [shape: bf16[128,36], index: 0, kind: input, shape index: {}]   ;;  %s560_s2 = inlined_call_operand.vmem [shape: f32[8,128], index: 2, kind: input, shape index: {}]   ;;  %s561_s3 = inlined_call_operand.vmem [shape: f32[128,128], index: 3, kind: output, shape index: {0}]   ;;  %s562_s4 = inlined_call_operand.vmem [shape: f32[8,128], index: 4, kind: output, shape index: {1}]  }
   0x1   :  { %v387_v0 = vld [vmem:[%s558_s1] sm:$0xff]   ;;  %v388_v1 = vld [vmem:[%s558_s1 + $0x8] sm:$0xff]   ;;  %v389_v2 = vld [vmem:[%s558_s1 + $0x10] ss:$0 sps:$4 sm:$0x33]  }
   0x2   :  { %357 = vmatprep.subr.bf16.mxu0 %v387_v0  ;;  %v390_v3 = vld [vmem:[%s559_s0] sm:$0xff]   ;;  %379 = vmatprep.subr.bf16.mxu1 %v387_v0  ;;  %v125_v5 = vsel %vm123_vm1, %v389_v2, 0  ;;  %v391_v6 = vld [vmem:[%s559_s0 + $0x8] sm:$0xff]   ;;  %v392_v8 = vld [vmem:[%s559_s0 + $0x10] sm:$0xff]  }
   0x3   :  { %358 = vmatpush3.bf16.msra.mxu0 %v387_v0  ;;  %382 = vmatpush3.bf16.msra.mxu1 %v387_v0  ;;  %v394_v4 = vld [vmem:[%s559_s0 + $0x20] sm:$0xff]   ;;  %v395_v7 = vld [vmem:[%s559_s0 + $0x28] sm:$0xff]   ;;  %v396_v9 = vld [vmem:[%s559_s0 + $0x30] sm:$0xff]  }
   0x4   :  { %359 = vmatprep.subr.bf16.mxu0 %v388_v1  ;;  %363 = vmatprep.mubr.msk.bf16.mxu0 %vm98_vm0, %v390_v3  ;;  %v393_v10 = vld [vmem:[%s559_s0 + $0x18] sm:$0xff]   ;;  %v470_v12 = vld [vmem:[%s560_s2] ss:$0 sm:$0xff] }
   0x5   :  { %380 = vmatprep.subr.bf16.mxu1 %v388_v1  ;;  %371 = vmatprep.mubr.msk.bf16.mxu1 %vm98_vm0, %v394_v4  ;;  %v397_v11 = vld [vmem:[%s559_s0 + $0x38] sm:$0xff]  }
   0x7   :  { %360 = vmatpush3.bf16.msra.mxu0 %v388_v1  ;;  %383 = vmatpush3.bf16.msra.mxu1 %v388_v1 }
   0x8   :  { %385 = vmatprep.subr.msk.bf16.mxu0 %vm123_vm1, %v389_v2  ;;  %386 = vmatprep.subr.msk.bf16.mxu1 %vm123_vm1, %v389_v2 }
   0xb   :  { %362 = vmatpush3.bf16.msra.mxu0 %v125_v5  ;;  %384 = vmatpush3.bf16.msra.mxu1 %v125_v5 }
   0xe   :  { %364 = vmatmul.mubr.msk.bf16.vlgmr.msra.gmra.mrb[0].mxu0 %vm98_vm0, %v391_v6  ;;  %372 = vmatmul.mubr.msk.bf16.vlgmr.msra.gmra.mrb[0].mxu1 %vm98_vm0, %v395_v7 }
   0xf   :  { %367 = vmatprep.mubr.msk.bf16.mxu0 %vm98_vm0, %v392_v8  ;;  %375 = vmatprep.mubr.msk.bf16.mxu1 %vm98_vm0, %v396_v9 }
  0x16   :  { %368 = vmatmul.mubr.msk.bf16.gmra.mrb[4].mxu0 %vm98_vm0, %v393_v10  ;;  %376 = vmatmul.mubr.msk.bf16.gmra.mrb[4].mxu1 %vm98_vm0, %v397_v11 }
  0xe1   :  { %v365_v13 = vpop.f32.mrb[0].mxu0  ;;  %v373_v14 = vpop.f32.mrb[0].mxu1 }
  0xe2   :  { %v170_v15 = vadd.f32 %v365_v13, %v470_v12  ;;  %v161_v16 = vpop.f32.mrb[1].mxu0  ;;  %v202_v17 = vadd.f32 %v373_v14, %v470_v12  ;;  %v193_v18 = vpop.f32.mrb[1].mxu1 }
  0xe3   :  { %v162_v19 = vadd.f32 %v470_v12, %v161_v16  ;;  %v366_v20 = vpop.f32.mrb[2].mxu0  ;;  %v194_v21 = vadd.f32 %v470_v12, %v193_v18  ;;  %v374_v22 = vpop.f32.mrb[2].mxu1 }
  0xe4   :  { %v226_v23 = vmax.f32 %v170_v15, 0.0  ;;  %v173_v24 = vadd.f32 %v366_v20, %v470_v12  ;;  %v164_v25 = vpop.f32.mrb[3].mxu0  ;;  %v477_v26 = vmax.f32 %v202_v17, 0.0  ;;  %v205_v27 = vadd.f32 %v374_v22, %v470_v12  ;;  %v196_v28 = vpop.f32.mrb[3].mxu1 }
  0xe5   :  { %v224_v29 = vmax.f32 %v162_v19, 0.0  ;;  %v165_v30 = vadd.f32 %v470_v12, %v164_v25  ;;  %v481_v31 = vmax.f32 %v194_v21, 0.0  ;;  %v197_v32 = vadd.f32 %v470_v12, %v196_v28 }
  0xe6   :  { %242 = vst [vmem:[%s561_s3 + $0x10] sm:$0xff] %v226_v23  ;;  %v227_v33 = vmax.f32 %v173_v24, 0.0  ;;  %250 = vst [vmem:[%s561_s3 + $0x50] sm:$0xff] %v477_v26  ;;  %v491_v34 = vmax.f32 %v205_v27, 0.0  ;;  %v279_v42 = vmul.f32 %v226_v23, %v226_v23  ;;  %v287_v24 = vmul.f32 %v477_v26, %v477_v26 }
  0xe7   :  { %240 = vst [vmem:[%s561_s3] sm:$0xff] %v224_v29  ;;  %v225_v35 = vmax.f32 %v165_v30, 0.0  ;;  %248 = vst [vmem:[%s561_s3 + $0x40] sm:$0xff] %v481_v31  ;;  %v233_v36 = vmax.f32 %v197_v32, 0.0  ;;  %v277_v37 = vmul.f32 %v224_v29, %v224_v29  ;;  %v285_v18 = vmul.f32 %v481_v31, %v481_v31 }
  0xe8   :  { %243 = vst [vmem:[%s561_s3 + $0x18] sm:$0xff] %v227_v33  ;;  %251 = vst [vmem:[%s561_s3 + $0x58] sm:$0xff] %v491_v34  ;;  %v280_v43 = vmul.f32 %v227_v33, %v227_v33  ;;  %v288_v28 = vmul.f32 %v491_v34, %v491_v34 }
  0xe9   :  { %241 = vst [vmem:[%s561_s3 + $0x8] sm:$0xff] %v225_v35  ;;  %v256_v38 = vadd.f32 %v225_v35, %v224_v29  ;;  %v278_v39 = vmul.f32 %v225_v35, %v225_v35  ;;  %v369_v40 = vpop.f32.mrb[4].mxu0  ;;  %249 = vst [vmem:[%s561_s3 + $0x48] sm:$0xff] %v233_v36  ;;  %v377_v41 = vpop.f32.mrb[4].mxu1 }
  0xea   :  { %v186_v44 = vadd.f32 %v369_v40, %v470_v12  ;;  %v177_v45 = vpop.f32.mrb[5].mxu0  ;;  %v218_v46 = vadd.f32 %v377_v41, %v470_v12  ;;  %v209_v47 = vpop.f32.mrb[5].mxu1 }
  0xeb   :  { %v257_v48 = vadd.f32 %v256_v38, %v226_v23  ;;  %v293_v49 = vadd.f32 %v278_v39, %v277_v37  ;;  %v178_v50 = vadd.f32 %v470_v12, %v177_v45  ;;  %v370_v51 = vpop.f32.mrb[6].mxu0  ;;  %v210_v52 = vadd.f32 %v470_v12, %v209_v47  ;;  %v378_v53 = vpop.f32.mrb[6].mxu1 }
  0xec   :  { %v230_v54 = vmax.f32 %v186_v44, 0.0  ;;  %v189_v55 = vadd.f32 %v370_v51, %v470_v12  ;;  %v180_v56 = vpop.f32.mrb[7].mxu0  ;;  %v238_v57 = vmax.f32 %v218_v46, 0.0  ;;  %v221_v58 = vadd.f32 %v378_v53, %v470_v12  ;;  %v212_v59 = vpop.f32.mrb[7].mxu1 }
  0xed   :  { %v294_v60 = vadd.f32 %v293_v49, %v279_v42  ;;  %v228_v61 = vmax.f32 %v178_v50, 0.0  ;;  %v258_v62 = vadd.f32 %v257_v48, %v227_v33  ;;  %v181_v63 = vadd.f32 %v470_v12, %v180_v56 }
  0xee   :  { %246 = vst [vmem:[%s561_s3 + $0x30] sm:$0xff] %v230_v54  ;;  %v231_v0 = vmax.f32 %v189_v55, 0.0  ;;  %254 = vst [vmem:[%s561_s3 + $0x70] sm:$0xff] %v238_v57  ;;  %v236_v1 = vmax.f32 %v210_v52, 0.0  ;;  %v239_v6 = vmax.f32 %v221_v58, 0.0  ;;  %v213_v7 = vadd.f32 %v470_v12, %v212_v59 }
  0xef   :  { %244 = vst [vmem:[%s561_s3 + $0x20] sm:$0xff] %v228_v61  ;;  %v259_v2 = vadd.f32 %v258_v62, %v228_v61  ;;  %v281_v3 = vmul.f32 %v228_v61, %v228_v61  ;;  %v295_v4 = vadd.f32 %v294_v60, %v280_v43  ;;  %v229_v5 = vmax.f32 %v181_v63, 0.0 }
  0xf0   :  { %247 = vst [vmem:[%s561_s3 + $0x38] sm:$0xff] %v231_v0  ;;  %252 = vst [vmem:[%s561_s3 + $0x60] sm:$0xff] %v236_v1  ;;  %v237_v11 = vmax.f32 %v213_v7, 0.0  ;;  %v283_v13 = vmul.f32 %v230_v54, %v230_v54  ;;  %v284_v12 = vmul.f32 %v231_v0, %v231_v0  ;;  %v286_v23 = vmul.f32 %v233_v36, %v233_v36 }
  0xf1   :  { %v296_v8 = vadd.f32 %v295_v4, %v281_v3  ;;  %245 = vst [vmem:[%s561_s3 + $0x28] sm:$0xff] %v229_v5  ;;  %v260_v9 = vadd.f32 %v259_v2, %v229_v5  ;;  %v282_v10 = vmul.f32 %v229_v5, %v229_v5  ;;  %255 = vst [vmem:[%s561_s3 + $0x78] sm:$0xff] %v239_v6 }
  0xf2   :  { %253 = vst [vmem:[%s561_s3 + $0x68] sm:$0xff] %v237_v11  ;;  %v289_v32 = vmul.f32 %v236_v1, %v236_v1  ;;  %v290_v38 = vmul.f32 %v237_v11, %v237_v11  ;;  %v291_v39 = vmul.f32 %v238_v57, %v238_v57  ;;  %v292_v41 = vmul.f32 %v239_v6, %v239_v6 }
  0xf3   :  { %v261_v14 = vadd.f32 %v260_v9, %v230_v54  ;;  %v297_v15 = vadd.f32 %v296_v8, %v282_v10 }
  0xf5   :  { %v298_v16 = vadd.f32 %v297_v15, %v283_v13  ;;  %v262_v17 = vadd.f32 %v261_v14, %v231_v0 }
  0xf7   :  { %v263_v19 = vadd.f32 %v262_v17, %v481_v31  ;;  %v299_v20 = vadd.f32 %v298_v16, %v284_v12 }
  0xf9   :  { %v300_v21 = vadd.f32 %v299_v20, %v285_v18  ;;  %v264_v22 = vadd.f32 %v263_v19, %v233_v36 }
  0xfb   :  { %v265_v25 = vadd.f32 %v264_v22, %v477_v26  ;;  %v301_v27 = vadd.f32 %v300_v21, %v286_v23 }
  0xfd   :  { %v302_v29 = vadd.f32 %v301_v27, %v287_v24  ;;  %v266_v30 = vadd.f32 %v265_v25, %v491_v34 }
  0xff   :  { %v267_v33 = vadd.f32 %v266_v30, %v236_v1  ;;  %v303_v35 = vadd.f32 %v302_v29, %v288_v28 }
 0x101   :  { %v304_v31 = vadd.f32 %v303_v35, %v289_v32  ;;  %v268_v37 = vadd.f32 %v267_v33, %v237_v11 }
 0x103   :  { %v269_v36 = vadd.f32 %v268_v37, %v238_v57  ;;  %v305_v40 = vadd.f32 %v304_v31, %v290_v38 }
 0x105   :  { %v270_v42 = vadd.f32 %v269_v36, %v239_v6  ;;  %v306_v43 = vadd.f32 %v305_v40, %v291_v39 }
 0x107   :  { %v271_v26 = vrot.slane %v270_v42, 4  ;;  %v307_v44 = vadd.f32 %v306_v43, %v292_v41 }
 0x109   :  { %v272_v45 = vadd.f32 %v271_v26, %v270_v42  ;;  %v308_v46 = vrot.slane %v307_v44, 4 }
 0x10b   :  { %v273_v47 = vrot.slane %v272_v45, 2  ;;  %v309_v48 = vadd.f32 %v308_v46, %v307_v44 }
 0x10d   :  { %v274_v49 = vadd.f32 %v273_v47, %v272_v45  ;;  %v310_v34 = vrot.slane %v309_v48, 2 }
 0x10f   :  { %v275_v50 = vrot.slane %v274_v49, 1  ;;  %v311_v51 = vadd.f32 %v310_v34, %v309_v48 }
 0x111   :  { %v312_v52 = vrot.slane %v311_v51, 1  ;;  %v276_v53 = vadd.f32 %v275_v50, %v274_v49 }
 0x113   :  { %v313_v54 = vadd.f32 %v312_v52, %v311_v51 }
 0x115   :  { %v315_v55 = vsel %vm314_vm2, %v276_v53, %v313_v54 }
 0x116   :  { %v316_v56 = vsel %vm123_vm1, %v315_v55, 0.0 }
 0x117   :  { %317 = vst [vmem:[%s562_s4] sm:$0xff] %v316_v56 }

// kernel: backbone_block_forward.21
= control target key start
LH: loop header
LB: loop body
LE: loop exit
PB: predicated region body
PF: predicated region fallthrough
CT: control target
= control target key end

     0   :  { %s348_s0 = inlined_call_operand.vmem [shape: f32[128,128], index: 0, kind: input, shape index: {}]   ;;  %s349_s1 = inlined_call_operand.vmem [shape: f32[8,128], index: 1, kind: input, shape index: {}]   ;;  %s350_s2 = inlined_call_operand.vmem [shape: f32[128,128], index: 2, kind: input, shape index: {}]   ;;  %s351_s3 = inlined_call_operand.vmem [shape: f32[128,128], index: 3, kind: output, shape index: {}]  }
   0x1   :  { %v14_v0 = vld [vmem:[%s348_s0] sm:$0xff]  ;;  %v15_v4 = vld [vmem:[%s348_s0 + $0x8] sm:$0xff]  ;;  %v16_v6 = vld [vmem:[%s348_s0 + $0x10] sm:$0xff] }
   0x2   :  { %v168_v1 = vld [vmem:[%s349_s1] ss:$0 sm:$0xff]  ;;  %v173_v2 = vld [vmem:[%s349_s1 + $0x1] ss:$0 sm:$0xff]  ;;  %v17_v7 = vld [vmem:[%s348_s0 + $0x18] sm:$0xff] }
   0x3   :  { %v35_v3 = vmul.f32 %v168_v1, %v14_v0  ;;  %v36_v5 = vmul.f32 %v168_v1, %v15_v4  ;;  %v37_v9 = vmul.f32 %v168_v1, %v16_v6  ;;  %v38_v10 = vmul.f32 %v168_v1, %v17_v7  ;;  %v18_v11 = vld [vmem:[%s348_s0 + $0x20] sm:$0xff]  ;;  %v19_v15 = vld [vmem:[%s348_s0 + $0x28] sm:$0xff]  ;;  %v20_v16 = vld [vmem:[%s348_s0 + $0x30] sm:$0xff] }
   0x4   :  { %v88_v12 = vld [vmem:[%s350_s2] sm:$0xff]  ;;  %v39_v14 = vmul.f32 %v168_v1, %v18_v11  ;;  %v89_v18 = vld [vmem:[%s350_s2 + $0x8] sm:$0xff]  ;;  %v40_v21 = vmul.f32 %v168_v1, %v19_v15  ;;  %v21_v22 = vld [vmem:[%s348_s0 + $0x38] sm:$0xff]  ;;  %v41_v27 = vmul.f32 %v168_v1, %v20_v16 }
   0x5   :  { %v56_v8 = vadd.f32 %v173_v2, %v35_v3  ;;  %v57_v13 = vadd.f32 %v173_v2, %v36_v5  ;;  %v58_v19 = vadd.f32 %v173_v2, %v37_v9  ;;  %v59_v20 = vadd.f32 %v173_v2, %v38_v10  ;;  %v90_v24 = vld [vmem:[%s350_s2 + $0x10] sm:$0xff]  ;;  %v91_v25 = vld [vmem:[%s350_s2 + $0x18] sm:$0xff]  ;;  %v22_v29 = vld [vmem:[%s348_s0 + $0x40] sm:$0xff] }
   0x6   :  { %v60_v26 = vadd.f32 %v173_v2, %v39_v14  ;;  %v42_v28 = vmul.f32 %v168_v1, %v21_v22  ;;  %v92_v33 = vld [vmem:[%s350_s2 + $0x20] sm:$0xff]  ;;  %v61_v34 = vadd.f32 %v173_v2, %v40_v21  ;;  %v23_v35 = vld [vmem:[%s348_s0 + $0x48] sm:$0xff]  ;;  %v62_v39 = vadd.f32 %v173_v2, %v41_v27  ;;  %v24_v41 = vld [vmem:[%s348_s0 + $0x50] sm:$0xff] }
   0x7   :  { %v72_v17 = vmax.f32 %v56_v8, 0.0  ;;  %v73_v23 = vmax.f32 %v57_v13, 0.0  ;;  %v74_v31 = vmax.f32 %v58_v19, 0.0  ;;  %v75_v32 = vmax.f32 %v59_v20, 0.0  ;;  %v93_v38 = vld [vmem:[%s350_s2 + $0x28] sm:$0xff]  ;;  %v25_v42 = vld [vmem:[%s348_s0 + $0x58] sm:$0xff] }
   0x8   :  { %v76_v37 = vmax.f32 %v60_v26, 0.0  ;;  %v63_v40 = vadd.f32 %v173_v2, %v42_v28  ;;  %v77_v45 = vmax.f32 %v61_v34, 0.0  ;;  %v94_v46 = vld [vmem:[%s350_s2 + $0x30] sm:$0xff]  ;;  %v95_v47 = vld [vmem:[%s350_s2 + $0x38] sm:$0xff]  ;;  %v43_v48 = vmul.f32 %v168_v1, %v22_v29  ;;  %v26_v49 = vld [vmem:[%s348_s0 + $0x60] sm:$0xff] }
   0x9   :  { %v104_v30 = vadd.f32 %v88_v12, %v72_v17  ;;  %v105_v36 = vadd.f32 %v89_v18, %v73_v23  ;;  %v106_v43 = vadd.f32 %v90_v24, %v74_v31  ;;  %v107_v44 = vadd.f32 %v91_v25, %v75_v32  ;;  %v27_v54 = vld [vmem:[%s348_s0 + $0x68] sm:$0xff]  ;;  %v28_v59 = vld [vmem:[%s348_s0 + $0x70] sm:$0xff]  ;;  %v29_v60 = vld [vmem:[%s348_s0 + $0x78] sm:$0xff] }
   0xa   :  { %v108_v50 = vadd.f32 %v92_v33, %v76_v37  ;;  %v78_v51 = vmax.f32 %v62_v39, 0.0  ;;  %v79_v52 = vmax.f32 %v63_v40, 0.0  ;;  %v44_v53 = vmul.f32 %v168_v1, %v23_v35  ;;  %v96_v63 = vld [vmem:[%s350_s2 + $0x40] sm:$0xff]  ;;  %v97_v5 = vld [vmem:[%s350_s2 + $0x48] sm:$0xff]  ;;  %v98_v10 = vld [vmem:[%s350_s2 + $0x50] sm:$0xff] }
   0xb   :  { %120 = vst [vmem:[%s351_s3] sm:$0xff] %v104_v30  ;;  %121 = vst [vmem:[%s351_s3 + $0x8] sm:$0xff] %v105_v36  ;;  %v109_v55 = vadd.f32 %v93_v38, %v77_v45  ;;  %v64_v56 = vadd.f32 %v173_v2, %v43_v48  ;;  %v45_v57 = vmul.f32 %v168_v1, %v24_v41  ;;  %v99_v11 = vld [vmem:[%s350_s2 + $0x58] sm:$0xff]  ;;  %v100_v18 = vld [vmem:[%s350_s2 + $0x60] sm:$0xff] }
   0xc   :  { %122 = vst [vmem:[%s351_s3 + $0x10] sm:$0xff] %v106_v43  ;;  %123 = vst [vmem:[%s351_s3 + $0x18] sm:$0xff] %v107_v44  ;;  %v46_v58 = vmul.f32 %v168_v1, %v25_v42  ;;  %v110_v61 = vadd.f32 %v94_v46, %v78_v51  ;;  %v111_v62 = vadd.f32 %v95_v47, %v79_v52  ;;  %v101_v22 = vld [vmem:[%s350_s2 + $0x68] sm:$0xff]  ;;  %v102_v27 = vld [vmem:[%s350_s2 + $0x70] sm:$0xff] }
   0xd   :  { %124 = vst [vmem:[%s351_s3 + $0x20] sm:$0xff] %v108_v50  ;;  %v65_v0 = vadd.f32 %v173_v2, %v44_v53  ;;  %v47_v3 = vmul.f32 %v168_v1, %v26_v49  ;;  %125 = vst [vmem:[%s351_s3 + $0x28] sm:$0xff] %v109_v55  ;;  %v80_v4 = vmax.f32 %v64_v56, 0.0  ;;  %v66_v6 = vadd.f32 %v173_v2, %v45_v57  ;;  %v103_v28 = vld [vmem:[%s350_s2 + $0x78] sm:$0xff] }
   0xe   :  { %v67_v7 = vadd.f32 %v173_v2, %v46_v58  ;;  %v48_v8 = vmul.f32 %v168_v1, %v27_v54  ;;  %126 = vst [vmem:[%s351_s3 + $0x30] sm:$0xff] %v110_v61  ;;  %127 = vst [vmem:[%s351_s3 + $0x38] sm:$0xff] %v111_v62  ;;  %v49_v13 = vmul.f32 %v168_v1, %v28_v59 }
   0xf   :  { %v81_v9 = vmax.f32 %v65_v0, 0.0  ;;  %v68_v12 = vadd.f32 %v173_v2, %v47_v3  ;;  %v50_v14 = vmul.f32 %v168_v1, %v29_v60  ;;  %v112_v15 = vadd.f32 %v96_v63, %v80_v4 }
  0x10   :  { %v82_v16 = vmax.f32 %v66_v6, 0.0  ;;  %v83_v17 = vmax.f32 %v67_v7, 0.0  ;;  %v69_v19 = vadd.f32 %v173_v2, %v48_v8  ;;  %v70_v23 = vadd.f32 %v173_v2, %v49_v13 }
  0x11   :  { %v113_v20 = vadd.f32 %v97_v5, %v81_v9  ;;  %v84_v21 = vmax.f32 %v68_v12, 0.0  ;;  %v71_v24 = vadd.f32 %v173_v2, %v50_v14  ;;  %128 = vst [vmem:[%s351_s3 + $0x40] sm:$0xff] %v112_v15 }
  0x12   :  { %v114_v1 = vadd.f32 %v98_v10, %v82_v16  ;;  %v115_v25 = vadd.f32 %v99_v11, %v83_v17  ;;  %v85_v26 = vmax.f32 %v69_v19, 0.0  ;;  %v86_v29 = vmax.f32 %v70_v23, 0.0 }
  0x13   :  { %129 = vst [vmem:[%s351_s3 + $0x48] sm:$0xff] %v113_v20  ;;  %v116_v2 = vadd.f32 %v100_v18, %v84_v21  ;;  %v87_v30 = vmax.f32 %v71_v24, 0.0 }
  0x14   :  { %130 = vst [vmem:[%s351_s3 + $0x50] sm:$0xff] %v114_v1  ;;  %131 = vst [vmem:[%s351_s3 + $0x58] sm:$0xff] %v115_v25  ;;  %v117_v31 = vadd.f32 %v101_v22, %v85_v26  ;;  %v118_v32 = vadd.f32 %v102_v27, %v86_v29 }
  0x15   :  { %132 = vst [vmem:[%s351_s3 + $0x60] sm:$0xff] %v116_v2  ;;  %v119_v33 = vadd.f32 %v103_v28, %v87_v30 }
  0x16   :  { %133 = vst [vmem:[%s351_s3 + $0x68] sm:$0xff] %v117_v31  ;;  %134 = vst [vmem:[%s351_s3 + $0x70] sm:$0xff] %v118_v32 }
  0x17   :  { %135 = vst [vmem:[%s351_s3 + $0x78] sm:$0xff] %v119_v33 }

// kernel: backbone_block_forward.17
= control target key start
LH: loop header
LB: loop body
LE: loop exit
PB: predicated region body
PF: predicated region fallthrough
CT: control target
= control target key end

     0   :  { %s242_s0 = inlined_call_operand.vmem [shape: f32[128,128], index: 0, kind: input, shape index: {}]   ;;  %s243_s1 = inlined_call_operand.vmem [shape: f32[8,128], index: 1, kind: input, shape index: {}]   ;;  %s244_s2 = inlined_call_operand.vmem [shape: f32[128,128], index: 2, kind: output, shape index: {}]  }
   0x1   :  { %v11_v0 = vld [vmem:[%s242_s0] sm:$0xff]  ;;  %v12_v4 = vld [vmem:[%s242_s0 + $0x8] sm:$0xff]  ;;  %v13_v5 = vld [vmem:[%s242_s0 + $0x10] sm:$0xff] }
   0x2   :  { %v105_v1 = vld [vmem:[%s243_s1] ss:$0 sm:$0xff]  ;;  %v131_v2 = vld [vmem:[%s243_s1 + $0x1] ss:$0 sm:$0xff]  ;;  %v14_v6 = vld [vmem:[%s242_s0 + $0x18] sm:$0xff] }
   0x3   :  { %v32_v3 = vmul.f32 %v105_v1, %v11_v0  ;;  %v33_v7 = vmul.f32 %v105_v1, %v12_v4  ;;  %v34_v8 = vmul.f32 %v105_v1, %v13_v5  ;;  %v35_v9 = vmul.f32 %v105_v1, %v14_v6  ;;  %v15_v10 = vld [vmem:[%s242_s0 + $0x20] sm:$0xff]  ;;  %v16_v11 = vld [vmem:[%s242_s0 + $0x28] sm:$0xff]  ;;  %v17_v12 = vld [vmem:[%s242_s0 + $0x30] sm:$0xff] }
   0x4   :  { %v36_v14 = vmul.f32 %v105_v1, %v15_v10  ;;  %v37_v15 = vmul.f32 %v105_v1, %v16_v11  ;;  %v38_v16 = vmul.f32 %v105_v1, %v17_v12  ;;  %v18_v17 = vld [vmem:[%s242_s0 + $0x38] sm:$0xff]  ;;  %v19_v22 = vld [vmem:[%s242_s0 + $0x40] sm:$0xff]  ;;  %v20_v27 = vld [vmem:[%s242_s0 + $0x48] sm:$0xff] }
   0x5   :  { %v53_v13 = vadd.f32 %v131_v2, %v32_v3  ;;  %v54_v18 = vadd.f32 %v131_v2, %v33_v7  ;;  %v55_v19 = vadd.f32 %v131_v2, %v34_v8  ;;  %v56_v20 = vadd.f32 %v131_v2, %v35_v9  ;;  %v21_v28 = vld [vmem:[%s242_s0 + $0x50] sm:$0xff]  ;;  %v22_v29 = vld [vmem:[%s242_s0 + $0x58] sm:$0xff]  ;;  %v23_v34 = vld [vmem:[%s242_s0 + $0x60] sm:$0xff] }
   0x6   :  { %v39_v21 = vmul.f32 %v105_v1, %v18_v17  ;;  %v57_v24 = vadd.f32 %v131_v2, %v36_v14  ;;  %v58_v25 = vadd.f32 %v131_v2, %v37_v15  ;;  %v59_v26 = vadd.f32 %v131_v2, %v38_v16  ;;  %v24_v35 = vld [vmem:[%s242_s0 + $0x68] sm:$0xff]  ;;  %v25_v36 = vld [vmem:[%s242_s0 + $0x70] sm:$0xff]  ;;  %v26_v41 = vld [vmem:[%s242_s0 + $0x78] sm:$0xff] }
   0x7   :  { %v69_v23 = vmax.f32 %v53_v13, 0.0  ;;  %v70_v30 = vmax.f32 %v54_v18, 0.0  ;;  %v71_v31 = vmax.f32 %v55_v19, 0.0  ;;  %v72_v32 = vmax.f32 %v56_v20, 0.0 }
   0x8   :  { %v60_v33 = vadd.f32 %v131_v2, %v39_v21  ;;  %v73_v37 = vmax.f32 %v57_v24, 0.0  ;;  %v74_v38 = vmax.f32 %v58_v25, 0.0  ;;  %v75_v39 = vmax.f32 %v59_v26, 0.0 }
   0x9   :  { %85 = vst [vmem:[%s244_s2] sm:$0xff] %v69_v23  ;;  %v40_v40 = vmul.f32 %v105_v1, %v19_v22  ;;  %86 = vst [vmem:[%s244_s2 + $0x8] sm:$0xff] %v70_v30  ;;  %v41_v43 = vmul.f32 %v105_v1, %v20_v27  ;;  %v42_v44 = vmul.f32 %v105_v1, %v21_v28 }
   0xa   :  { %87 = vst [vmem:[%s244_s2 + $0x10] sm:$0xff] %v71_v31  ;;  %88 = vst [vmem:[%s244_s2 + $0x18] sm:$0xff] %v72_v32  ;;  %v76_v42 = vmax.f32 %v60_v33, 0.0  ;;  %v43_v45 = vmul.f32 %v105_v1, %v22_v29  ;;  %v44_v47 = vmul.f32 %v105_v1, %v23_v34  ;;  %v45_v48 = vmul.f32 %v105_v1, %v24_v35 }
   0xb   :  { %89 = vst [vmem:[%s244_s2 + $0x20] sm:$0xff] %v73_v37  ;;  %90 = vst [vmem:[%s244_s2 + $0x28] sm:$0xff] %v74_v38  ;;  %v61_v46 = vadd.f32 %v131_v2, %v40_v40  ;;  %v46_v49 = vmul.f32 %v105_v1, %v25_v36  ;;  %v62_v50 = vadd.f32 %v131_v2, %v41_v43 }
   0xc   :  { %91 = vst [vmem:[%s244_s2 + $0x30] sm:$0xff] %v75_v39  ;;  %92 = vst [vmem:[%s244_s2 + $0x38] sm:$0xff] %v76_v42  ;;  %v63_v51 = vadd.f32 %v131_v2, %v42_v44  ;;  %v64_v52 = vadd.f32 %v131_v2, %v43_v45  ;;  %v47_v53 = vmul.f32 %v105_v1, %v26_v41 }
   0xd   :  { %v77_v54 = vmax.f32 %v61_v46, 0.0  ;;  %v65_v55 = vadd.f32 %v131_v2, %v44_v47  ;;  %v66_v56 = vadd.f32 %v131_v2, %v45_v48  ;;  %v67_v57 = vadd.f32 %v131_v2, %v46_v49 }
   0xe   :  { %v78_v58 = vmax.f32 %v62_v50, 0.0  ;;  %v79_v59 = vmax.f32 %v63_v51, 0.0  ;;  %v80_v60 = vmax.f32 %v64_v52, 0.0  ;;  %v68_v61 = vadd.f32 %v131_v2, %v47_v53 }
   0xf   :  { %93 = vst [vmem:[%s244_s2 + $0x40] sm:$0xff] %v77_v54  ;;  %v81_v62 = vmax.f32 %v65_v55, 0.0  ;;  %v82_v63 = vmax.f32 %v66_v56, 0.0  ;;  %v83_v0 = vmax.f32 %v67_v57, 0.0 }
  0x10   :  { %94 = vst [vmem:[%s244_s2 + $0x48] sm:$0xff] %v78_v58  ;;  %95 = vst [vmem:[%s244_s2 + $0x50] sm:$0xff] %v79_v59  ;;  %v84_v1 = vmax.f32 %v68_v61, 0.0 }
  0x11   :  { %96 = vst [vmem:[%s244_s2 + $0x58] sm:$0xff] %v80_v60  ;;  %97 = vst [vmem:[%s244_s2 + $0x60] sm:$0xff] %v81_v62 }
  0x12   :  { %98 = vst [vmem:[%s244_s2 + $0x68] sm:$0xff] %v82_v63  ;;  %99 = vst [vmem:[%s244_s2 + $0x70] sm:$0xff] %v83_v0 }
  0x13   :  { %100 = vst [vmem:[%s244_s2 + $0x78] sm:$0xff] %v84_v1 }

// kernel: backbone_block_forward.16
= control target key start
LH: loop header
LB: loop body
LE: loop exit
PB: predicated region body
PF: predicated region fallthrough
CT: control target
= control target key end

     0   :  { %vm68_vm0 = vsmask.f32 3328  ;;  %vm69_vm1 = vsmask.f32 7440  ;;  %vm698_vm3 = vcmask 1042432   ;;  %vm699_vm4 = vcmask 1046532   ;;  %s5544_s3 = inlined_call_operand.vmem [shape: bf16[9,128,128], index: 3, kind: input, shape index: {}]   ;;  %s5545_s0 = inlined_call_operand.vmem [shape: bf16[16,10,128], index: 0, kind: input, shape index: {}]   ;;  %s5546_s1 = inlined_call_operand.vmem [shape: bf16[16,10,128], index: 1, kind: input, shape index: {}]   ;;  %s5547_s2 = inlined_call_operand.vmem [shape: bf16[16,10,128], index: 2, kind: input, shape index: {}]   ;;  %s5548_s4 = inlined_call_operand.vmem [shape: f32[128,128], index: 4, kind: output, shape index: {0}]   ;;  %s5549_s5 = inlined_call_operand.vmem [shape: f32[8,128], index: 5, kind: output, shape index: {1}]  }
   0x1   :  { %v3922_v0 = vld [vmem:[%s5544_s3 + $0x40] sm:$0xff]   ;;  %v3924_v2 = vld [vmem:[%s5544_s3 + $0x48] sm:$0xff]   ;;  %v3926_v4 = vld [vmem:[%s5544_s3 + $0x50] sm:$0xff]   ;;  %vm3013_vm6 = vcmask 1040384   ;;  %vm3015_vm7 = vcmask 1041408  }
   0x2   :  { %v3923_v1 = vld [vmem:[%s5544_s3 + $0x100] sm:$0xff]   ;;  %3490 = vmatprep.subr.bf16.mxu1 %v3922_v0  ;;  %v3925_v3 = vld [vmem:[%s5544_s3 + $0x108] sm:$0xff]   ;;  %v3927_v5 = vld [vmem:[%s5544_s3 + $0x110] sm:$0xff]  }
   0x3   :  { %3618 = vmatprep.subr.bf16.mxu0 %v3923_v1  ;;  %3491 = vmatpush3.bf16.msra.mxu1 %v3922_v0  ;;  %v3928_v6 = vld [vmem:[%s5544_s3 + $0x58] sm:$0xff]   ;;  %v3930_v8 = vld [vmem:[%s5544_s3 + $0x60] sm:$0xff]   ;;  %v3932_v10 = vld [vmem:[%s5544_s3 + $0x68] sm:$0xff]  }
   0x4   :  { %3619 = vmatpush3.bf16.msra.mxu0 %v3923_v1  ;;  %3492 = vmatprep.subr.bf16.mxu1 %v3924_v2  ;;  %v3929_v7 = vld [vmem:[%s5544_s3 + $0x118] sm:$0xff]   ;;  %v3931_v9 = vld [vmem:[%s5544_s3 + $0x120] sm:$0xff]   ;;  %v3933_v11 = vld [vmem:[%s5544_s3 + $0x128] sm:$0xff]  }
   0x5   :  { %3620 = vmatprep.subr.bf16.mxu0 %v3925_v3  ;;  %v4111_v12 = vld [vmem:[%s5545_s0] sm:$0xf]  ;;  %v21_v13 = vld [vmem:[%s5545_s0 + $0x4] sm:$0x1]  ;;  %v4119_v14 = vld [vmem:[%s5545_s0 + $0x8] sm:$0xf] }
   0x6   :  { %v23_v15 = vld [vmem:[%s5545_s0 + $0xc] sm:$0x1]  ;;  %v72_v16 = vshrl.u32 %v4111_v12, 16  ;;  %v75_v17 = vshll.u32 %v4111_v12, 16  ;;  %v81_v18 = vshll.u32 %v21_v13, 16  ;;  %v86_v19 = vshrl.u32 %v4119_v14, 16  ;;  %vm4159_vm2 = vmor %vm68_vm0, %vm69_vm1 }
   0x7   :  { %3493 = vmatpush3.bf16.msra.mxu1 %v3924_v2  ;;  %v3934_v20 = vld [vmem:[%s5544_s3 + $0x70] sm:$0xff]   ;;  %v89_v21 = vshll.u32 %v4119_v14, 16  ;;  %v95_v22 = vshll.u32 %v23_v15, 16  ;;  %v4134_v23 = vld [vmem:[%s5546_s1] sm:$0xf]  ;;  %v3936_v44 = vld [vmem:[%s5544_s3 + $0x78] sm:$0xff]  }
   0x8   :  { %3621 = vmatpush3.bf16.msra.mxu0 %v3925_v3  ;;  %3494 = vmatprep.subr.bf16.mxu1 %v3926_v4  ;;  %v74_v24 = vrot.slane %v72_v16, 4  ;;  %v77_v25 = vrot.slane %v75_v17, 5  ;;  %v83_v26 = vrot.slane %v81_v18, 5  ;;  %v88_v27 = vrot.slane %v86_v19, 4  ;;  %v4139_v28 = vld [vmem:[%s5546_s1 + $0x4] sm:$0x1]  ;;  %vm4648_vm5 = vmor %vm698_vm3, %vm699_vm4 }
   0x9   :  { %3622 = vmatprep.subr.bf16.mxu0 %v3927_v5  ;;  %v91_v29 = vrot.slane %v89_v21, 5  ;;  %v97_v30 = vrot.slane %v95_v22, 5  ;;  %v4144_v31 = vld [vmem:[%s5546_s1 + $0x8] sm:$0xf]  ;;  %v4149_v32 = vld [vmem:[%s5546_s1 + $0xc] sm:$0x1] }
   0xa   :  { %v3935_v33 = vld [vmem:[%s5544_s3 + $0x130] sm:$0xff]   ;;  %v78_v34 = vor.u32 %v77_v25, %v74_v24  ;;  %v1234_v35 = vshrl.u32 %v4134_v23, 16  ;;  %v1237_v36 = vshll.u32 %v4134_v23, 16  ;;  %v1243_v37 = vshll.u32 %v4139_v28, 16  ;;  %v3937_v49 = vld [vmem:[%s5544_s3 + $0x138] sm:$0xff]   ;;  %v4197_v63 = vld [vmem:[%s5544_s3] sm:$0xff]  }
   0xb   :  { %3495 = vmatpush3.bf16.msra.mxu1 %v3926_v4  ;;  %v92_v39 = vor.u32 %v91_v29, %v88_v27  ;;  %v1248_v40 = vshrl.u32 %v4144_v31, 16  ;;  %v1251_v41 = vshll.u32 %v4144_v31, 16  ;;  %v1257_v42 = vshll.u32 %v4149_v32, 16  ;;  %v4169_v43 = vld [vmem:[%s5545_s0 + $0x10] sm:$0xf] }
   0xc   :  { %3623 = vmatpush3.bf16.msra.mxu0 %v3927_v5  ;;  %3496 = vmatprep.subr.bf16.mxu1 %v3928_v6  ;;  %v79_v45 = vrot.slane %v78_v34, 4  ;;  %v1236_v46 = vrot.slane %v1234_v35, 4  ;;  %v1239_v47 = vrot.slane %v1237_v36, 5  ;;  %v25_v48 = vld [vmem:[%s5545_s0 + $0x14] sm:$0x1]  ;;  %v1245_v56 = vrot.slane %v1243_v37, 5 }
   0xd   :  { %3624 = vmatprep.subr.bf16.mxu0 %v3929_v7  ;;  %v93_v50 = vrot.slane %v92_v39, 4  ;;  %v1250_v51 = vrot.slane %v1248_v40, 4  ;;  %v1253_v52 = vrot.slane %v1251_v41, 5  ;;  %v4183_v53 = vld [vmem:[%s5545_s0 + $0x18] sm:$0xf]  ;;  %v1259_v57 = vrot.slane %v1257_v42, 5 }
   0xe   :  { %v84_v54 = vsel %vm4159_vm2, %v79_v45, %v83_v26  ;;  %v1240_v55 = vor.u32 %v1239_v47, %v1236_v46  ;;  %v27_v60 = vld [vmem:[%s5545_s0 + $0x1c] sm:$0x1]  ;;  %v100_v61 = vshrl.u32 %v4169_v43, 16  ;;  %v103_v62 = vshll.u32 %v4169_v43, 16  ;;  %v4202_v0 = vld [vmem:[%s5546_s1 + $0x10] sm:$0xf] }
   0xf   :  { %3497 = vmatpush3.bf16.msra.mxu1 %v3928_v6  ;;  %v98_v58 = vsel %vm4159_vm2, %v93_v50, %v97_v30  ;;  %v1254_v59 = vor.u32 %v1253_v52, %v1250_v51  ;;  %v109_v3 = vshll.u32 %v25_v48, 16  ;;  %v114_v4 = vshrl.u32 %v4183_v53, 16  ;;  %v4208_v5 = vld [vmem:[%s5546_s1 + $0x14] sm:$0x1]  ;;  %v4213_v6 = vld [vmem:[%s5544_s3 + $0x140] sm:$0xff]  }
  0x10   :  { %3625 = vmatpush3.bf16.msra.mxu0 %v3929_v7  ;;  %3498 = vmatprep.subr.bf16.mxu1 %v3930_v8  ;;  %v3042_v1 = vcombine.low %v84_v54, %v98_v58  ;;  %v1241_v2 = vrot.slane %v1240_v55, 4  ;;  %v123_v16 = vshll.u32 %v27_v60, 16  ;;  %v4226_v17 = vld [vmem:[%s5546_s1 + $0x1c] sm:$0x1]  ;;  %v1262_v27 = vshrl.u32 %v4202_v0, 16  ;;  %v3940_v60 = vld [vmem:[%s5544_s3 + $0x8] sm:$0xff]  }
  0x11   :  { %3626 = vmatprep.subr.bf16.mxu0 %v3931_v9  ;;  %v1255_v7 = vrot.slane %v1254_v59, 4  ;;  %v116_v15 = vrot.slane %v114_v4, 4  ;;  %v111_v21 = vrot.slane %v109_v3, 5  ;;  %v1271_v34 = vshll.u32 %v4208_v5, 16  ;;  %v4247_v45 = vld [vmem:[%s5545_s0 + $0x20] sm:$0xf] }
  0x12   :  { %3506 = vmatprep.mubr.bf16.mxu1 %v3042_v1  ;;  %v1246_v13 = vsel %vm4159_vm2, %v1241_v2, %v1245_v56  ;;  %v125_v26 = vrot.slane %v123_v16, 5  ;;  %v1264_v35 = vrot.slane %v1262_v27, 4  ;;  %v1285_v39 = vshll.u32 %v4226_v17, 16  ;;  %v29_v50 = vld [vmem:[%s5545_s0 + $0x24] sm:$0x1] }
  0x13   :  { %3499 = vmatpush3.bf16.msra.mxu1 %v3930_v8  ;;  %v102_v8 = vrot.slane %v100_v61, 4  ;;  %v1260_v19 = vsel %vm4159_vm2, %v1255_v7, %v1259_v57  ;;  %v1273_v46 = vrot.slane %v1271_v34, 5  ;;  %v4258_v55 = vld [vmem:[%s5545_s0 + $0x28] sm:$0xf]  ;;  %v31_v56 = vld [vmem:[%s5545_s0 + $0x2c] sm:$0x1] }
  0x14   :  { %3627 = vmatpush3.bf16.msra.mxu0 %v3931_v9  ;;  %3500 = vmatprep.subr.bf16.mxu1 %v3932_v10  ;;  %v105_v9 = vrot.slane %v103_v62, 5  ;;  %v3170_v24 = vcombine.low %v1246_v13, %v1260_v19  ;;  %v128_v57 = vshrl.u32 %v4247_v45, 16  ;;  %v131_v61 = vshll.u32 %v4247_v45, 16  ;;  %v4271_v1 = vld [vmem:[%s5546_s1 + $0x20] sm:$0xf]  ;;  %v3941_v19 = vld [vmem:[%s5544_s3 + $0x148] sm:$0xff]  }
  0x15   :  { %3628 = vmatprep.subr.bf16.mxu0 %v3933_v11  ;;  %v137_v62 = vshll.u32 %v29_v50, 16  ;;  %v142_v4 = vshrl.u32 %v4258_v55, 16  ;;  %v145_v7 = vshll.u32 %v4258_v55, 16  ;;  %v151_v13 = vshll.u32 %v31_v56, 16  ;;  %v4306_v34 = vld [vmem:[%s5545_s0 + $0x30] sm:$0xf] }
  0x16   :  { %3634 = vmatprep.mubr.bf16.mxu0 %v3170_v24  ;;  %v130_v3 = vrot.slane %v128_v57, 4  ;;  %v1290_v24 = vshrl.u32 %v4271_v1, 16  ;;  %v3943_v56 = vld [vmem:[%s5544_s3 + $0x150] sm:$0xff]  }
  0x17   :  { %3501 = vmatpush3.bf16.msra.mxu1 %v3932_v10  ;;  %v117_v10 = vshll.u32 %v4183_v53, 16 }
  0x18   :  { %3629 = vmatpush3.bf16.msra.mxu0 %v3933_v11  ;;  %3502 = vmatprep.subr.bf16.mxu1 %v3934_v20  ;;  %v4219_v11 = vld [vmem:[%s5546_s1 + $0x18] sm:$0xf] }
  0x19   :  { %3630 = vmatprep.subr.bf16.mxu0 %v3935_v33  ;;  %v119_v22 = vrot.slane %v117_v10, 5  ;;  %v1276_v36 = vshrl.u32 %v4219_v11, 16  ;;  %v1279_v37 = vshll.u32 %v4219_v11, 16  ;;  %v139_v10 = vrot.slane %v137_v62, 5  ;;  %v4333_v62 = vld [vmem:[%s5546_s1 + $0x30] sm:$0xf] }
  0x1b   :  { %3503 = vmatpush3.bf16.msra.mxu1 %v3934_v20  ;;  %v106_v20 = vor.u32 %v105_v9, %v102_v8  ;;  %v120_v30 = vor.u32 %v119_v22, %v116_v15  ;;  %v1278_v47 = vrot.slane %v1276_v36, 4  ;;  %v1281_v48 = vrot.slane %v1279_v37, 5  ;;  %v4278_v15 = vld [vmem:[%s5546_s1 + $0x24] sm:$0x1]  ;;  %v4289_v22 = vld [vmem:[%s5546_s1 + $0x28] sm:$0xf] }
  0x1c   :  { %3631 = vmatpush3.bf16.msra.mxu0 %v3935_v33  ;;  %3504 = vmatprep.subr.bf16.mxu1 %v3936_v44  ;;  %v1265_v33 = vshll.u32 %v4202_v0, 16  ;;  %v133_v9 = vrot.slane %v131_v61, 5  ;;  %v1292_v37 = vrot.slane %v1290_v24, 4  ;;  %v35_v61 = vld [vmem:[%s5545_s0 + $0x3c] sm:$0x1] }
  0x1d   :  { %3632 = vmatprep.subr.bf16.mxu0 %v3937_v49  ;;  %v107_v29 = vrot.slane %v106_v20, 4  ;;  %v121_v42 = vrot.slane %v120_v30, 4  ;;  %v1282_v59 = vor.u32 %v1281_v48, %v1278_v47  ;;  %v144_v20 = vrot.slane %v142_v4, 4  ;;  %v4300_v30 = vld [vmem:[%s5546_s1 + $0x2c] sm:$0x1] }
  0x1e   :  { %v134_v27 = vor.u32 %v133_v9, %v130_v3  ;;  %v1307_v47 = vshll.u32 %v4289_v22, 16  ;;  %v1313_v50 = vshll.u32 %v4300_v30, 16  ;;  %v159_v4 = vshll.u32 %v4306_v34, 16 }
  0x1f   :  { %3505 = vmatpush3.bf16.msra.mxu1 %v3936_v44  ;;  %v112_v41 = vsel %vm4159_vm2, %v107_v29, %v111_v21  ;;  %v1267_v44 = vrot.slane %v1265_v33, 5  ;;  %v126_v51 = vsel %vm4159_vm2, %v121_v42, %v125_v26  ;;  %v1283_v8 = vrot.slane %v1282_v59, 4  ;;  %v3942_v26 = vld [vmem:[%s5544_s3 + $0x10] sm:$0xff]  }
  0x20   :  { %3633 = vmatpush3.bf16.msra.mxu0 %v3937_v49  ;;  %3522 = vmatprep.subr.bf16.mxu1 %v4197_v63  ;;  %v1287_v49 = vrot.slane %v1285_v39, 5  ;;  %v3043_v58 = vcombine.low %v112_v41, %v126_v51  ;;  %v147_v21 = vrot.slane %v145_v7, 5  ;;  %v153_v29 = vrot.slane %v151_v13, 5  ;;  %v33_v41 = vld [vmem:[%s5545_s0 + $0x34] sm:$0x1] }
  0x21   :  { %3650 = vmatprep.subr.bf16.mxu0 %v4213_v6  ;;  %v1268_v52 = vor.u32 %v1267_v44, %v1264_v35  ;;  %v1293_v33 = vshll.u32 %v4271_v1, 16  ;;  %v1299_v39 = vshll.u32 %v4278_v15, 16  ;;  %v135_v42 = vrot.slane %v134_v27, 4  ;;  %v4318_v51 = vld [vmem:[%s5545_s0 + $0x38] sm:$0xf] }
  0x22   :  { %3507 = vmatmul.mubr.bf16.vlgmr.msra.gmra.mrb[0].mxu1 %v3043_v58  ;;  %v148_v36 = vor.u32 %v147_v21, %v144_v20  ;;  %v4341_v7 = vld [vmem:[%s5546_s1 + $0x34] sm:$0x1]  ;;  %v4349_v20 = vld [vmem:[%s5546_s1 + $0x38] sm:$0xf]  ;;  %v161_v21 = vrot.slane %v159_v4, 5  ;;  %v170_v24 = vshrl.u32 %v4318_v51, 16 }
  0x23   :  { %v1269_v2 = vrot.slane %v1268_v52, 4  ;;  %3523 = vmatpush3.bf16.msra.mxu1 %v4197_v63  ;;  %v1288_v63 = vsel %vm4159_vm2, %v1283_v8, %v1287_v49  ;;  %v1295_v44 = vrot.slane %v1293_v33, 5  ;;  %v1301_v49 = vrot.slane %v1299_v39, 5  ;;  %v3944_v8 = vld [vmem:[%s5544_s3 + $0x18] sm:$0xff]   ;;  %v3946_v39 = vld [vmem:[%s5544_s3 + $0x20] sm:$0xff]  }
  0x24   :  { %3524 = vmatprep.subr.bf16.mxu1 %v3940_v60  ;;  %v149_v48 = vrot.slane %v148_v36, 4  ;;  %v156_v52 = vshrl.u32 %v4306_v34, 16  ;;  %v140_v57 = vsel %vm4159_vm2, %v135_v42, %v139_v10  ;;  %v179_v27 = vshll.u32 %v35_v61, 16  ;;  %v4383_v61 = vld [vmem:[%s5545_s0 + $0x44] sm:$0x1] }
  0x25   :  { %v1274_v16 = vsel %vm4159_vm2, %v1269_v2, %v1273_v46  ;;  %v1304_v46 = vshrl.u32 %v4289_v22, 16  ;;  %v1296_v58 = vor.u32 %v1295_v44, %v1292_v37  ;;  %v1315_v2 = vrot.slane %v1313_v50, 5  ;;  %v3948_v50 = vld [vmem:[%s5544_s3 + $0x28] sm:$0xff]   ;;  %5589 = vst [vmem:[#allocation2_spill] sm:$0xff] %v4383_v61 }
  0x26   :  { %v3171_v35 = vcombine.low %v1274_v16, %v1288_v63  ;;  %v158_v3 = vrot.slane %v156_v52, 4  ;;  %v165_v16 = vshll.u32 %v33_v41, 16  ;;  %v173_v63 = vshll.u32 %v4318_v51, 16 }
  0x27   :  { %3525 = vmatpush3.bf16.msra.mxu1 %v3940_v60  ;;  %v1306_v59 = vrot.slane %v1304_v46, 4  ;;  %v1309_v60 = vrot.slane %v1307_v47, 5  ;;  %v1297_v10 = vrot.slane %v1296_v58, 4  ;;  %v1318_v37 = vshrl.u32 %v4333_v62, 16 }
  0x28   :  { %3635 = vmatmul.mubr.bf16.vlgmr.msra.gmra.mrb[0].mxu0 %v3171_v35  ;;  %3526 = vmatprep.subr.bf16.mxu1 %v3942_v26  ;;  %v167_v36 = vrot.slane %v165_v16, 5  ;;  %v162_v41 = vor.u32 %v161_v21, %v158_v3  ;;  %v172_v42 = vrot.slane %v170_v24, 4  ;;  %v175_v44 = vrot.slane %v173_v63, 5  ;;  %v3947_v21 = vld [vmem:[%s5544_s3 + $0x160] sm:$0xff]  }
  0x29   :  { %3651 = vmatpush3.bf16.msra.mxu0 %v4213_v6  ;;  %v154_v6 = vsel %vm4159_vm2, %v149_v48, %v153_v29  ;;  %v1310_v13 = vor.u32 %v1309_v60, %v1306_v59  ;;  %v4356_v29 = vld [vmem:[%s5546_s1 + $0x3c] sm:$0x1]  ;;  %v1302_v33 = vsel %vm4159_vm2, %v1297_v10, %v1301_v49  ;;  %v181_v46 = vrot.slane %v179_v27, 5  ;;  %v4378_v60 = vld [vmem:[%s5545_s0 + $0x40] sm:$0xf] }
  0x2a   :  { %3652 = vmatprep.subr.bf16.mxu0 %v3941_v19  ;;  %v3044_v9 = vcombine.low %v140_v57, %v154_v6  ;;  %v1320_v47 = vrot.slane %v1318_v37, 4  ;;  %v1321_v48 = vshll.u32 %v4333_v62, 16  ;;  %v1327_v49 = vshll.u32 %v4341_v7, 16  ;;  %v4401_v27 = vld [vmem:[%s5545_s0 + $0x4c] sm:$0x1] }
  0x2b   :  { %3527 = vmatpush3.bf16.msra.mxu1 %v3942_v26  ;;  %v1311_v35 = vrot.slane %v1310_v13, 4  ;;  %v163_v57 = vrot.slane %v162_v41, 4  ;;  %v176_v58 = vor.u32 %v175_v44, %v172_v42  ;;  %v1332_v59 = vshrl.u32 %v4349_v20, 16  ;;  %5590 = vst [vmem:[#allocation3_spill] sm:$0xff] %v4401_v27  ;;  %v4411_v42 = vld [vmem:[%s5546_s1 + $0x40] sm:$0xf] }
  0x2c   :  { %3510 = vmatprep.mubr.bf16.mxu1 %v3044_v9  ;;  %3528 = vmatprep.subr.bf16.mxu1 %v3944_v8  ;;  %v1323_v6 = vrot.slane %v1321_v48, 5  ;;  %v1335_v3 = vshll.u32 %v4349_v20, 16  ;;  %v1341_v4 = vshll.u32 %v4356_v29, 16  ;;  %v184_v16 = vshrl.u32 %v4378_v60, 16 }
  0x2d   :  { %3653 = vmatpush3.bf16.msra.mxu0 %v3941_v19  ;;  %v3945_v19 = vld [vmem:[%s5544_s3 + $0x158] sm:$0xff]   ;;  %v1316_v26 = vsel %vm4159_vm2, %v1311_v35, %v1315_v2  ;;  %v1329_v2 = vrot.slane %v1327_v49, 5  ;;  %v168_v9 = vsel %vm4159_vm2, %v163_v57, %v167_v36  ;;  %v177_v10 = vrot.slane %v176_v58, 4  ;;  %v3949_v49 = vld [vmem:[%s5544_s3 + $0x168] sm:$0xff]  }
  0x2e   :  { %3654 = vmatprep.subr.bf16.mxu0 %v3943_v56  ;;  %v3172_v52 = vcombine.low %v1302_v33, %v1316_v26  ;;  %v1334_v13 = vrot.slane %v1332_v59, 4  ;;  %v1337_v24 = vrot.slane %v1335_v3, 5  ;;  %v1343_v63 = vrot.slane %v1341_v4, 5  ;;  %v4429_v59 = vld [vmem:[%s5546_s1 + $0x48] sm:$0xf] }
  0x2f   :  { %3529 = vmatpush3.bf16.msra.mxu1 %v3944_v8  ;;  %v4390_v8 = vld [vmem:[%s5545_s0 + $0x48] sm:$0xf]  ;;  %v187_v33 = vshll.u32 %v4378_v60, 16  ;;  %v182_v35 = vsel %vm4159_vm2, %v177_v10, %v181_v46  ;;  %v186_v36 = vrot.slane %v184_v16, 4  ;;  %v193_v37 = vshll.u32 %v4383_v61, 16 }
  0x30   :  { %3530 = vmatprep.subr.bf16.mxu1 %v3946_v39  ;;  %3638 = vmatprep.mubr.bf16.mxu0 %v3172_v52  ;;  %v198_v41 = vshrl.u32 %v4390_v8, 16  ;;  %v3045_v44 = vcombine.low %v168_v9, %v182_v35  ;;  %v4416_v46 = vld [vmem:[%s5546_s1 + $0x44] sm:$0x1]  ;;  %v3950_v52 = vld [vmem:[%s5544_s3 + $0x30] sm:$0xff]   ;;  %v201_v58 = vshll.u32 %v4390_v8, 16  ;;  %v1346_v10 = vshrl.u32 %v4411_v42, 16 }
  0x31   :  { %3655 = vmatpush3.bf16.msra.mxu0 %v3943_v56  ;;  %v1324_v56 = vor.u32 %v1323_v6, %v1320_v47  ;;  %v1338_v47 = vor.u32 %v1337_v24, %v1334_v13  ;;  %v189_v48 = vrot.slane %v187_v33, 5  ;;  %v4436_v9 = vld [vmem:[%s5546_s1 + $0x4c] sm:$0x1]  ;;  %v4442_v13 = vld [vmem:[%s5545_s0 + $0x50] sm:$0xf]  ;;  %v1349_v24 = vshll.u32 %v4411_v42, 16 }
  0x32   :  { %3656 = vmatprep.subr.bf16.mxu0 %v3945_v19  ;;  %v200_v57 = vrot.slane %v198_v41, 4  ;;  %3511 = vmatmul.mubr.bf16.gmra.mrb[4].mxu1 %v3045_v44  ;;  %5591 = vst [vmem:[#allocation4_spill] sm:$0xff] %v4442_v13  ;;  %v203_v16 = vrot.slane %v201_v58, 5  ;;  %v4449_v33 = vld [vmem:[%s5545_s0 + $0x54] sm:$0x1]  ;;  %v1348_v41 = vrot.slane %v1346_v10, 4 }
  0x33   :  { %3531 = vmatpush3.bf16.msra.mxu1 %v3946_v39  ;;  %v1325_v26 = vrot.slane %v1324_v56, 4  ;;  %v195_v39 = vrot.slane %v193_v37, 5  ;;  %v1339_v3 = vrot.slane %v1338_v47, 4  ;;  %v190_v4 = vor.u32 %v189_v48, %v186_v36  ;;  %5592 = vst [vmem:[#allocation5_spill] sm:$0xff] %v4449_v33  ;;  %v3951_v35 = vld [vmem:[%s5544_s3 + $0x170] sm:$0xff]  }
  0x34   :  { %3532 = vmatprep.subr.bf16.mxu1 %v3948_v50  ;;  %v1360_v44 = vshrl.u32 %v4429_v59, 16  ;;  %v204_v48 = vor.u32 %v203_v16, %v200_v57  ;;  %v4472_v57 = vld [vmem:[%s5545_s0 + $0x5c] sm:$0x1]  ;;  %v212_v16 = vshrl.u32 %v4442_v13, 16 }
  0x35   :  { %3657 = vmatpush3.bf16.msra.mxu0 %v3945_v19  ;;  %v207_v19 = vshll.u32 %v4401_v27, 16  ;;  %v1330_v6 = vsel %vm4159_vm2, %v1325_v26, %v1329_v2  ;;  %v1355_v2 = vshll.u32 %v4416_v46, 16  ;;  %v1344_v36 = vsel %vm4159_vm2, %v1339_v3, %v1343_v63  ;;  %v3952_v26 = vld [vmem:[%s5544_s3 + $0x38] sm:$0xff]   ;;  %5594 = vst [vmem:[#allocation7_spill] sm:$0xff] %v4472_v57 }
  0x36   :  { %3658 = vmatprep.subr.bf16.mxu0 %v3947_v21  ;;  %v191_v37 = vrot.slane %v190_v4, 4  ;;  %v3173_v47 = vcombine.low %v1330_v6, %v1344_v36  ;;  %v1362_v3 = vrot.slane %v1360_v44, 4  ;;  %v1369_v4 = vshll.u32 %v4436_v9, 16  ;;  %v3953_v36 = vld [vmem:[%s5544_s3 + $0x178] sm:$0xff]  }
  0x37   :  { %v209_v56 = vrot.slane %v207_v19, 5  ;;  %3533 = vmatpush3.bf16.msra.mxu1 %v3948_v50  ;;  %v1351_v50 = vrot.slane %v1349_v24, 5  ;;  %v1357_v58 = vrot.slane %v1355_v2, 5  ;;  %v4463_v19 = vld [vmem:[%s5545_s0 + $0x58] sm:$0xf]  ;;  %v205_v6 = vrot.slane %v204_v48, 4 }
  0x38   :  { %3534 = vmatprep.subr.bf16.mxu1 %v3950_v52  ;;  %5593 = vst [vmem:[#allocation6_spill] sm:$0xff] %v4463_v19  ;;  %v196_v63 = vsel %vm4159_vm2, %v191_v37, %v195_v39  ;;  %3639 = vmatmul.mubr.bf16.gmra.mrb[4].mxu0 %v3173_v47  ;;  %v215_v24 = vshll.u32 %v4442_v13, 16  ;;  %v4479_v39 = vld [vmem:[%s5546_s1 + $0x50] sm:$0xf]  ;;  %v4484_v2 = vld [vmem:[%s5546_s1 + $0x54] sm:$0x1] }
  0x39   :  { %3659 = vmatpush3.bf16.msra.mxu0 %v3947_v21  ;;  %v1363_v21 = vshll.u32 %v4429_v59, 16  ;;  %v1352_v10 = vor.u32 %v1351_v50, %v1348_v41  ;;  %v1371_v41 = vrot.slane %v1369_v4, 5  ;;  %v221_v44 = vshll.u32 %v4449_v33, 16  ;;  %v4494_v48 = vld [vmem:[%s5546_s1 + $0x58] sm:$0xf] }
  0x3a   :  { %3660 = vmatprep.subr.bf16.mxu0 %v3949_v49  ;;  %v226_v47 = vshrl.u32 %v4463_v19, 16  ;;  %5595 = vst [vmem:[#allocation8_spill] sm:$0xff] %v4494_v48  ;;  %v214_v18 = vrot.slane %v212_v16, 4  ;;  %v217_v54 = vrot.slane %v215_v24, 5  ;;  %v229_v33 = vshll.u32 %v4463_v19, 16 }
  0x3b   :  { %3535 = vmatpush3.bf16.msra.mxu1 %v3950_v52  ;;  %v1365_v37 = vrot.slane %v1363_v21, 5  ;;  %v210_v52 = vsel %vm4159_vm2, %v205_v6, %v209_v56  ;;  %v1353_v50 = vrot.slane %v1352_v10, 4  ;;  %v4501_v21 = vld [vmem:[%s5544_s3 + $0x80] sm:$0xff]   ;;  %v223_v25 = vrot.slane %v221_v44, 5  ;;  %v4510_v6 = vld [vmem:[%s5546_s1 + $0x5c] sm:$0x1] }
  0x3c   :  { %3536 = vmatprep.subr.bf16.mxu1 %v3952_v26  ;;  %v3046_v4 = vcombine.low %v196_v63, %v210_v52  ;;  %v228_v27 = vrot.slane %v226_v47, 4  ;;  %v218_v61 = vor.u32 %v217_v54, %v214_v18  ;;  %v235_v56 = vshll.u32 %v4472_v57, 16  ;;  %5596 = vst [vmem:[#allocation9_spill] sm:$0xff] %v4510_v6  ;;  %v4515_v63 = vld [vmem:[%s5544_s3 + $0x180] sm:$0xff]  }
  0x3d   :  { %3661 = vmatpush3.bf16.msra.mxu0 %v3949_v49  ;;  %v1366_v40 = vor.u32 %v1365_v37, %v1362_v3  ;;  %v1358_v49 = vsel %vm4159_vm2, %v1353_v50, %v1357_v58  ;;  %v1374_v58 = vshrl.u32 %v4479_v39, 16  ;;  %v1377_v18 = vshll.u32 %v4479_v39, 16 }
  0x3e   :  { %3662 = vmatprep.subr.bf16.mxu0 %v3951_v35  ;;  %3514 = vmatprep.mubr.bf16.mxu1 %v3046_v4  ;;  %v1383_v54 = vshll.u32 %v4484_v2, 16  ;;  %v219_v10 = vrot.slane %v218_v61, 4  ;;  %v231_v16 = vrot.slane %v229_v33, 5  ;;  %v237_v24 = vrot.slane %v235_v56, 5  ;;  %v4532_v61 = vld [vmem:[%s5545_s0 + $0x64] sm:$0x1] }
  0x3f   :  { %3537 = vmatpush3.bf16.msra.mxu1 %v3952_v26  ;;  %v1367_v3 = vrot.slane %v1366_v40, 4  ;;  %v1388_v37 = vshrl.u32 %v4494_v48, 16  ;;  %v4524_v26 = vld [vmem:[%s5545_s0 + $0x60] sm:$0xf]  ;;  %v1376_v44 = vrot.slane %v1374_v58, 4  ;;  %v1379_v47 = vrot.slane %v1377_v18, 5 }
  0x40   :  { %5597 = vst [vmem:[#allocation10_spill] sm:$0xff] %v4524_v26  ;;  %3554 = vmatprep.subr.bf16.mxu1 %v4501_v21  ;;  %v1385_v52 = vrot.slane %v1383_v54, 5  ;;  %5598 = vst [vmem:[#allocation11_spill] sm:$0xff] %v4532_v61  ;;  %v232_v50 = vor.u32 %v231_v16, %v228_v27  ;;  %v4539_v56 = vld [vmem:[%s5545_s0 + $0x68] sm:$0xf]  ;;  %v1397_v58 = vshll.u32 %v4510_v6, 16 }
  0x41   :  { %3663 = vmatpush3.bf16.msra.mxu0 %v3951_v35  ;;  %v1372_v40 = vsel %vm4159_vm2, %v1367_v3, %v1371_v41  ;;  %v224_v35 = vsel %vm4159_vm2, %v219_v10, %v223_v25  ;;  %v1390_v4 = vrot.slane %v1388_v37, 4  ;;  %5599 = vst [vmem:[#allocation12_spill] sm:$0xff] %v4539_v56  ;;  %v1380_v41 = vor.u32 %v1379_v47, %v1376_v44  ;;  %v4546_v18 = vld [vmem:[%s5545_s0 + $0x6c] sm:$0x1]  ;;  %v4555_v16 = vld [vmem:[%s5546_s1 + $0x60] sm:$0xf] }
  0x42   :  { %3664 = vmatprep.subr.bf16.mxu0 %v3953_v36  ;;  %v3174_v33 = vcombine.low %v1358_v49, %v1372_v40  ;;  %v1391_v3 = vshll.u32 %v4494_v48, 16  ;;  %5600 = vst [vmem:[#allocation13_spill] sm:$0xff] %v4546_v18  ;;  %v240_v49 = vshrl.u32 %v4524_v26, 16  ;;  %v233_v25 = vrot.slane %v232_v50, 4  ;;  %5601 = vst [vmem:[#allocation14_spill] sm:$0xff] %v4555_v16 }
  0x43   :  { %v243_v27 = vshll.u32 %v4524_v26, 16  ;;  %v249_v54 = vshll.u32 %v4532_v61, 16  ;;  %v254_v10 = vshrl.u32 %v4539_v56, 16  ;;  %v1381_v37 = vrot.slane %v1380_v41, 4  ;;  %v4568_v26 = vld [vmem:[%s5546_s1 + $0x68] sm:$0xf] }
  0x44   :  { %3642 = vmatprep.mubr.bf16.mxu0 %v3174_v33  ;;  %v1393_v40 = vrot.slane %v1391_v3, 5  ;;  %v1399_v44 = vrot.slane %v1397_v58, 5  ;;  %v242_v47 = vrot.slane %v240_v49, 4  ;;  %v238_v33 = vsel %vm4159_vm2, %v233_v25, %v237_v24  ;;  %5603 = vst [vmem:[#allocation16_spill] sm:$0xff] %v4568_v26  ;;  %v4577_v24 = vld [vmem:[%s5546_s1 + $0x6c] sm:$0x1] }
  0x45   :  { %3665 = vmatpush3.bf16.msra.mxu0 %v3953_v36  ;;  %v4561_v36 = vld [vmem:[%s5546_s1 + $0x64] sm:$0x1]  ;;  %v245_v50 = vrot.slane %v243_v27, 5  ;;  %v251_v61 = vrot.slane %v249_v54, 5  ;;  %v256_v57 = vrot.slane %v254_v10, 4  ;;  %v3047_v41 = vcombine.low %v224_v35, %v238_v33  ;;  %5604 = vst [vmem:[#allocation17_spill] sm:$0xff] %v4577_v24 }
  0x46   :  { %3682 = vmatprep.subr.bf16.mxu0 %v4515_v63  ;;  %5602 = vst [vmem:[#allocation15_spill] sm:$0xff] %v4561_v36  ;;  %v1386_v3 = vsel %vm4159_vm2, %v1381_v37, %v1385_v52  ;;  %v1394_v58 = vor.u32 %v1393_v40, %v1390_v4  ;;  %v257_v49 = vshll.u32 %v4539_v56, 16  ;;  %v263_v19 = vshll.u32 %v4546_v18, 16  ;;  %v4586_v10 = vld [vmem:[%s5545_s0 + $0x70] sm:$0xf] }
  0x47   :  { %v246_v13 = vor.u32 %v245_v50, %v242_v47  ;;  %v1402_v25 = vshrl.u32 %v4555_v16, 16  ;;  %v1405_v27 = vshll.u32 %v4555_v16, 16  ;;  %3515 = vmatmul.mubr.bf16.gmra.mrb[8].mxu1 %v3047_v41  ;;  %v1411_v52 = vshll.u32 %v4561_v36, 16  ;;  %5605 = vst [vmem:[#allocation18_spill] sm:$0xff] %v4586_v10  ;;  %v4593_v18 = vld [vmem:[%s5545_s0 + $0x78] sm:$0xf] }
  0x48   :  { %v1395_v35 = vrot.slane %v1394_v58, 4  ;;  %v259_v54 = vrot.slane %v257_v49, 5  ;;  %v1416_v4 = vshrl.u32 %v4568_v26, 16  ;;  %v265_v40 = vrot.slane %v263_v19, 5 }
  0x49   :  { %v247_v37 = vrot.slane %v246_v13, 4  ;;  %v1404_v47 = vrot.slane %v1402_v25, 4  ;;  %v1407_v33 = vrot.slane %v1405_v27, 5  ;;  %v1413_v58 = vrot.slane %v1411_v52, 5  ;;  %v4601_v27 = vld [vmem:[%s5545_s0 + $0x74] sm:$0x1] }
  0x4a   :  { %v1400_v50 = vsel %vm4159_vm2, %v1395_v35, %v1399_v44  ;;  %v260_v41 = vor.u32 %v259_v54, %v256_v57  ;;  %v1418_v49 = vrot.slane %v1416_v4, 4  ;;  %v1419_v25 = vshll.u32 %v4568_v26, 16  ;;  %5606 = vst [vmem:[#allocation19_spill] sm:$0xff] %v4601_v27  ;;  %v4606_v57 = vld [vmem:[%s5545_s0 + $0x7c] sm:$0x1] }
  0x4b   :  { %v3175_v56 = vcombine.low %v1386_v3, %v1400_v50  ;;  %v252_v13 = vsel %vm4159_vm2, %v247_v37, %v251_v61  ;;  %v1408_v19 = vor.u32 %v1407_v33, %v1404_v47  ;;  %5607 = vst [vmem:[#allocation20_spill] sm:$0xff] %v4606_v57  ;;  %v1425_v35 = vshll.u32 %v4577_v24, 16  ;;  %v4614_v54 = vld [vmem:[%s5546_s1 + $0x70] sm:$0xf]  ;;  %v4619_v52 = vld [vmem:[%s5546_s1 + $0x74] sm:$0x1] }
  0x4c   :  { %v261_v44 = vrot.slane %v260_v41, 4  ;;  %v268_v3 = vshrl.u32 %v4586_v10, 16  ;;  %v271_v61 = vshll.u32 %v4586_v10, 16  ;;  %v1697_v4 = vrot.slane %v4226_v17, 5  ;;  %v4626_v50 = vld [vmem:[%s5546_s1 + $0x78] sm:$0xf] }
  0x4d   :  { %3643 = vmatmul.mubr.bf16.gmra.mrb[8].mxu0 %v3175_v56  ;;  %v1409_v37 = vrot.slane %v1408_v19, 4  ;;  %v1421_v47 = vrot.slane %v1419_v25, 5  ;;  %v282_v33 = vshrl.u32 %v4593_v18, 16  ;;  %v277_v26 = vshll.u32 %v4601_v27, 16 }
  0x4e   :  { %v266_v41 = vsel %vm4159_vm2, %v261_v44, %v265_v40  ;;  %v270_v10 = vrot.slane %v268_v3, 4  ;;  %v273_v24 = vrot.slane %v271_v61, 5  ;;  %v1427_v19 = vrot.slane %v1425_v35, 5  ;;  %v4638_v40 = vld [vmem:[%s5546_s1 + $0x7c] sm:$0x1] }
  0x4f   :  { %v3048_v36 = vcombine.low %v252_v13, %v266_v41  ;;  %v1414_v17 = vsel %vm4159_vm2, %v1409_v37, %v1413_v58  ;;  %v1422_v56 = vor.u32 %v1421_v47, %v1418_v49  ;;  %v284_v16 = vrot.slane %v282_v33, 4 }
  0x50   :  { %v274_v25 = vor.u32 %v273_v24, %v270_v10  ;;  %v285_v6 = vshll.u32 %v4593_v18, 16  ;;  %v291_v48 = vshll.u32 %v4606_v57, 16  ;;  %v1430_v13 = vshrl.u32 %v4614_v54, 16 }
  0x51   :  { %3518 = vmatprep.mubr.bf16.mxu1 %v3048_v36  ;;  %v1423_v44 = vrot.slane %v1422_v56, 4  ;;  %v1433_v3 = vshll.u32 %v4614_v54, 16  ;;  %v1439_v58 = vshll.u32 %v4619_v52, 16  ;;  %v279_v24 = vrot.slane %v277_v26, 5 }
  0x52   :  { %v275_v49 = vrot.slane %v274_v25, 4  ;;  %v287_v10 = vrot.slane %v285_v6, 5  ;;  %v1444_v35 = vshrl.u32 %v4626_v50, 16  ;;  %v293_v37 = vrot.slane %v291_v48, 5 }
  0x53   :  { %v1428_v61 = vsel %vm4159_vm2, %v1423_v44, %v1427_v19  ;;  %v1432_v47 = vrot.slane %v1430_v13, 4  ;;  %v1435_v33 = vrot.slane %v1433_v3, 5  ;;  %v1441_v56 = vrot.slane %v1439_v58, 5 }
  0x54   :  { %v3176_v41 = vcombine.low %v1414_v17, %v1428_v61  ;;  %v288_v36 = vor.u32 %v287_v10, %v284_v16  ;;  %v1446_v57 = vrot.slane %v1444_v35, 4  ;;  %v1447_v6 = vshll.u32 %v4626_v50, 16 }
  0x55   :  { %v1436_v26 = vor.u32 %v1435_v33, %v1432_v47  ;;  %v1453_v25 = vshll.u32 %v4638_v40, 16  ;;  %v3186_v19 = vrot.slane %v4134_v23, 9  ;;  %v280_v48 = vsel %vm4159_vm2, %v275_v49, %v279_v24 }
  0x56   :  { %3646 = vmatprep.mubr.bf16.mxu0 %v3176_v41  ;;  %v289_v16 = vrot.slane %v288_v36, 4  ;;  %v3187_v17 = vrot.slane %v4144_v31, 9  ;;  %v3188_v44 = vrot.slane %v4202_v0, 9  ;;  %v1449_v3 = vrot.slane %v1447_v6, 5 }
  0x57   :  { %v1437_v13 = vrot.slane %v1436_v26, 4  ;;  %v1455_v58 = vrot.slane %v1453_v25, 5  ;;  %v5610_v10 = vrot.slane %v4139_v28, 5  ;;  %v5611_v61 = vrot.slane %v4149_v32, 5 }
  0x58   :  { %v294_v23 = vsel %vm4159_vm2, %v289_v16, %v293_v37  ;;  %v5612_v31 = vrot.slane %v4208_v5, 5  ;;  %v3189_v24 = vrot.slane %v4219_v11, 9  ;;  %v1450_v28 = vor.u32 %v1449_v3, %v1446_v57 }
  0x59   :  { %v1686_v35 = vsel %vm4648_vm5, %v3186_v19, %v5610_v10  ;;  %v1690_v49 = vsel %vm4648_vm5, %v3187_v17, %v5611_v61  ;;  %v3049_v47 = vcombine.low %v280_v48, %v294_v23  ;;  %v1442_v32 = vsel %vm4159_vm2, %v1437_v13, %v1441_v56  ;;  %v3959_v13 = vld [vmem:[%s5544_s3 + $0x188] sm:$0xff]   ;;  %v4023_v61 = vld [vmem:[%s5545_s0 + $0x1c] sm:$0x1] }
  0x5a   :  { %v1694_v0 = vsel %vm4648_vm5, %v3188_v44, %v5612_v31  ;;  %v3218_v33 = vcombine.low %v1686_v35, %v1690_v49  ;;  %v1698_v41 = vsel %vm4648_vm5, %v3189_v24, %v1697_v4  ;;  %v1451_v37 = vrot.slane %v1450_v28, 4 }
  0x5b   :  { %3519 = vmatmul.mubr.bf16.gmra.mrb[12].mxu1 %v3049_v47  ;;  %v3219_v36 = vcombine.low %v1694_v0, %v1698_v41  ;;  %v5613_v5 = vcombine.low %v4111_v12, %v4119_v14  ;;  %v3190_v26 = vrot.slane %v4271_v1, 9  ;;  %v1701_v11 = vrot.slane %v4278_v15, 5  ;;  %v3958_v14 = vld [vmem:[%s5544_s3 + $0x88] sm:$0xff]   ;;  %v4018_v1 = vld [vmem:[%s5545_s0 + $0x4] sm:$0x1] }
  0x5c   :  { %v1456_v57 = vsel %vm4159_vm2, %v1451_v37, %v1455_v58  ;;  %v3191_v6 = vrot.slane %v4289_v22, 9  ;;  %v1705_v4 = vrot.slane %v4300_v30, 5  ;;  %v3059_v56 = vcombine.low %v4169_v43, %v4183_v53  ;;  %v4019_v22 = vld [vmem:[%s5545_s0 + $0xc] sm:$0x1]  ;;  %v4022_v58 = vld [vmem:[%s5545_s0 + $0x14] sm:$0x1] }
  0x5d   :  { %3538 = vmatprep.mubr.bf16.mxu1 %v5613_v5  ;;  %v3177_v25 = vcombine.low %v1442_v32, %v1456_v57  ;;  %v3060_v12 = vcombine.low %v4247_v45, %v4258_v55  ;;  %v703_v15 = vrot.slane %v4018_v1, 5  ;;  %v707_v30 = vrot.slane %v4019_v22, 5  ;;  %v4024_v47 = vld [vmem:[%s5545_s0 + $0x10] sm:$0xf]  ;;  %v4025_v32 = vld [vmem:[%s5545_s0 + $0x18] sm:$0xf] }
  0x5e   :  { %v1702_v43 = vsel %vm4648_vm5, %v3190_v26, %v1701_v11  ;;  %v1706_v53 = vsel %vm4648_vm5, %v3191_v6, %v1705_v4  ;;  %v3192_v45 = vrot.slane %v4333_v62, 9  ;;  %v1709_v55 = vrot.slane %v4341_v7, 5  ;;  %v3962_v62 = vld [vmem:[%s5544_s3 + $0x90] sm:$0xff]   ;;  %v5615_v4 = vld [vmem:[#allocation9_spill] sm:$0xff]  ;;  %v3968_v1 = vld [vmem:[%s5544_s3 + $0xa0] sm:$0xff]  }
  0x5f   :  { %3647 = vmatmul.mubr.bf16.gmra.mrb[12].mxu0 %v3177_v25  ;;  %v3193_v19 = vrot.slane %v4349_v20, 9  ;;  %v1713_v48 = vrot.slane %v4356_v29, 5  ;;  %v3220_v16 = vcombine.low %v1702_v43, %v1706_v53  ;;  %v3194_v17 = vrot.slane %v4411_v42, 9  ;;  %v4020_v29 = vld [vmem:[%s5545_s0] sm:$0xf]  ;;  %v5614_v57 = vld [vmem:[#allocation8_spill] sm:$0xff] }
  0x60   :  { %3666 = vmatprep.mubr.bf16.mxu0 %v3218_v33  ;;  %v1717_v44 = vrot.slane %v4416_v46, 5  ;;  %v3195_v7 = vrot.slane %v4429_v59, 9  ;;  %v1721_v20 = vrot.slane %v4436_v9, 5  ;;  %v4021_v46 = vld [vmem:[%s5545_s0 + $0x8] sm:$0xf]  ;;  %v711_v10 = vrot.slane %v4022_v58, 5 }
  0x61   :  { %v3075_v3 = vrot.slane %v4021_v46, 9  ;;  %v3061_v35 = vcombine.low %v4306_v34, %v4318_v51  ;;  %v1710_v9 = vsel %vm4648_vm5, %v3192_v45, %v1709_v55  ;;  %v3062_v23 = vcombine.low %v4378_v60, %v4390_v8  ;;  %v3964_v51 = vld [vmem:[%s5544_s3 + $0x98] sm:$0xff]   ;;  %v3963_v33 = vld [vmem:[%s5544_s3 + $0x190] sm:$0xff]   ;;  %v5617_v22 = vld [vmem:[#allocation15_spill] sm:$0xff] }
  0x62   :  { %v715_v49 = vrot.slane %v4023_v61, 5  ;;  %v1714_v31 = vsel %vm4648_vm5, %v3193_v19, %v1713_v48  ;;  %v3076_v28 = vrot.slane %v4024_v47, 9  ;;  %v1722_v41 = vsel %vm4648_vm5, %v3195_v7, %v1721_v20  ;;  %v5618_v53 = vld [vmem:[#allocation16_spill] sm:$0xff]  ;;  %v5619_v55 = vld [vmem:[#allocation17_spill] sm:$0xff]  ;;  %v5620_v48 = vld [vmem:[#allocation6_spill] sm:$0xff] }
  0x63   :  { %3539 = vmatmul.mubr.bf16.vlgmr.msra.gmra.mrb[0].mxu1 %v3059_v56  ;;  %v4745_v34 = vsel %vm4648_vm5, %v3075_v3, %v707_v30  ;;  %v3077_v37 = vrot.slane %v4025_v32, 9  ;;  %v3196_v5 = vrot.slane %v4479_v39, 9  ;;  %v1725_v11 = vrot.slane %v4484_v2, 5  ;;  %v5616_v2 = vld [vmem:[#allocation14_spill] sm:$0xff]  ;;  %v3971_v47 = vld [vmem:[%s5544_s3 + $0x1a8] sm:$0xff]  }
  0x64   :  { %3555 = vmatpush3.bf16.msra.mxu1 %v4501_v21  ;;  %3542 = vmatprep.mubr.bf16.mxu1 %v3060_v12  ;;  %v3074_v21 = vrot.slane %v4020_v29, 9  ;;  %v4769_v26 = vsel %vm4648_vm5, %v3076_v28, %v711_v10  ;;  %v3197_v6 = vrot.slane %v5614_v57, 9  ;;  %v1729_v25 = vrot.slane %v5615_v4, 5  ;;  %v3965_v12 = vld [vmem:[%s5544_s3 + $0x198] sm:$0xff]   ;;  %v5623_v7 = vld [vmem:[#allocation10_spill] sm:$0xff]  ;;  %v3974_v28 = vld [vmem:[%s5544_s3 + $0xb0] sm:$0xff]  }
  0x65   :  { %3556 = vmatprep.subr.bf16.mxu1 %v3958_v14  ;;  %v4776_v56 = vsel %vm4648_vm5, %v3077_v37, %v715_v49  ;;  %v1733_v30 = vrot.slane %v5617_v22, 5  ;;  %v3199_v45 = vrot.slane %v5618_v53, 9  ;;  %v1737_v19 = vrot.slane %v5619_v55, 5  ;;  %v5625_v37 = vld [vmem:[#allocation18_spill] sm:$0xff]  ;;  %v4028_v55 = vld [vmem:[%s5545_s0 + $0x28] sm:$0xf] }
  0x66   :  { %v4741_v0 = vsel %vm4648_vm5, %v3074_v21, %v703_v15  ;;  %v3198_v15 = vrot.slane %v5616_v2, 9  ;;  %v3107_v43 = vcombine.low %v4769_v26, %v4776_v56  ;;  %v1726_v29 = vsel %vm4648_vm5, %v3196_v5, %v1725_v11  ;;  %v5626_v11 = vld [vmem:[#allocation7_spill] sm:$0xff] }
  0x67   :  { %3667 = vmatmul.mubr.bf16.vlgmr.msra.gmra.mrb[0].mxu0 %v3219_v36  ;;  %v3106_v24 = vcombine.low %v4741_v0, %v4745_v34  ;;  %v3221_v36 = vcombine.low %v1710_v9, %v1714_v31  ;;  %v1730_v21 = vsel %vm4648_vm5, %v3197_v6, %v1729_v25  ;;  %v3200_v46 = vrot.slane %v4614_v54, 9  ;;  %v4026_v25 = vld [vmem:[%s5545_s0 + $0x20] sm:$0xf]  ;;  %v4031_v0 = vld [vmem:[%s5545_s0 + $0x34] sm:$0x1] }
  0x68   :  { %3557 = vmatpush3.bf16.msra.mxu1 %v3958_v14  ;;  %3683 = vmatpush3.bf16.msra.mxu0 %v4515_v63  ;;  %v1718_v63 = vsel %vm4648_vm5, %v3194_v17, %v1717_v44  ;;  %v3969_v44 = vld [vmem:[%s5544_s3 + $0x1a0] sm:$0xff]   ;;  %v1741_v3 = vrot.slane %v4619_v52, 5  ;;  %v1734_v58 = vsel %vm4648_vm5, %v3198_v15, %v1733_v30  ;;  %v1738_v10 = vsel %vm4648_vm5, %v3199_v45, %v1737_v19  ;;  %v3975_v30 = vld [vmem:[%s5544_s3 + $0x1b0] sm:$0xff]   ;;  %v3976_v45 = vld [vmem:[%s5544_s3 + $0xb8] sm:$0xff]  }
  0x69   :  { %3670 = vmatprep.mubr.bf16.mxu0 %v3220_v16  ;;  %3684 = vmatprep.subr.bf16.mxu0 %v3959_v13  ;;  %v3222_v14 = vcombine.low %v1718_v63, %v1722_v41  ;;  %v5621_v16 = vld [vmem:[#allocation4_spill] sm:$0xff]  ;;  %v1745_v9 = vrot.slane %v4638_v40, 5  ;;  %v4815_v52 = vld [vmem:[%s5547_s2] sm:$0xf]  ;;  %v3224_v40 = vcombine.low %v1734_v58, %v1738_v10  ;;  %v5624_v41 = vld [vmem:[#allocation5_spill] sm:$0xff]  ;;  %v3085_v5 = vrot.slane %v5620_v48, 9 }
  0x6a   :  { %3558 = vmatprep.subr.bf16.mxu1 %v3962_v62  ;;  %v3063_v17 = vcombine.low %v5621_v16, %v5620_v48  ;;  %v3084_v61 = vrot.slane %v5621_v16, 9  ;;  %v743_v32 = vrot.slane %v5624_v41, 5  ;;  %v747_v6 = vrot.slane %v5626_v11, 5  ;;  %v4029_v48 = vld [vmem:[%s5545_s0 + $0x2c] sm:$0x1]  ;;  %v5628_v58 = vld [vmem:[#allocation13_spill] sm:$0xff] }
  0x6b   :  { %3543 = vmatmul.mubr.bf16.gmra.mrb[4].mxu1 %v3061_v35  ;;  %v3201_v35 = vrot.slane %v4626_v50, 9  ;;  %v3079_v19 = vrot.slane %v4028_v55, 9  ;;  %v723_v16 = vrot.slane %v4029_v48, 5  ;;  %v755_v10 = vrot.slane %v5628_v58, 5  ;;  %v4933_v11 = vld [vmem:[%s5547_s2 + $0x18] sm:$0xf] }
  0x6c   :  { %3559 = vmatpush3.bf16.msra.mxu1 %v3962_v62  ;;  %3546 = vmatprep.mubr.bf16.mxu1 %v3062_v23  ;;  %v5622_v62 = vld [vmem:[#allocation12_spill] sm:$0xff]  ;;  %v3223_v23 = vcombine.low %v1726_v29, %v1730_v21  ;;  %v4856_v15 = vsel %vm4648_vm5, %v3084_v61, %v743_v32  ;;  %v3086_v29 = vrot.slane %v5623_v7, 9  ;;  %v5627_v21 = vld [vmem:[#allocation11_spill] sm:$0xff]  ;;  %v727_v34 = vrot.slane %v4031_v0, 5  ;;  %5630 = vst [vmem:[#allocation8_spill] sm:$0xff] %v4933_v11 }
  0x6d   :  { %3685 = vmatpush3.bf16.msra.mxu0 %v3959_v13  ;;  %3560 = vmatprep.subr.bf16.mxu1 %v3964_v51  ;;  %v3970_v13 = vld [vmem:[%s5544_s3 + $0xa8] sm:$0xff]   ;;  %v3064_v20 = vcombine.low %v5623_v7, %v5622_v62  ;;  %v4839_v63 = vsel %vm4648_vm5, %v3201_v35, %v1745_v9  ;;  %v4030_v9 = vld [vmem:[%s5545_s0 + $0x30] sm:$0xf]  ;;  %v3088_v7 = vrot.slane %v5625_v37, 9  ;;  %v2258_v0 = vshrl.u32 %v4933_v11, 16 }
  0x6e   :  { %3686 = vmatprep.subr.bf16.mxu0 %v3963_v33  ;;  %v5629_v61 = vld [vmem:[#allocation19_spill] sm:$0xff]  ;;  %v5632_v55 = vld [vmem:[#allocation20_spill] sm:$0xff]  ;;  %v5084_v31 = vld [vmem:[%s5546_s1] sm:$0xf]  ;;  %v5662_v38 = vcombine.low %v4614_v54, %v4626_v50 }
  0x6f   :  { %3671 = vmatmul.mubr.bf16.gmra.mrb[4].mxu0 %v3221_v36  ;;  %v3065_v36 = vcombine.low %v5625_v37, %v4593_v18 }
  0x70   :  { %3561 = vmatpush3.bf16.msra.mxu1 %v3964_v51  ;;  %3674 = vmatprep.mubr.bf16.mxu0 %v3222_v14  ;;  %v4825_v51 = vld [vmem:[%s5547_s2 + $0x8] sm:$0xf]  ;;  %v4027_v14 = vld [vmem:[%s5545_s0 + $0x24] sm:$0x1] }
  0x71   :  { %3687 = vmatpush3.bf16.msra.mxu0 %v3963_v33  ;;  %3562 = vmatprep.subr.bf16.mxu1 %v3968_v1  ;;  %v4835_v33 = vsel %vm4648_vm5, %v3200_v46, %v1741_v3  ;;  %v3250_v4 = vcombine.low %v4815_v52, %v4825_v51  ;;  %v751_v46 = vrot.slane %v5627_v21, 5  ;;  %v3087_v3 = vrot.slane %v5622_v62, 9 }
  0x72   :  { %3688 = vmatprep.subr.bf16.mxu0 %v3965_v12  ;;  %v3225_v22 = vcombine.low %v4835_v33, %v4839_v63  ;;  %v724_v62 = vsel %vm4648_vm5, %v3079_v19, %v723_v16  ;;  %v3979_v33 = vld [vmem:[%s5544_s3 + $0xc0] sm:$0xff]   ;;  %v4032_v63 = vld [vmem:[%s5545_s0 + $0x38] sm:$0xf]  ;;  %v763_v19 = vrot.slane %v5632_v55, 5  ;;  %v3083_v16 = vrot.slane %v4390_v8, 9 }
  0x73   :  { %3547 = vmatmul.mubr.bf16.gmra.mrb[8].mxu1 %v3063_v17  ;;  %v4874_v17 = vsel %vm4648_vm5, %v3085_v5, %v747_v6  ;;  %v3081_v41 = vrot.slane %v4032_v63, 9  ;;  %v4928_v5 = vld [vmem:[%s5547_s2 + $0x10] sm:$0xf]  ;;  %v3982_v6 = vld [vmem:[%s5544_s3 + $0xc8] sm:$0xff]  }
  0x74   :  { %3563 = vmatpush3.bf16.msra.mxu1 %v3968_v1  ;;  %3550 = vmatprep.mubr.bf16.mxu1 %v3064_v20  ;;  %v719_v1 = vrot.slane %v4027_v14, 5  ;;  %v5631_v14 = vld [vmem:[#allocation2_spill] sm:$0xff]  ;;  %v4961_v8 = vld [vmem:[%s5547_s2 + $0x28] sm:$0xf]  ;;  %v5159_v55 = vld [vmem:[%s5547_s2 + $0x2c] sm:$0x1] }
  0x75   :  { %3689 = vmatpush3.bf16.msra.mxu0 %v3965_v12  ;;  %3564 = vmatprep.subr.bf16.mxu1 %v3970_v13  ;;  %v3078_v12 = vrot.slane %v4026_v25, 9  ;;  %v4033_v25 = vld [vmem:[%s5545_s0 + $0x3c] sm:$0x1]  ;;  %5635 = vst [vmem:[#allocation14_spill] sm:$0xff] %v4961_v8  ;;  %v5074_v20 = vld [vmem:[%s5544_s3 + $0x1e0] sm:$0xff]   ;;  %5640 = vst [vmem:[#allocation4_spill] sm:$0xff] %v5159_v55 }
  0x76   :  { %3690 = vmatprep.subr.bf16.mxu0 %v3969_v44 }
  0x77   :  { %3675 = vmatmul.mubr.bf16.gmra.mrb[8].mxu0 %v3223_v23  ;;  %v720_v35 = vsel %vm4648_vm5, %v3078_v12, %v719_v1  ;;  %v3080_v23 = vrot.slane %v4030_v9, 9  ;;  %v731_v12 = vrot.slane %v4033_v25, 5  ;;  %v735_v1 = vrot.slane %v5631_v14, 5  ;;  %v3985_v9 = vld [vmem:[%s5544_s3 + $0xd0] sm:$0xff]  }
  0x78   :  { %3565 = vmatpush3.bf16.msra.mxu1 %v3970_v13  ;;  %3678 = vmatprep.mubr.bf16.mxu0 %v3224_v40  ;;  %v759_v40 = vrot.slane %v5629_v61, 5  ;;  %v3108_v48 = vcombine.low %v720_v35, %v724_v62  ;;  %v3983_v35 = vld [vmem:[%s5544_s3 + $0x1c8] sm:$0xff]   ;;  %v2247_v62 = vshll.u32 %v4928_v5, 16  ;;  %v2261_v25 = vshll.u32 %v4933_v11, 16 }
  0x79   :  { %3691 = vmatpush3.bf16.msra.mxu0 %v3969_v44  ;;  %3566 = vmatprep.subr.bf16.mxu1 %v3974_v28  ;;  %v3111_v44 = vcombine.low %v4856_v15, %v4874_v17  ;;  %v2286_v14 = vshrl.u32 %v4961_v8, 16  ;;  %v5079_v13 = vld [vmem:[%s5547_s2 + $0x68] sm:$0xf] }
  0x7a   :  { %3692 = vmatprep.subr.bf16.mxu0 %v3971_v47  ;;  %v4922_v37 = vsel %vm4648_vm5, %v3088_v7, %v759_v40  ;;  %v2233_v7 = vshll.u32 %v4825_v51, 16  ;;  %v2244_v40 = vshrl.u32 %v4928_v5, 16 }
  0x7b   :  { %3551 = vmatmul.mubr.bf16.gmra.mrb[12].mxu1 %v3065_v36  ;;  %v3089_v36 = vrot.slane %v4593_v18, 9  ;;  %v3082_v18 = vrot.slane %v4378_v60, 9  ;;  %v3981_v60 = vld [vmem:[%s5544_s3 + $0x1c0] sm:$0xff]  }
  0x7c   :  { %3567 = vmatpush3.bf16.msra.mxu1 %v3974_v28  ;;  %3570 = vmatprep.mubr.bf16.mxu1 %v3106_v24  ;;  %v4903_v24 = vsel %vm4648_vm5, %v3086_v29, %v751_v46  ;;  %v4907_v28 = vsel %vm4648_vm5, %v3087_v3, %v755_v10  ;;  %v5633_v29 = vld [vmem:[#allocation3_spill] sm:$0xff]  ;;  %v732_v3 = vsel %vm4648_vm5, %v3081_v41, %v731_v12  ;;  %v2219_v10 = vshll.u32 %v4815_v52, 16  ;;  %v5007_v41 = vld [vmem:[%s5547_s2 + $0x38] sm:$0xf] }
  0x7d   :  { %3693 = vmatpush3.bf16.msra.mxu0 %v3971_v47  ;;  %3568 = vmatprep.subr.bf16.mxu1 %v3976_v45  ;;  %v3977_v47 = vld [vmem:[%s5544_s3 + $0x1b8] sm:$0xff]   ;;  %v3112_v32 = vcombine.low %v4903_v24, %v4907_v28  ;;  %v739_v21 = vrot.slane %v5633_v29, 5  ;;  %v4948_v46 = vsel %vm4648_vm5, %v3089_v36, %v763_v19  ;;  %v736_v26 = vsel %vm4648_vm5, %v3082_v18, %v735_v1  ;;  %v5012_v36 = vld [vmem:[%s5547_s2 + $0x40] sm:$0xf] }
  0x7e   :  { %3694 = vmatprep.subr.bf16.mxu0 %v3975_v30  ;;  %5637 = vst [vmem:[#allocation16_spill] sm:$0xff] %v5007_v41  ;;  %v2246_v19 = vrot.slane %v2244_v40, 4  ;;  %v2263_v40 = vrot.slane %v2261_v25, 5  ;;  %v2288_v1 = vrot.slane %v2286_v14, 4  ;;  %v3995_v14 = vld [vmem:[%s5544_s3 + $0x1e8] sm:$0xff]  }
  0x7f   :  { %3679 = vmatmul.mubr.bf16.gmra.mrb[12].mxu0 %v3225_v22  ;;  %v4956_v22 = vld [vmem:[%s5547_s2 + $0x20] sm:$0xf]  ;;  %v740_v56 = vsel %vm4648_vm5, %v3083_v16, %v739_v21  ;;  %v5034_v21 = vld [vmem:[%s5547_s2 + $0x4] sm:$0x1] }
  0x80   :  { %3569 = vmatpush3.bf16.msra.mxu1 %v3976_v45  ;;  %3698 = vmatprep.mubr.bf16.mxu0 %v3250_v4  ;;  %5634 = vst [vmem:[#allocation9_spill] sm:$0xff] %v4956_v22  ;;  %v728_v45 = vsel %vm4648_vm5, %v3080_v23, %v727_v34  ;;  %v3252_v58 = vcombine.low %v4956_v22, %v4961_v8  ;;  %v2230_v23 = vshrl.u32 %v4825_v51, 16  ;;  %v4996_v34 = vld [vmem:[%s5547_s2 + $0x30] sm:$0xf]  ;;  %v2272_v12 = vshrl.u32 %v4956_v22, 16 }
  0x81   :  { %3695 = vmatpush3.bf16.msra.mxu0 %v3975_v30  ;;  %3586 = vmatprep.subr.bf16.mxu1 %v3979_v33  ;;  %v3251_v30 = vcombine.low %v4928_v5, %v4933_v11  ;;  %v3109_v61 = vcombine.low %v728_v45, %v732_v3  ;;  %5636 = vst [vmem:[#allocation15_spill] sm:$0xff] %v4996_v34  ;;  %v2275_v18 = vshll.u32 %v4956_v22, 16  ;;  %v2221_v45 = vrot.slane %v2219_v10, 5  ;;  %v5054_v10 = vld [vmem:[%s5547_s2 + $0x50] sm:$0xf] }
  0x82   :  { %3696 = vmatprep.subr.bf16.mxu0 %v3977_v47  ;;  %v3110_v63 = vcombine.low %v736_v26, %v740_v56  ;;  %v3253_v16 = vcombine.low %v4996_v34, %v5007_v41  ;;  %v2232_v3 = vrot.slane %v2230_v23, 4  ;;  %v3989_v56 = vld [vmem:[%s5544_s3 + $0x1d8] sm:$0xff]   ;;  %v5064_v23 = vld [vmem:[%s5544_s3 + $0xe8] sm:$0xff]   ;;  %v2225_v49 = vshll.u32 %v5034_v21, 16  ;;  %v5108_v4 = vld [vmem:[%s5546_s1 + $0x10] sm:$0xf] }
  0x83   :  { %3571 = vmatmul.mubr.bf16.vlgmr.msra.gmra.mrb[0].mxu1 %v3107_v43  ;;  %v2216_v43 = vshrl.u32 %v4815_v52, 16  ;;  %v2274_v15 = vrot.slane %v2272_v12, 4  ;;  %v2277_v17 = vrot.slane %v2275_v18, 5  ;;  %v5641_v12 = vshll.u32 %v4961_v8, 16 }
  0x84   :  { %3587 = vmatpush3.bf16.msra.mxu1 %v3979_v33  ;;  %3574 = vmatprep.mubr.bf16.mxu1 %v3108_v48  ;;  %v3988_v33 = vld [vmem:[%s5544_s3 + $0xd8] sm:$0xff]  }
  0x85   :  { %3697 = vmatpush3.bf16.msra.mxu0 %v3977_v47  ;;  %3588 = vmatprep.subr.bf16.mxu1 %v3982_v6  ;;  %v3987_v47 = vld [vmem:[%s5544_s3 + $0x1d0] sm:$0xff]   ;;  %v5103_v48 = vld [vmem:[%s5547_s2 + $0x1c] sm:$0x1]  ;;  %v2291_v22 = vrot.slane %v5641_v12, 5 }
  0x86   :  { %3714 = vmatprep.subr.bf16.mxu0 %v3981_v60  ;;  %v2267_v8 = vshll.u32 %v5103_v48, 16  ;;  %v2679_v54 = vrot.slane %v5103_v48, 5 }
  0x88   :  { %3699 = vmatmul.mubr.bf16.vlgmr.msra.gmra.mrb[0].mxu0 %v3251_v30  ;;  %3589 = vmatpush3.bf16.msra.mxu1 %v3982_v6  ;;  %v5017_v6 = vld [vmem:[%s5547_s2 + $0x48] sm:$0xf]  ;;  %v2218_v30 = vrot.slane %v2216_v43, 4  ;;  %v3991_v43 = vld [vmem:[%s5544_s3 + $0xe0] sm:$0xff]  }
  0x89   :  { %3715 = vmatpush3.bf16.msra.mxu0 %v3981_v60  ;;  %3702 = vmatprep.mubr.bf16.mxu0 %v3252_v58  ;;  %v3254_v29 = vcombine.low %v5012_v36, %v5017_v6  ;;  %v5039_v60 = vld [vmem:[%s5547_s2 + $0xc] sm:$0x1]  ;;  %v2235_v58 = vrot.slane %v2233_v7, 5  ;;  %v5069_v7 = vld [vmem:[%s5547_s2 + $0x60] sm:$0xf] }
  0x8a   :  { %3716 = vmatprep.subr.bf16.mxu0 %v3983_v35  ;;  %3590 = vmatprep.subr.bf16.mxu1 %v3985_v9  ;;  %v3256_v25 = vcombine.low %v5069_v7, %v5079_v13 }
  0x8b   :  { %3575 = vmatmul.mubr.bf16.gmra.mrb[4].mxu1 %v3109_v61  ;;  %v5098_v61 = vld [vmem:[%s5547_s2 + $0x14] sm:$0x1]  ;;  %v2236_v26 = vor.u32 %v2235_v58, %v2232_v3  ;;  %v5141_v58 = vld [vmem:[%s5547_s2 + $0x70] sm:$0xf] }
  0x8c   :  { %3591 = vmatpush3.bf16.msra.mxu1 %v3985_v9  ;;  %3578 = vmatprep.mubr.bf16.mxu1 %v3110_v63  ;;  %v2239_v63 = vshll.u32 %v5039_v60, 16  ;;  %5638 = vst [vmem:[#allocation17_spill] sm:$0xff] %v5098_v61  ;;  %v2222_v9 = vor.u32 %v2221_v45, %v2218_v30  ;;  %v2260_v30 = vrot.slane %v2258_v0, 4  ;;  %v5127_v45 = vld [vmem:[%s5546_s1 + $0x28] sm:$0xf]  ;;  %v2253_v3 = vshll.u32 %v5098_v61, 16 }
  0x8d   :  { %3717 = vmatpush3.bf16.msra.mxu0 %v3983_v35  ;;  %3592 = vmatprep.subr.bf16.mxu1 %v3988_v33  ;;  %v5059_v35 = vld [vmem:[%s5547_s2 + $0x58] sm:$0xf]  ;;  %v2237_v28 = vrot.slane %v2236_v26, 4 }
  0x8e   :  { %3718 = vmatprep.subr.bf16.mxu0 %v3987_v47  ;;  %v3255_v0 = vcombine.low %v5054_v10, %v5059_v35  ;;  %v2223_v24 = vrot.slane %v2222_v9, 4  ;;  %v2264_v12 = vor.u32 %v2263_v40, %v2260_v30  ;;  %v2292_v40 = vor.u32 %v2291_v22, %v2288_v1  ;;  %v3999_v22 = vld [vmem:[%s5544_s3 + $0x1f0] sm:$0xff]  }
  0x8f   :  { %v2255_v11 = vrot.slane %v2253_v3, 5  ;;  %v2269_v1 = vrot.slane %v2267_v8, 5  ;;  %v5208_v3 = vld [vmem:[%s5547_s2 + $0x34] sm:$0x1]  ;;  %v5646_v8 = vshrl.u32 %v5007_v41, 16 }
  0x90   :  { %3703 = vmatmul.mubr.bf16.gmra.mrb[4].mxu0 %v3253_v16  ;;  %3593 = vmatpush3.bf16.msra.mxu1 %v3988_v33  ;;  %v5089_v16 = vld [vmem:[%s5546_s1 + $0x8] sm:$0xf]  ;;  %v2249_v33 = vrot.slane %v2247_v62, 5  ;;  %v5122_v62 = vld [vmem:[%s5546_s1 + $0x20] sm:$0xf]  ;;  %5644 = vst [vmem:[#allocation12_spill] sm:$0xff] %v5208_v3 }
  0x91   :  { %3719 = vmatpush3.bf16.msra.mxu0 %v3987_v47  ;;  %3706 = vmatprep.mubr.bf16.mxu0 %v3254_v29  ;;  %v5113_v47 = vld [vmem:[%s5546_s1 + $0x18] sm:$0xf]  ;;  %v5146_v29 = vld [vmem:[%s5547_s2 + $0x24] sm:$0x1] }
  0x92   :  { %3720 = vmatprep.subr.bf16.mxu0 %v3989_v56  ;;  %3594 = vmatprep.subr.bf16.mxu1 %v3991_v43  ;;  %5639 = vst [vmem:[#allocation6_spill] sm:$0xff] %v5146_v29  ;;  %v2250_v18 = vor.u32 %v2249_v33, %v2246_v19  ;;  %v2281_v9 = vshll.u32 %v5146_v29, 16  ;;  %v2295_v33 = vshll.u32 %v5159_v55, 16 }
  0x93   :  { %3579 = vmatmul.mubr.bf16.gmra.mrb[8].mxu1 %v3111_v44  ;;  %v2227_v44 = vrot.slane %v2225_v49, 5  ;;  %v5169_v49 = vld [vmem:[%s5547_s2 + $0x78] sm:$0xf] }
  0x94   :  { %3595 = vmatpush3.bf16.msra.mxu1 %v3991_v43  ;;  %3582 = vmatprep.mubr.bf16.mxu1 %v3112_v32  ;;  %v2241_v32 = vrot.slane %v2239_v63, 5  ;;  %v2345_v43 = vshll.u32 %v5017_v6, 16  ;;  %v2278_v63 = vor.u32 %v2277_v17, %v2274_v15  ;;  %v3257_v30 = vcombine.low %v5141_v58, %v5169_v49  ;;  %v4000_v15 = vld [vmem:[%s5544_s3 + $0xf8] sm:$0xff]  }
  0x95   :  { %3721 = vmatpush3.bf16.msra.mxu0 %v3989_v56  ;;  %3596 = vmatprep.subr.bf16.mxu1 %v5064_v23  ;;  %v3997_v56 = vld [vmem:[%s5544_s3 + $0xf0] sm:$0xff]   ;;  %v2251_v61 = vrot.slane %v2250_v18, 4 }
  0x96   :  { %3722 = vmatprep.subr.bf16.mxu0 %v5074_v20  ;;  %v2242_v17 = vsel %vm4159_vm2, %v2237_v28, %v2241_v32  ;;  %v2297_v28 = vrot.slane %v2295_v33, 5  ;;  %v5645_v32 = vshll.u32 %v4996_v34, 16 }
  0x97   :  { %v2256_v26 = vsel %vm4159_vm2, %v2251_v61, %v2255_v11 }
  0x98   :  { %3707 = vmatmul.mubr.bf16.gmra.mrb[8].mxu0 %v3255_v0  ;;  %3597 = vmatpush3.bf16.msra.mxu1 %v5064_v23  ;;  %v2228_v0 = vsel %vm4159_vm2, %v2223_v24, %v2227_v44  ;;  %v2283_v23 = vrot.slane %v2281_v9, 5  ;;  %v5643_v44 = vcombine.low %v4922_v37, %v4948_v46  ;;  %v2279_v24 = vrot.slane %v2278_v63, 4  ;;  %v5220_v46 = vld [vmem:[%s5547_s2 + $0x3c] sm:$0x1] }
  0x99   :  { %3723 = vmatpush3.bf16.msra.mxu0 %v5074_v20  ;;  %3710 = vmatprep.mubr.bf16.mxu0 %v3256_v25  ;;  %v2265_v20 = vrot.slane %v2264_v12, 4  ;;  %v5642_v25 = vshrl.u32 %v4996_v34, 16  ;;  %v2305_v18 = vrot.slane %v5645_v32, 5  ;;  %v2316_v12 = vrot.slane %v5646_v8, 4  ;;  %5648 = vst [vmem:[#allocation10_spill] sm:$0xff] %v5220_v46 }
  0x9a   :  { %3724 = vmatprep.subr.bf16.mxu0 %v3995_v14  ;;  %3598 = vmatprep.subr.bf16.mxu1 %v3997_v56  ;;  %v5647_v9 = vcombine.low %v5084_v31, %v5089_v16  ;;  %v2293_v37 = vrot.slane %v2292_v40, 4  ;;  %v5649_v63 = vshll.u32 %v5007_v41, 16  ;;  %v5651_v32 = vshll.u32 %v5012_v36, 16  ;;  %v4001_v31 = vld [vmem:[%s5544_s3 + $0x1f8] sm:$0xff]   ;;  %v5235_v40 = vld [vmem:[%s5547_s2 + $0x44] sm:$0x1] }
  0x9b   :  { %v2302_v19 = vrot.slane %v5642_v25, 4  ;;  %3583 = vmatmul.mubr.bf16.gmra.mrb[12].mxu1 %v5643_v44  ;;  %v5650_v25 = vshrl.u32 %v5012_v36, 16  ;;  %v3282_v16 = vcombine.low %v2228_v0, %v2242_v17  ;;  %v5246_v0 = vld [vmem:[%s5544_s3 + $0x200] sm:$0xff]   ;;  %v2309_v17 = vshll.u32 %v5208_v3, 16 }
  0x9c   :  { %3599 = vmatpush3.bf16.msra.mxu1 %v3997_v56  ;;  %3602 = vmatprep.mubr.bf16.mxu1 %v5647_v9  ;;  %v2319_v33 = vrot.slane %v5649_v63, 5  ;;  %v2333_v8 = vrot.slane %v5651_v32, 5  ;;  %v2384_v56 = vshrl.u32 %v5069_v7, 16  ;;  %v5652_v9 = vshrl.u32 %v5017_v6, 16 }
  0x9d   :  { %v2330_v44 = vrot.slane %v5650_v25, 4  ;;  %3725 = vmatpush3.bf16.msra.mxu0 %v3995_v14  ;;  %3600 = vmatprep.subr.bf16.mxu1 %v4000_v15  ;;  %v2347_v25 = vrot.slane %v2345_v43, 5  ;;  %v2387_v32 = vshll.u32 %v5069_v7, 16  ;;  %v2398_v14 = vshrl.u32 %v5079_v13, 16 }
  0x9e   :  { %v2344_v63 = vrot.slane %v5652_v9, 4  ;;  %3726 = vmatprep.subr.bf16.mxu0 %v3999_v22  ;;  %v5252_v9 = vld [vmem:[%s5547_s2 + $0x4c] sm:$0x1]  ;;  %v2270_v43 = vsel %vm4159_vm2, %v2265_v20, %v2269_v1  ;;  %v2284_v41 = vsel %vm4159_vm2, %v2279_v24, %v2283_v23  ;;  %v2306_v34 = vor.u32 %v2305_v18, %v2302_v19 }
  0x9f   :  { %v2323_v11 = vshll.u32 %v5220_v46, 16  ;;  %v2298_v61 = vsel %vm4159_vm2, %v2293_v37, %v2297_v28  ;;  %v2320_v3 = vor.u32 %v2319_v33, %v2316_v12  ;;  %v2334_v55 = vor.u32 %v2333_v8, %v2330_v44  ;;  %v5265_v20 = vld [vmem:[%s5544_s3 + $0x208] sm:$0xff]   ;;  %v5278_v37 = vld [vmem:[%s5547_s2 + $0x54] sm:$0x1] }
  0xa0   :  { %3711 = vmatmul.mubr.bf16.gmra.mrb[12].mxu0 %v3257_v30  ;;  %3601 = vmatpush3.bf16.msra.mxu1 %v4000_v15  ;;  %v2337_v29 = vshll.u32 %v5235_v40, 16  ;;  %v2348_v1 = vor.u32 %v2347_v25, %v2344_v63  ;;  %v2351_v19 = vshll.u32 %v5252_v9, 16  ;;  %v5653_v30 = vshrl.u32 %v5054_v10, 16 }
  0xa1   :  { %3727 = vmatpush3.bf16.msra.mxu0 %v3999_v22  ;;  %3730 = vmatprep.mubr.bf16.mxu0 %v3282_v16  ;;  %v5654_v23 = vshll.u32 %v5054_v10, 16  ;;  %v2401_v28 = vshll.u32 %v5079_v13, 16  ;;  %v2412_v18 = vshrl.u32 %v5141_v58, 16  ;;  %v3283_v22 = vcombine.low %v2256_v26, %v2270_v43 }
  0xa2   :  { %v2358_v15 = vrot.slane %v5653_v30, 4  ;;  %3728 = vmatprep.subr.bf16.mxu0 %v4001_v31  ;;  %3778 = vmatprep.subr.bf16.mxu1 %v5246_v0  ;;  %v2311_v12 = vrot.slane %v2309_v17, 5  ;;  %v5655_v33 = vcombine.low %v5108_v4, %v5113_v47  ;;  %v2307_v44 = vrot.slane %v2306_v34, 4  ;;  %v5294_v4 = vld [vmem:[%s5547_s2 + $0x5c] sm:$0x1] }
  0xa3   :  { %v2361_v24 = vrot.slane %v5654_v23, 5  ;;  %v2325_v8 = vrot.slane %v2323_v11, 5  ;;  %v5656_v16 = vshrl.u32 %v5059_v35, 16  ;;  %v5657_v25 = vshll.u32 %v5059_v35, 16 }
  0xa4   :  { %3603 = vmatmul.mubr.bf16.vlgmr.msra.gmra.mrb[0].mxu1 %v5655_v33  ;;  %v5658_v17 = vcombine.low %v5122_v62, %v5127_v45  ;;  %v3284_v43 = vcombine.low %v2284_v41, %v2298_v61  ;;  %v2321_v30 = vrot.slane %v2320_v3, 4  ;;  %v2335_v23 = vrot.slane %v2334_v55, 4  ;;  %v4008_v41 = vld [vmem:[%s5544_s3 + $0x210] sm:$0xff]   ;;  %v4041_v61 = vld [vmem:[%s5546_s1 + $0x38] sm:$0xf] }
  0xa5   :  { %v2372_v63 = vrot.slane %v5656_v16, 4  ;;  %v2375_v26 = vrot.slane %v5657_v25, 5  ;;  %3786 = vmatpush3.bf16.msra.mxu1 %v5246_v0  ;;  %v2339_v46 = vrot.slane %v2337_v29, 5  ;;  %3729 = vmatpush3.bf16.msra.mxu0 %v4001_v31  ;;  %v2349_v34 = vrot.slane %v2348_v1, 4  ;;  %v4040_v31 = vld [vmem:[%s5546_s1 + $0x30] sm:$0xf] }
  0xa6   :  { %3606 = vmatprep.mubr.bf16.mxu1 %v5658_v17  ;;  %3779 = vmatprep.subr.bf16.mxu1 %v5265_v20  ;;  %v2353_v47 = vrot.slane %v2351_v19, 5  ;;  %v2362_v11 = vor.u32 %v2361_v24, %v2358_v15  ;;  %v2365_v33 = vshll.u32 %v5278_v37, 16  ;;  %v2386_v55 = vrot.slane %v2384_v56, 4  ;;  %v5313_v56 = vld [vmem:[%s5547_s2 + $0x64] sm:$0x1] }
  0xa7   :  { %3746 = vmatprep.subr.bf16.mxu0 %v5246_v0  ;;  %v2389_v29 = vrot.slane %v2387_v32, 5  ;;  %v2400_v62 = vrot.slane %v2398_v14, 4  ;;  %v2403_v45 = vrot.slane %v2401_v28, 5  ;;  %v2415_v3 = vshll.u32 %v5141_v58, 16  ;;  %v5318_v32 = vld [vmem:[%s5547_s2 + $0x6c] sm:$0x1] }
  0xa8   :  { %v3141_v1 = vcombine.low %v4040_v31, %v4041_v61  ;;  %v2376_v19 = vor.u32 %v2375_v26, %v2372_v63  ;;  %v2379_v15 = vshll.u32 %v5294_v4, 16  ;;  %v2426_v14 = vshrl.u32 %v5169_v49, 16  ;;  %3731 = vmatmul.mubr.bf16.vlgmr.msra.gmra.mrb[0].mxu0 %v3283_v22  ;;  %v4009_v63 = vld [vmem:[%s5544_s3 + $0x218] sm:$0xff]  }
  0xa9   :  { %v2429_v24 = vshll.u32 %v5169_v49, 16  ;;  %3787 = vmatpush3.bf16.msra.mxu1 %v5265_v20  ;;  %v2312_v28 = vsel %vm4159_vm2, %v2307_v44, %v2311_v12  ;;  %v2326_v16 = vsel %vm4159_vm2, %v2321_v30, %v2325_v8  ;;  %3747 = vmatpush3.bf16.msra.mxu0 %v5246_v0  ;;  %v2340_v25 = vsel %vm4159_vm2, %v2335_v23, %v2339_v46 }
  0xaa   :  { %3734 = vmatprep.mubr.bf16.mxu0 %v3284_v43  ;;  %v2354_v22 = vsel %vm4159_vm2, %v2349_v34, %v2353_v47  ;;  %v2363_v26 = vrot.slane %v2362_v11, 4  ;;  %v2367_v17 = vrot.slane %v2365_v33, 5  ;;  %3748 = vmatprep.subr.bf16.mxu0 %v5265_v20  ;;  %v2390_v12 = vor.u32 %v2389_v29, %v2386_v55  ;;  %v5344_v34 = vld [vmem:[%s5547_s2 + $0x74] sm:$0x1] }
  0xab   :  { %3780 = vmatprep.subr.bf16.mxu1 %v4008_v41  ;;  %v2393_v44 = vshll.u32 %v5313_v56, 16  ;;  %v2404_v0 = vor.u32 %v2403_v45, %v2400_v62  ;;  %v2407_v8 = vshll.u32 %v5318_v32, 16  ;;  %v2377_v43 = vrot.slane %v2376_v19, 4 }
  0xac   :  { %3607 = vmatmul.mubr.bf16.gmra.mrb[4].mxu1 %v3141_v1  ;;  %v2381_v30 = vrot.slane %v2379_v15, 5  ;;  %v2414_v31 = vrot.slane %v2412_v18, 4  ;;  %v2417_v61 = vrot.slane %v2415_v3, 5  ;;  %v3285_v46 = vcombine.low %v2312_v28, %v2326_v16  ;;  %v5350_v18 = vld [vmem:[%s5547_s2 + $0x7c] sm:$0x1] }
  0xad   :  { %3788 = vmatpush3.bf16.msra.mxu1 %v4008_v41  ;;  %v5659_v23 = vcombine.low %v4411_v42, %v4429_v59  ;;  %v2428_v47 = vrot.slane %v2426_v14, 4  ;;  %v2431_v11 = vrot.slane %v2429_v24, 5  ;;  %3749 = vmatpush3.bf16.msra.mxu0 %v5265_v20  ;;  %v3286_v33 = vcombine.low %v2340_v25, %v2354_v22  ;;  %v4012_v42 = vld [vmem:[%s5544_s3 + $0x220] sm:$0xff]   ;;  %v4013_v14 = vld [vmem:[%s5544_s3 + $0x228] sm:$0xff]  }
  0xae   :  { %3781 = vmatprep.subr.bf16.mxu1 %v4009_v63  ;;  %3750 = vmatprep.subr.bf16.mxu0 %v4008_v41  ;;  %v2391_v59 = vrot.slane %v2390_v12, 4  ;;  %v2395_v55 = vrot.slane %v2393_v44, 5  ;;  %v2405_v29 = vrot.slane %v2404_v0, 4  ;;  %v2409_v62 = vrot.slane %v2407_v8, 5 }
  0xaf   :  { %3610 = vmatprep.mubr.bf16.mxu1 %v5659_v23  ;;  %v2368_v45 = vsel %vm4159_vm2, %v2363_v26, %v2367_v17  ;;  %v2382_v20 = vsel %vm4159_vm2, %v2377_v43, %v2381_v30  ;;  %v2418_v3 = vor.u32 %v2417_v61, %v2414_v31  ;;  %v2421_v1 = vshll.u32 %v5344_v34, 16 }
  0xb0   :  { %3735 = vmatmul.mubr.bf16.gmra.mrb[4].mxu0 %v3285_v46  ;;  %v2432_v19 = vor.u32 %v2431_v11, %v2428_v47  ;;  %v2435_v15 = vshll.u32 %v5350_v18, 16  ;;  %v3306_v24 = vrot.slane %v5012_v36, 9  ;;  %v2699_v28 = vrot.slane %v5235_v40, 5 }
  0xb1   :  { %3789 = vmatpush3.bf16.msra.mxu1 %v4009_v63  ;;  %3751 = vmatpush3.bf16.msra.mxu0 %v4008_v41  ;;  %v3307_v16 = vrot.slane %v5017_v6, 9  ;;  %v2703_v25 = vrot.slane %v5252_v9, 5  ;;  %v3287_v22 = vcombine.low %v2368_v45, %v2382_v20  ;;  %v2396_v26 = vsel %vm4159_vm2, %v2391_v59, %v2395_v55  ;;  %v5665_v55 = vld [vmem:[#allocation9_spill] sm:$0xff]  ;;  %v5667_v20 = vld [vmem:[#allocation14_spill] sm:$0xff] }
  0xb2   :  { %3738 = vmatprep.mubr.bf16.mxu0 %v3286_v33  ;;  %3752 = vmatprep.subr.bf16.mxu0 %v4009_v63  ;;  %v2410_v41 = vsel %vm4159_vm2, %v2405_v29, %v2409_v62  ;;  %v5660_v17 = vcombine.low %v4479_v39, %v5614_v57  ;;  %v2419_v36 = vrot.slane %v2418_v3, 4  ;;  %v2423_v12 = vrot.slane %v2421_v1, 5  ;;  %v5666_v62 = vld [vmem:[#allocation6_spill] sm:$0xff]  ;;  %v5668_v1 = vld [vmem:[#allocation4_spill] sm:$0xff] }
  0xb3   :  { %3782 = vmatprep.subr.bf16.mxu1 %v4012_v42  ;;  %v3298_v40 = vrot.slane %v4815_v52, 9  ;;  %v2667_v6 = vrot.slane %v5034_v21, 5  ;;  %v5661_v9 = vcombine.low %v5616_v2, %v5618_v53  ;;  %v2433_v44 = vrot.slane %v2432_v19, 4  ;;  %v4016_v2 = vld [vmem:[%s5544_s3 + $0x230] sm:$0xff]  }
  0xb4   :  { %3611 = vmatmul.mubr.bf16.gmra.mrb[8].mxu1 %v5660_v17  ;;  %v2437_v0 = vrot.slane %v2435_v15, 5  ;;  %v3299_v8 = vrot.slane %v4825_v51, 9  ;;  %v2671_v43 = vrot.slane %v5039_v60, 5  ;;  %v3288_v39 = vcombine.low %v2396_v26, %v2410_v41 }
  0xb5   :  { %3790 = vmatpush3.bf16.msra.mxu1 %v4012_v42  ;;  %3614 = vmatprep.mubr.bf16.mxu1 %v5661_v9  ;;  %v2700_v57 = vsel %vm4648_vm5, %v3306_v24, %v2699_v28  ;;  %v2704_v52 = vsel %vm4648_vm5, %v3307_v16, %v2703_v25  ;;  %v3308_v21 = vrot.slane %v5054_v10, 9  ;;  %v3309_v53 = vrot.slane %v5059_v35, 9  ;;  %v4017_v35 = vld [vmem:[%s5544_s3 + $0x238] sm:$0xff]  }
  0xb6   :  { %3753 = vmatpush3.bf16.msra.mxu0 %v4009_v63  ;;  %3783 = vmatprep.subr.bf16.mxu1 %v4013_v14  ;;  %v2707_v51 = vrot.slane %v5278_v37, 5  ;;  %v2424_v60 = vsel %vm4159_vm2, %v2419_v36, %v2423_v12  ;;  %v2668_v63 = vsel %vm4648_vm5, %v3298_v40, %v2667_v6  ;;  %v2711_v30 = vrot.slane %v5294_v4, 5  ;;  %v5670_v12 = vld [vmem:[#allocation12_spill] sm:$0xff] }
  0xb7   :  { %3754 = vmatprep.subr.bf16.mxu0 %v4012_v42  ;;  %v2438_v10 = vsel %vm4159_vm2, %v2433_v44, %v2437_v0  ;;  %v2672_v31 = vsel %vm4648_vm5, %v3299_v8, %v2671_v43  ;;  %v3334_v61 = vcombine.low %v2700_v57, %v2704_v52  ;;  %v3310_v37 = vrot.slane %v5069_v7, 9  ;;  %v5671_v6 = vld [vmem:[#allocation16_spill] sm:$0xff]  ;;  %v5672_v44 = vld [vmem:[#allocation10_spill] sm:$0xff] }
  0xb8   :  { %3739 = vmatmul.mubr.bf16.gmra.mrb[8].mxu0 %v3287_v22  ;;  %v2715_v46 = vrot.slane %v5313_v56, 5  ;;  %v3311_v4 = vrot.slane %v5079_v13, 9  ;;  %v2719_v23 = vrot.slane %v5318_v32, 5  ;;  %v3330_v47 = vcombine.low %v2668_v63, %v2672_v31  ;;  %v5664_v32 = vld [vmem:[#allocation8_spill] sm:$0xff] }
  0xb9   :  { %3791 = vmatpush3.bf16.msra.mxu1 %v4013_v14  ;;  %3742 = vmatprep.mubr.bf16.mxu0 %v3288_v39  ;;  %v3300_v11 = vrot.slane %v4928_v5, 9  ;;  %v3289_v33 = vcombine.low %v2424_v60, %v2438_v10  ;;  %v2708_v56 = vsel %vm4648_vm5, %v3308_v21, %v2707_v51  ;;  %v2712_v13 = vsel %vm4648_vm5, %v3309_v53, %v2711_v30 }
  0xba   :  { %3755 = vmatpush3.bf16.msra.mxu0 %v4012_v42  ;;  %3784 = vmatprep.subr.bf16.mxu1 %v4016_v2  ;;  %v5663_v42 = vld [vmem:[#allocation17_spill] sm:$0xff]  ;;  %v3301_v59 = vrot.slane %v5664_v32, 9  ;;  %v2716_v50 = vsel %vm4648_vm5, %v3310_v37, %v2715_v46  ;;  %v2720_v5 = vsel %vm4648_vm5, %v3311_v4, %v2719_v23  ;;  %v3302_v29 = vrot.slane %v5665_v55, 9 }
  0xbb   :  { %3756 = vmatprep.subr.bf16.mxu0 %v4013_v14  ;;  %v2675_v7 = vrot.slane %v5663_v42, 5  ;;  %v2683_v45 = vrot.slane %v5666_v62, 5  ;;  %v3303_v3 = vrot.slane %v5667_v20, 9  ;;  %v2687_v19 = vrot.slane %v5668_v1, 5 }
  0xbc   :  { %3615 = vmatmul.mubr.bf16.gmra.mrb[12].mxu1 %v5662_v38  ;;  %v3335_v15 = vcombine.low %v2708_v56, %v2712_v13  ;;  %v3336_v48 = vcombine.low %v2716_v50, %v2720_v5  ;;  %v2723_v24 = vrot.slane %v5344_v34, 5  ;;  %v3313_v28 = vrot.slane %v5169_v49, 9  ;;  %v5669_v49 = vld [vmem:[#allocation15_spill] sm:$0xff] }
  0xbd   :  { %3792 = vmatpush3.bf16.msra.mxu1 %v4016_v2  ;;  %3770 = vmatprep.mubr.bf16.mxu1 %v3334_v61  ;;  %v2727_v16 = vrot.slane %v5350_v18, 5  ;;  %v2676_v25 = vsel %vm4648_vm5, %v3300_v11, %v2675_v7  ;;  %v2680_v22 = vsel %vm4648_vm5, %v3301_v59, %v2679_v54  ;;  %v2688_v26 = vsel %vm4648_vm5, %v3303_v3, %v2687_v19 }
  0xbe   :  { %3757 = vmatpush3.bf16.msra.mxu0 %v4013_v14  ;;  %3785 = vmatprep.subr.bf16.mxu1 %v4017_v35  ;;  %v3312_v14 = vrot.slane %v5141_v58, 9  ;;  %v2684_v58 = vsel %vm4648_vm5, %v3302_v29, %v2683_v45  ;;  %v3331_v34 = vcombine.low %v2676_v25, %v2680_v22  ;;  %v3304_v18 = vrot.slane %v5669_v49, 9 }
  0xbf   :  { %3758 = vmatprep.subr.bf16.mxu0 %v4016_v2  ;;  %v2728_v17 = vsel %vm4648_vm5, %v3313_v28, %v2727_v16  ;;  %v3332_v36 = vcombine.low %v2684_v58, %v2688_v26  ;;  %v2691_v40 = vrot.slane %v5670_v12, 5  ;;  %v3305_v9 = vrot.slane %v5671_v6, 9 }
  0xc0   :  { %3743 = vmatmul.mubr.bf16.gmra.mrb[12].mxu0 %v3289_v33  ;;  %v2724_v41 = vsel %vm4648_vm5, %v3312_v14, %v2723_v24  ;;  %v2695_v0 = vrot.slane %v5672_v44, 5 }
  0xc1   :  { %3793 = vmatpush3.bf16.msra.mxu1 %v4017_v35  ;;  %3762 = vmatprep.mubr.bf16.mxu0 %v3330_v47  ;;  %v3337_v8 = vcombine.low %v2724_v41, %v2728_v17  ;;  %v2692_v43 = vsel %vm4648_vm5, %v3304_v18, %v2691_v40 }
  0xc2   :  { %3759 = vmatpush3.bf16.msra.mxu0 %v4016_v2  ;;  %v2696_v39 = vsel %vm4648_vm5, %v3305_v9, %v2695_v0 }
  0xc3   :  { %3760 = vmatprep.subr.bf16.mxu0 %v4017_v35  ;;  %v3333_v57 = vcombine.low %v2692_v43, %v2696_v39 }
  0xc4   :  { %3771 = vmatmul.mubr.bf16.vlgmr.msra.gmra.mrb[16].mxu1 %v3335_v15 }
  0xc5   :  { %3774 = vmatprep.mubr.bf16.mxu1 %v3336_v48 }
  0xc6   :  { %3761 = vmatpush3.bf16.msra.mxu0 %v4017_v35 }
  0xc9   :  { %3763 = vmatmul.mubr.bf16.vlgmr.msra.gmra.mrb[0].mxu0 %v3331_v34 }
  0xca   :  { %3766 = vmatprep.mubr.bf16.mxu0 %v3332_v36 }
  0xcc   :  { %3775 = vmatmul.mubr.bf16.gmra.mrb[20].mxu1 %v3337_v8 }
  0xd1   :  { %3767 = vmatmul.mubr.bf16.gmra.mrb[4].mxu0 %v3333_v57 }
 0x177   :  { %v3604_v52 = vpop.f32.mrb[0].mxu1 }
 0x178   :  { %v1154_v21 = vpop.f32.mrb[1].mxu1 }
 0x179   :  { %v3605_v2 = vpop.f32.mrb[2].mxu1 }
 0x17a   :  { %v1157_v53 = vpop.f32.mrb[3].mxu1 }
 0x17f   :  { %v5451_v51 = vpop.f32.mrb[4].mxu1 }
 0x180   :  { %v5453_v60 = vpop.f32.mrb[5].mxu1 }
 0x181   :  { %v5455_v63 = vpop.f32.mrb[6].mxu1 }
 0x182   :  { %v5457_v30 = vpop.f32.mrb[7].mxu1 }
 0x187   :  { %v3612_v10 = vpop.f32.mrb[8].mxu1 }
 0x188   :  { %v1186_v31 = vpop.f32.mrb[9].mxu1 }
 0x189   :  { %v3613_v61 = vpop.f32.mrb[10].mxu1 }
 0x18a   :  { %v1189_v27 = vpop.f32.mrb[11].mxu1 }
 0x18b   :  { %v3740_v35 = vpop.f32.mrb[8].mxu0 }
 0x18c   :  { %v3802_v37 = vadd.f32 %v3740_v35, %v3612_v10  ;;  %v2602_v46 = vpop.f32.mrb[9].mxu0 }
 0x18d   :  { %v3804_v4 = vadd.f32 %v2602_v46, %v1186_v31  ;;  %v3741_v23 = vpop.f32.mrb[10].mxu0 }
 0x18e   :  { %v3806_v38 = vadd.f32 %v3741_v23, %v3613_v61  ;;  %v2605_v47 = vpop.f32.mrb[11].mxu0 }
 0x18f   :  { %v3616_v11 = vpop.f32.mrb[12].mxu1  ;;  %v3808_v33 = vadd.f32 %v2605_v47, %v1189_v27 }
 0x190   :  { %v1202_v42 = vpop.f32.mrb[13].mxu1 }
 0x191   :  { %v3617_v7 = vpop.f32.mrb[14].mxu1 }
 0x192   :  { %v1205_v56 = vpop.f32.mrb[15].mxu1 }
 0x193   :  { %v3744_v13 = vpop.f32.mrb[12].mxu0 }
 0x194   :  { %v3810_v32 = vadd.f32 %v3744_v13, %v3616_v11  ;;  %v2618_v59 = vpop.f32.mrb[13].mxu0 }
 0x195   :  { %v3812_v54 = vadd.f32 %v2618_v59, %v1202_v42  ;;  %v3745_v50 = vpop.f32.mrb[14].mxu0 }
 0x196   :  { %v3814_v5 = vadd.f32 %v3745_v50, %v3617_v7  ;;  %v2621_v55 = vpop.f32.mrb[15].mxu0 }
 0x197   :  { %v3772_v29 = vpop.f32.mrb[16].mxu1  ;;  %v3816_v62 = vadd.f32 %v2621_v55, %v1205_v56 }
 0x198   :  { %v5459_v45 = vadd.f32 %v3802_v37, %v3772_v29  ;;  %v2892_v20 = vpop.f32.mrb[17].mxu1 }
 0x199   :  { %v5461_v3 = vadd.f32 %v3804_v4, %v2892_v20  ;;  %v3773_v1 = vpop.f32.mrb[18].mxu1 }
 0x19a   :  { %2949 = vst [vmem:[%s5548_s4 + $0x50] sm:$0xff] %v5459_v45  ;;  %v5467_v19 = vadd.f32 %v3806_v38, %v3773_v1  ;;  %v2895_v15 = vpop.f32.mrb[19].mxu1 }
 0x19b   :  { %2947 = vst [vmem:[%s5548_s4 + $0x40] sm:$0xff] %v5461_v3  ;;  %v5473_v14 = vadd.f32 %v3808_v33, %v2895_v15 }
 0x19c   :  { %v3764_v48 = vpop.f32.mrb[0].mxu0  ;;  %2950 = vst [vmem:[%s5548_s4 + $0x58] sm:$0xff] %v5467_v19  ;;  %v2987_v55 = vmul.f32 %v5467_v19, %v5467_v19 }
 0x19d   :  { %v3794_v24 = vadd.f32 %v3764_v48, %v3604_v52  ;;  %v2860_v28 = vpop.f32.mrb[1].mxu0  ;;  %2948 = vst [vmem:[%s5548_s4 + $0x48] sm:$0xff] %v5473_v14  ;;  %v2985_v13 = vmul.f32 %v5473_v14, %v5473_v14 }
 0x19e   :  { %v3795_v16 = vadd.f32 %v2860_v28, %v1154_v21  ;;  %v3765_v25 = vpop.f32.mrb[2].mxu0 }
 0x19f   :  { %2941 = vst [vmem:[%s5548_s4 + $0x10] sm:$0xff] %v3794_v24  ;;  %v3796_v22 = vadd.f32 %v3765_v25, %v3605_v2  ;;  %v2863_v58 = vpop.f32.mrb[3].mxu0  ;;  %v3776_v26 = vpop.f32.mrb[20].mxu1  ;;  %v2978_v0 = vmul.f32 %v3794_v24, %v3794_v24 }
 0x1a0   :  { %2939 = vst [vmem:[%s5548_s4] sm:$0xff] %v3795_v16  ;;  %v3797_v34 = vadd.f32 %v2863_v58, %v1157_v53  ;;  %v5489_v49 = vadd.f32 %v3810_v32, %v3776_v26  ;;  %v2908_v18 = vpop.f32.mrb[21].mxu1  ;;  %v2976_v36 = vmul.f32 %v3795_v16, %v3795_v16 }
 0x1a1   :  { %2942 = vst [vmem:[%s5548_s4 + $0x18] sm:$0xff] %v3796_v22  ;;  %v3813_v41 = vadd.f32 %v3812_v54, %v2908_v18  ;;  %v3777_v17 = vpop.f32.mrb[22].mxu1  ;;  %v2979_v21 = vmul.f32 %v3796_v22, %v3796_v22  ;;  %v2986_v54 = vmul.f32 %v5459_v45, %v5459_v45 }
 0x1a2   :  { %2940 = vst [vmem:[%s5548_s4 + $0x8] sm:$0xff] %v3797_v34  ;;  %v2955_v12 = vadd.f32 %v3797_v34, %v3795_v16  ;;  %v2977_v40 = vmul.f32 %v3797_v34, %v3797_v34  ;;  %2953 = vst [vmem:[%s5548_s4 + $0x70] sm:$0xff] %v5489_v49  ;;  %v3815_v6 = vadd.f32 %v3814_v5, %v3777_v17  ;;  %v2911_v9 = vpop.f32.mrb[23].mxu1 }
 0x1a3   :  { %2951 = vst [vmem:[%s5548_s4 + $0x60] sm:$0xff] %v3813_v41  ;;  %v3817_v44 = vadd.f32 %v3816_v62, %v2911_v9  ;;  %v2988_v20 = vmul.f32 %v3813_v41, %v3813_v41 }
 0x1a4   :  { %v2956_v8 = vadd.f32 %v3794_v24, %v2955_v12  ;;  %v2992_v43 = vadd.f32 %v2977_v40, %v2976_v36  ;;  %v3768_v39 = vpop.f32.mrb[4].mxu0  ;;  %2954 = vst [vmem:[%s5548_s4 + $0x78] sm:$0xff] %v3815_v6 }
 0x1a5   :  { %v3798_v57 = vadd.f32 %v3768_v39, %v5451_v51  ;;  %v2876_v52 = vpop.f32.mrb[5].mxu0  ;;  %2952 = vst [vmem:[%s5548_s4 + $0x68] sm:$0xff] %v3817_v44  ;;  %v2989_v48 = vmul.f32 %v3817_v44, %v3817_v44 }
 0x1a6   :  { %v2993_v2 = vadd.f32 %v2992_v43, %v2978_v0  ;;  %v3799_v53 = vadd.f32 %v2876_v52, %v5453_v60  ;;  %v2957_v10 = vadd.f32 %v3796_v22, %v2956_v8  ;;  %v3769_v31 = vpop.f32.mrb[6].mxu0 }
 0x1a7   :  { %2945 = vst [vmem:[%s5548_s4 + $0x30] sm:$0xff] %v3798_v57  ;;  %v3800_v61 = vadd.f32 %v3769_v31, %v5455_v63  ;;  %v2879_v27 = vpop.f32.mrb[7].mxu0  ;;  %v2982_v23 = vmul.f32 %v3798_v57, %v3798_v57 }
 0x1a8   :  { %2943 = vst [vmem:[%s5548_s4 + $0x20] sm:$0xff] %v3799_v53  ;;  %v2958_v51 = vadd.f32 %v3799_v53, %v2957_v10  ;;  %v2980_v35 = vmul.f32 %v3799_v53, %v3799_v53  ;;  %v2994_v37 = vadd.f32 %v2993_v2, %v2979_v21  ;;  %v3801_v46 = vadd.f32 %v2879_v27, %v5457_v30 }
 0x1a9   :  { %2946 = vst [vmem:[%s5548_s4 + $0x38] sm:$0xff] %v3800_v61  ;;  %v2983_v11 = vmul.f32 %v3800_v61, %v3800_v61  ;;  %v2984_v30 = vmul.f32 %v5461_v3, %v5461_v3 }
 0x1aa   :  { %v2995_v60 = vadd.f32 %v2994_v37, %v2980_v35  ;;  %2944 = vst [vmem:[%s5548_s4 + $0x28] sm:$0xff] %v3801_v46  ;;  %v2959_v63 = vadd.f32 %v3801_v46, %v2958_v51  ;;  %v2981_v4 = vmul.f32 %v3801_v46, %v3801_v46 }
 0x1ac   :  { %v2960_v38 = vadd.f32 %v3798_v57, %v2959_v63  ;;  %v2996_v47 = vadd.f32 %v2995_v60, %v2981_v4 }
 0x1ae   :  { %v2961_v33 = vadd.f32 %v3800_v61, %v2960_v38  ;;  %v2997_v42 = vadd.f32 %v2996_v47, %v2982_v23 }
 0x1b0   :  { %v2962_v7 = vadd.f32 %v5461_v3, %v2961_v33  ;;  %v2998_v56 = vadd.f32 %v2997_v42, %v2983_v11 }
 0x1b2   :  { %v2999_v32 = vadd.f32 %v2998_v56, %v2984_v30  ;;  %v2963_v59 = vadd.f32 %v5473_v14, %v2962_v7  ;;  %v2990_v14 = vmul.f32 %v5489_v49, %v5489_v49 }
 0x1b4   :  { %v2964_v50 = vadd.f32 %v5459_v45, %v2963_v59  ;;  %v3000_v5 = vadd.f32 %v2999_v32, %v2985_v13  ;;  %v2991_v45 = vmul.f32 %v3815_v6, %v3815_v6 }
 0x1b6   :  { %v2965_v29 = vadd.f32 %v5467_v19, %v2964_v50  ;;  %v3001_v62 = vadd.f32 %v3000_v5, %v2986_v54 }
 0x1b8   :  { %v2966_v3 = vadd.f32 %v3813_v41, %v2965_v29  ;;  %v3002_v1 = vadd.f32 %v3001_v62, %v2987_v55 }
 0x1ba   :  { %v2967_v15 = vadd.f32 %v3817_v44, %v2966_v3  ;;  %v3003_v24 = vadd.f32 %v3002_v1, %v2988_v20 }
 0x1bc   :  { %v2968_v28 = vadd.f32 %v5489_v49, %v2967_v15  ;;  %v3004_v16 = vadd.f32 %v3003_v24, %v2989_v48 }
 0x1be   :  { %v2969_v25 = vadd.f32 %v3815_v6, %v2968_v28  ;;  %v3005_v22 = vadd.f32 %v3004_v16, %v2990_v14 }
 0x1c0   :  { %v2970_v58 = vrot.slane %v2969_v25, 4  ;;  %v3006_v26 = vadd.f32 %v3005_v22, %v2991_v45 }
 0x1c2   :  { %v2971_v34 = vadd.f32 %v2970_v58, %v2969_v25  ;;  %v3007_v19 = vrot.slane %v3006_v26, 4 }
 0x1c4   :  { %v2972_v18 = vrot.slane %v2971_v34, 2  ;;  %v3008_v17 = vadd.f32 %v3007_v19, %v3006_v26 }
 0x1c6   :  { %v2973_v41 = vadd.f32 %v2972_v18, %v2971_v34  ;;  %v3009_v36 = vrot.slane %v3008_v17, 2 }
 0x1c8   :  { %v2974_v12 = vrot.slane %v2973_v41, 1  ;;  %v3010_v40 = vadd.f32 %v3009_v36, %v3008_v17 }
 0x1ca   :  { %v3011_v9 = vrot.slane %v3010_v40, 1  ;;  %v2975_v44 = vadd.f32 %v2974_v12, %v2973_v41 }
 0x1cc   :  { %v3012_v0 = vadd.f32 %v3011_v9, %v3010_v40 }
 0x1ce   :  { %v3014_v49 = vsel %vm3013_vm6, %v2975_v44, %v3012_v0 }
 0x1cf   :  { %v3016_v8 = vsel %vm3015_vm7, %v3014_v49, 0.0 }
 0x1d0   :  { %3017 = vst [vmem:[%s5549_s5] sm:$0xff] %v3016_v8 }

</bundles_post_ra>
